<compile_context>
chip_gen: v7x
topology: tpu7x:2x2x1
jax: 0.10.0
libtpu: 0.0.40
codegen_flags: <defaults>
</compile_context>

<pallas_src>
import functools
import math

import jax
import jax.numpy as jnp
from jax.experimental import pallas as pl
from jax.experimental.pallas import tpu as pltpu

_LN_EPS = 1e-5
_BN_EPS = 1e-5
_VMEM_LIMIT = 48 * 1024 * 1024   # safe on v5e/v6e (128 MiB) and v7x (64 MiB)


def _pick_tile(dim, candidates):
    """Largest candidate that divides dim, else the full dim (single block)."""
    for c in candidates:
        if c <= dim and dim % c == 0:
            return c
    return dim


# ----------------------------------------------------------------------------
# Tiled matmul + bias (+ activation):  bf16 MXU operands, f32 accumulation
# ----------------------------------------------------------------------------

def _matmul_bias_kernel(x_ref, w_ref, b_ref, o_ref, *, activation):
    acc = jnp.dot(x_ref[...], w_ref[...], preferred_element_type=jnp.float32)
    acc = acc + b_ref[...]
    if activation == "relu":
        acc = jnp.maximum(acc, 0.0)
    o_ref[...] = acc.astype(o_ref.dtype)


def _matmul_acc_kernel(x_ref, w_ref, b_ref, o_ref, acc_ref, *, activation):
    @pl.when(pl.program_id(2) == 0)
    def _():
        acc_ref[...] = jnp.zeros_like(acc_ref)

    acc_ref[...] += jnp.dot(x_ref[...], w_ref[...],
                            preferred_element_type=jnp.float32)

    @pl.when(pl.program_id(2) == pl.num_programs(2) - 1)
    def _():
        r = acc_ref[...] + b_ref[...]
        if activation == "relu":
            r = jnp.maximum(r, 0.0)
        o_ref[...] = r.astype(o_ref.dtype)


def linear(x, w, b, activation="none", out_dtype=jnp.float32):
    """x: [M, K], w: [K, N] (bf16, pre-transposed), b: [N] -> [M, N]."""
    M, K = x.shape
    N = w.shape[1]
    tm = _pick_tile(M, (256, 128, 64, 32, 16, 8))
    tn = _pick_tile(N, (512, 256, 128))
    tk = _pick_tile(K, (512, 256, 128))
    grid = (M // tm, N // tn, K // tk)
    x = x.astype(jnp.bfloat16)
    w = w.astype(jnp.bfloat16)
    b2 = b.reshape(1, N).astype(jnp.float32)
    if grid[2] == 1:
        kernel = functools.partial(_matmul_bias_kernel, activation=activation)
        scratch = ()
    else:
        kernel = functools.partial(_matmul_acc_kernel, activation=activation)
        scratch = (pltpu.VMEM((tm, tn), jnp.float32),)
    return pl.pallas_call(
        kernel,
        grid=grid,
        in_specs=[pl.BlockSpec((tm, tk), lambda i, j, k: (i, k)),
                  pl.BlockSpec((tk, tn), lambda i, j, k: (k, j)),
                  pl.BlockSpec((1, tn), lambda i, j, k: (0, j))],
        out_specs=pl.BlockSpec((tm, tn), lambda i, j, k: (i, j)),
        out_shape=jax.ShapeDtypeStruct((M, N), out_dtype),
        scratch_shapes=scratch,
        compiler_params=pltpu.CompilerParams(
            dimension_semantics=("parallel", "parallel", "arbitrary"),
            vmem_limit_bytes=_VMEM_LIMIT),
    )(x, w, b2)


# ----------------------------------------------------------------------------
# Conv1d (+ folded BN, + ReLU, optional fused PE add): k shifted matmuls,
# no JAX-side im2col blow-up.
# ----------------------------------------------------------------------------

def _conv_kernel(x_ref, w_ref, b_ref, *rest, k, has_pe):
    if has_pe:
        pe_ref, o_ref = rest
    else:
        (o_ref,) = rest
    S = o_ref.shape[1]
    x = x_ref[0]                                              # [S + k - 1, Cin]
    acc = jnp.dot(x[0:S, :], w_ref[0], preferred_element_type=jnp.float32)
    for j in range(1, k):
        acc = acc + jnp.dot(x[j:j + S, :], w_ref[j],
                            preferred_element_type=jnp.float32)
    y = jnp.maximum(acc + b_ref[...], 0.0)
    if has_pe:
        y = y + pe_ref[...]
    o_ref[0] = y


def conv1d_bn_relu(x, w, b, *, padding, pe=None):
    """x: [B, S, Cin]; w: [k, Cin, Cout] (bf16, BN folded); 'same' conv."""
    B, S, Cin = x.shape
    k, _, Cout = w.shape
    xp = jnp.pad(x.astype(jnp.bfloat16), ((0, 0), (padding, padding), (0, 0)))
    Sp = S + 2 * padding
    in_specs = [pl.BlockSpec((1, Sp, Cin), lambda i: (i, 0, 0)),
                pl.BlockSpec((k, Cin, Cout), lambda i: (0, 0, 0)),
                pl.BlockSpec((1, Cout), lambda i: (0, 0))]
    args = [xp, w, b.reshape(1, Cout)]
    if pe is not None:
        in_specs.append(pl.BlockSpec((S, Cout), lambda i: (0, 0)))
        args.append(pe)
    return pl.pallas_call(
        functools.partial(_conv_kernel, k=k, has_pe=pe is not None),
        grid=(B,),
        in_specs=in_specs,
        out_specs=pl.BlockSpec((1, S, Cout), lambda i: (i, 0, 0)),
        out_shape=jax.ShapeDtypeStruct((B, S, Cout), jnp.float32),
        compiler_params=pltpu.CompilerParams(dimension_semantics=("parallel",)),
    )(*args)


# ----------------------------------------------------------------------------
# Multi-head attention core: one grid step per batch, all heads inside the
# kernel, lane-dense [S, d] output.
# ----------------------------------------------------------------------------

def _attn_heads(q, k, v, nhead, scale):
    hd = q.shape[-1] // nhead
    parts = []
    for h in range(nhead):
        sl = slice(h * hd, (h + 1) * hd)
        s = jax.lax.dot_general(
            q[:, sl], k[:, sl],
            dimension_numbers=(((1,), (1,)), ((), ())),
            preferred_element_type=jnp.float32) * scale
        s = s - jnp.max(s, axis=-1, keepdims=True)
        p = jnp.exp(s)
        p = p * pl.reciprocal(jnp.sum(p, axis=-1, keepdims=True), approx=True)
        parts.append(jnp.dot(p.astype(v.dtype), v[:, sl],
                             preferred_element_type=jnp.float32))
    return jnp.concatenate(parts, axis=-1)


def _self_attn_kernel(qkv_ref, o_ref, *, nhead, d, scale):
    x = qkv_ref[0]                                            # [S, 3d] bf16
    o_ref[0] = _attn_heads(x[:, :d], x[:, d:2 * d], x[:, 2 * d:], nhead, scale)


def _cross_attn_kernel(q_ref, kv_ref, o_ref, *, nhead, d, scale):
    q = q_ref[0]                                              # [Sq, d]  bf16
    kv = kv_ref[0]                                            # [Sk, 2d] bf16
    o_ref[0] = _attn_heads(q, kv[:, :d], kv[:, d:], nhead, scale)


def self_attention(qkv, nhead):
    """qkv: [B, S, 3d] (bf16, packed q|k|v) -> [B, S, d] (f32)."""
    B, S, d3 = qkv.shape
    d = d3 // 3
    scale = 1.0 / math.sqrt(d // nhead)
    return pl.pallas_call(
        functools.partial(_self_attn_kernel, nhead=nhead, d=d, scale=scale),
        grid=(B,),
        in_specs=[pl.BlockSpec((1, S, d3), lambda i: (i, 0, 0))],
        out_specs=pl.BlockSpec((1, S, d), lambda i: (i, 0, 0)),
        out_shape=jax.ShapeDtypeStruct((B, S, d), jnp.float32),
        compiler_params=pltpu.CompilerParams(dimension_semantics=("parallel",)),
    )(qkv)


def cross_attention(q, kv, nhead):
    """q: [B, Sq, d] (bf16), kv: [B, Sk, 2d] (bf16, packed k|v) -> [B, Sq, d]."""
    B, Sq, d = q.shape
    Sk = kv.shape[1]
    scale = 1.0 / math.sqrt(d // nhead)
    return pl.pallas_call(
        functools.partial(_cross_attn_kernel, nhead=nhead, d=d, scale=scale),
        grid=(B,),
        in_specs=[pl.BlockSpec((1, Sq, d), lambda i: (i, 0, 0)),
                  pl.BlockSpec((1, Sk, 2 * d), lambda i: (i, 0, 0))],
        out_specs=pl.BlockSpec((1, Sq, d), lambda i: (i, 0, 0)),
        out_shape=jax.ShapeDtypeStruct((B, Sq, d), jnp.float32),
        compiler_params=pltpu.CompilerParams(dimension_semantics=("parallel",)),
    )(q, kv)


# ----------------------------------------------------------------------------
# Fused (out-projection + residual + LayerNorm) and (FFN + residual + LayerNorm)
# ----------------------------------------------------------------------------

def _proj_res_ln_kernel(a_ref, w_ref, b_ref, r_ref, g_ref, bb_ref, o_ref, *, eps):
    y = jnp.dot(a_ref[...].astype(jnp.bfloat16), w_ref[...],
                preferred_element_type=jnp.float32)
    y = y + b_ref[...] + r_ref[...]
    mean = jnp.mean(y, axis=-1, keepdims=True)
    yc = y - mean
    var = jnp.mean(yc * yc, axis=-1, keepdims=True)
    o_ref[...] = yc * jax.lax.rsqrt(var + eps) * g_ref[...] + bb_ref[...]


def proj_residual_layernorm(a, w, b, res, gamma, beta):
    """LayerNorm(res + a @ w + b) ; a,res: [M,d], w: [d,d] bf16."""
    M, d = res.shape
    tm = _pick_tile(M, (256, 128, 64, 32, 16, 8))
    return pl.pallas_call(
        functools.partial(_proj_res_ln_kernel, eps=_LN_EPS),
        grid=(M // tm,),
        in_specs=[pl.BlockSpec((tm, d), lambda i: (i, 0)),
                  pl.BlockSpec((d, d), lambda i: (0, 0)),
                  pl.BlockSpec((1, d), lambda i: (0, 0)),
                  pl.BlockSpec((tm, d), lambda i: (i, 0)),
                  pl.BlockSpec((1, d), lambda i: (0, 0)),
                  pl.BlockSpec((1, d), lambda i: (0, 0))],
        out_specs=pl.BlockSpec((tm, d), lambda i: (i, 0)),
        out_shape=jax.ShapeDtypeStruct((M, d), jnp.float32),
        compiler_params=pltpu.CompilerParams(
            dimension_semantics=("parallel",), vmem_limit_bytes=_VMEM_LIMIT),
    )(a, w, b.reshape(1, d), res, gamma.reshape(1, d), beta.reshape(1, d))


def _ffn_res_ln_kernel(x_ref, w1_ref, b1_ref, w2_ref, b2_ref, g_ref, bb_ref,
                       o_ref, *, eps):
    x = x_ref[...]
    h = jnp.dot(x.astype(jnp.bfloat16), w1_ref[...],
                preferred_element_type=jnp.float32) + b1_ref[...]
    h = jnp.maximum(h, 0.0)
    y = jnp.dot(h.astype(jnp.bfloat16), w2_ref[...],
                preferred_element_type=jnp.float32) + b2_ref[...]
    y = y + x
    mean = jnp.mean(y, axis=-1, keepdims=True)
    yc = y - mean
    var = jnp.mean(yc * yc, axis=-1, keepdims=True)
    o_ref[...] = yc * jax.lax.rsqrt(var + eps) * g_ref[...] + bb_ref[...]


def ffn_residual_layernorm(x, w1, b1, w2, b2, gamma, beta):
    """LayerNorm(x + W2 @ relu(W1 @ x + b1) + b2); the 4d intermediate never
    touches HBM."""
    M, d = x.shape
    dff = w1.shape[1]
    tm = _pick_tile(M, (256, 128, 64, 32, 16, 8))
    return pl.pallas_call(
        functools.partial(_ffn_res_ln_kernel, eps=_LN_EPS),
        grid=(M // tm,),
        in_specs=[pl.BlockSpec((tm, d), lambda i: (i, 0)),
                  pl.BlockSpec((d, dff), lambda i: (0, 0)),
                  pl.BlockSpec((1, dff), lambda i: (0, 0)),
                  pl.BlockSpec((dff, d), lambda i: (0, 0)),
                  pl.BlockSpec((1, d), lambda i: (0, 0)),
                  pl.BlockSpec((1, d), lambda i: (0, 0)),
                  pl.BlockSpec((1, d), lambda i: (0, 0))],
        out_specs=pl.BlockSpec((tm, d), lambda i: (i, 0)),
        out_shape=jax.ShapeDtypeStruct((M, d), jnp.float32),
        compiler_params=pltpu.CompilerParams(
            dimension_semantics=("parallel",), vmem_limit_bytes=_VMEM_LIMIT),
    )(x, w1, b1.reshape(1, dff), w2, b2.reshape(1, d),
      gamma.reshape(1, d), beta.reshape(1, d))


# ----------------------------------------------------------------------------
# Fused head: final LayerNorm + residual add + attention pooling + fc1/fc2.
# One kernel per batch element; no [B*S,1] / N=1 intermediates in HBM.
# ----------------------------------------------------------------------------

def _head_kernel(x_ref, r_ref, fg_ref, fb_ref, a1w_ref, a1b_ref, a2w_ref,
                 a2b_ref, f1w_ref, f1b_ref, f2w_ref, f2b_ref, o_ref, *, eps):
    x = x_ref[0]                                              # [S, d] f32
    mean = jnp.mean(x, axis=-1, keepdims=True)
    xc = x - mean
    var = jnp.mean(xc * xc, axis=-1, keepdims=True)
    x = xc * jax.lax.rsqrt(var + eps) * fg_ref[...] + fb_ref[...]
    x = x + r_ref[0]                                          # residual broadcast
    a = jnp.tanh(jnp.dot(x.astype(jnp.bfloat16), a1w_ref[...],
                         preferred_element_type=jnp.float32) + a1b_ref[...])
    s = jnp.dot(a.astype(jnp.bfloat16), a2w_ref[...],
                preferred_element_type=jnp.float32) + a2b_ref[...]     # [S, 1]
    s = s - jnp.max(s, axis=0, keepdims=True)                 # softmax over seq
    p = jnp.exp(s)
    p = p * pl.reciprocal(jnp.sum(p, axis=0, keepdims=True), approx=True)
    pooled = jnp.sum(x * p, axis=0, keepdims=True)            # [1, d]
    h = jnp.maximum(jnp.dot(pooled.astype(jnp.bfloat16), f1w_ref[...],
                            preferred_element_type=jnp.float32) + f1b_ref[...],
                    0.0)
    y = jnp.dot(h.astype(jnp.bfloat16), f2w_ref[...],
                preferred_element_type=jnp.float32) + f2b_ref[...]     # [1, 1]
    o_ref[0] = y


def fused_head(dec_out, residual, pp):
    B, S, d = dec_out.shape
    fch = pp["fc1_w"].shape[1]
    out = pl.pallas_call(
        functools.partial(_head_kernel, eps=_LN_EPS),
        grid=(B,),
        in_specs=[pl.BlockSpec((1, S, d), lambda i: (i, 0, 0)),
                  pl.BlockSpec((1, 1, d), lambda i: (i, 0, 0)),
                  pl.BlockSpec((1, d), lambda i: (0, 0)),
                  pl.BlockSpec((1, d), lambda i: (0, 0)),
                  pl.BlockSpec((d, d), lambda i: (0, 0)),
                  pl.BlockSpec((1, d), lambda i: (0, 0)),
                  pl.BlockSpec((d, 1), lambda i: (0, 0)),
                  pl.BlockSpec((1, 1), lambda i: (0, 0)),
                  pl.BlockSpec((d, fch), lambda i: (0, 0)),
                  pl.BlockSpec((1, fch), lambda i: (0, 0)),
                  pl.BlockSpec((fch, 1), lambda i: (0, 0)),
                  pl.BlockSpec((1, 1), lambda i: (0, 0))],
        out_specs=pl.BlockSpec((1, 1, 1), lambda i: (i, 0, 0)),
        out_shape=jax.ShapeDtypeStruct((B, 1, 1), jnp.float32),
        compiler_params=pltpu.CompilerParams(dimension_semantics=("parallel",)),
    )(dec_out, residual.reshape(B, 1, d),
      pp["final_norm_g"].reshape(1, d), pp["final_norm_b"].reshape(1, d),
      pp["a1_w"], pp["a1_b"].reshape(1, d),
      pp["a2_w"], pp["a2_b"].reshape(1, 1),
      pp["fc1_w"], pp["fc1_b"].reshape(1, fch),
      pp["fc2_w"], pp["fc2_b"].reshape(1, 1))
    return out.reshape(B)


# ----------------------------------------------------------------------------
# Transformer layers built from the fused kernels
# ----------------------------------------------------------------------------

def encoder_layer(x, p, nhead):
    B, S, d = x.shape
    xf = x.reshape(B * S, d)
    qkv = linear(xf, p["qkv_w"], p["qkv_b"], out_dtype=jnp.bfloat16)
    attn = self_attention(qkv.reshape(B, S, 3 * d), nhead)
    x1 = proj_residual_layernorm(attn.reshape(B * S, d), p["out_w"], p["out_b"],
                                 xf, p["n1_g"], p["n1_b"])
    x2 = ffn_residual_layernorm(x1, p["w1"], p["b1"], p["w2"], p["b2"],
                                p["n2_g"], p["n2_b"])
    return x2.reshape(B, S, d)


def decoder_layer(x, memory, p, nhead):
    B, S, d = x.shape
    Sm = memory.shape[1]
    xf = x.reshape(B * S, d)
    # self-attention block
    qkv = linear(xf, p["qkv_w"], p["qkv_b"], out_dtype=jnp.bfloat16)
    attn = self_attention(qkv.reshape(B, S, 3 * d), nhead)
    x1 = proj_residual_layernorm(attn.reshape(B * S, d), p["out_w"], p["out_b"],
                                 xf, p["n1_g"], p["n1_b"])
    # cross-attention block
    q = linear(x1, p["cq_w"], p["cq_b"], out_dtype=jnp.bfloat16)
    kv = linear(memory.reshape(B * Sm, d), p["ckv_w"], p["ckv_b"],
                out_dtype=jnp.bfloat16)
    cattn = cross_attention(q.reshape(B, S, d), kv.reshape(B, Sm, 2 * d), nhead)
    x2 = proj_residual_layernorm(cattn.reshape(B * S, d), p["cout_w"],
                                 p["cout_b"], x1, p["n2_g"], p["n2_b"])
    # FFN block
    x3 = ffn_residual_layernorm(x2, p["w1"], p["b1"], p["w2"], p["b2"],
                                p["n3_g"], p["n3_b"])
    return x3.reshape(B, S, d)


def emodel_cnn_transformer_forward(x, pp, *, nhead=4):
    """x: [B, S, feature_dim] -> [B]  (inference-mode forward)."""
    # residual branch: feature_importance already folded into res_w
    residual = linear(x[:, -1, :], pp["res_w"], pp["res_b"], activation="relu")
    # CNN block: feature_importance folded into conv1, BN folded everywhere,
    # positional encoding added inside the last conv kernel (src == tgt).
    h = conv1d_bn_relu(x, pp["conv1_w"], pp["conv1_b"], padding=1)
    h = conv1d_bn_relu(h, pp["conv2_w"], pp["conv2_b"], padding=2)
    h = conv1d_bn_relu(h, pp["conv3_w"], pp["conv3_b"], padding=3, pe=pp["pe"])
    mem = h
    for lp in pp["enc_layers"]:
        mem = encoder_layer(mem, lp, nhead)
    out = h
    for lp in pp["dec_layers"]:
        out = decoder_layer(out, mem, lp, nhead)
    # final LN + residual + attention pooling + fc head, fused
    return fused_head(out, residual, pp)


# ----------------------------------------------------------------------------
# Parameter setup: raw PyTorch-layout params + one-time preparation pass
# (transposes, BN / feature-importance folding, PE, bf16 weight cast).
# ----------------------------------------------------------------------------

def positional_encoding(seq_len, d_model):
    position = jnp.arange(seq_len, dtype=jnp.float32)[:, None]
    div_term = jnp.exp(-(jnp.arange(0, d_model, 2, dtype=jnp.float32)
                         * math.log(10000.0) / d_model))
    pe = jnp.zeros((seq_len, d_model), dtype=jnp.float32)
    pe = pe.at[:, 0::2].set(jnp.sin(position * div_term))
    pe = pe.at[:, 1::2].set(jnp.cos(position * div_term))
    return pe


def init_params(key, feature_dim, hidden_size):
    d = 2 * hidden_size
    keys = iter(jax.random.split(key, 512))

    def rnd(shape, scale=0.1):
        return (scale * jax.random.normal(next(keys), shape)).astype(jnp.float32)

    def conv_p(cout, cin, k):
        return {"w": rnd((cout, cin, k)), "b": rnd((cout,)),
                "bn_g": 1.0 + rnd((cout,)), "bn_b": rnd((cout,)),
                "bn_mean": jnp.zeros((cout,), jnp.float32),
                "bn_var": jnp.ones((cout,), jnp.float32)}

    def mha_p():
        return {"in_proj_w": rnd((3 * d, d)), "in_proj_b": rnd((3 * d,)),
                "out_w": rnd((d, d)), "out_b": rnd((d,))}

    def enc_p():
        return {"attn": mha_p(),
                "lin1_w": rnd((4 * d, d)), "lin1_b": rnd((4 * d,)),
                "lin2_w": rnd((d, 4 * d)), "lin2_b": rnd((d,)),
                "n1_g": 1.0 + rnd((d,)), "n1_b": rnd((d,)),
                "n2_g": 1.0 + rnd((d,)), "n2_b": rnd((d,))}

    def dec_p():
        p = enc_p()
        p["cross"] = mha_p()
        p["n3_g"] = 1.0 + rnd((d,))
        p["n3_b"] = rnd((d,))
        return p

    return {
        "feature_importance": 1.0 + rnd((feature_dim,)),
        "conv1": conv_p(hidden_size, feature_dim, 3),
        "conv2": conv_p(hidden_size, hidden_size, 5),
        "conv3": conv_p(2 * hidden_size, hidden_size, 7),
        "enc_layers": [enc_p() for _ in range(2)],
        "dec_layers": [dec_p() for _ in range(2)],
        "final_norm_g": 1.0 + rnd((d,)), "final_norm_b": rnd((d,)),
        "attn1_w": rnd((d, d)), "attn1_b": rnd((d,)),
        "attn2_w": rnd((1, d)), "attn2_b": rnd((1,)),
        "fc1_w": rnd((128, d)), "fc1_b": rnd((128,)),
        "fc2_w": rnd((1, 128)), "fc2_b": rnd((1,)),
        "res_w": rnd((d, feature_dim)), "res_b": rnd((d,)),
    }


def prepare_params(raw, hidden_size, seq_len):
    """One-time fold/transposition pass (run OUTSIDE the jitted forward)."""
    d = 2 * hidden_size
    fi = raw["feature_importance"].astype(jnp.float32)

    def fold_conv(c, cin_scale=None):
        w = jnp.transpose(c["w"], (2, 1, 0)).astype(jnp.float32)   # [k, Cin, Cout]
        if cin_scale is not None:
            w = w * cin_scale[None, :, None]
        s = c["bn_g"] / jnp.sqrt(c["bn_var"] + _BN_EPS)
        w = w * s[None, None, :]
        b = (c["b"] - c["bn_mean"]) * s + c["bn_b"]
        return w.astype(jnp.bfloat16), b.astype(jnp.float32)

    def prep_mha(m):
        return {"qkv_w": m["in_proj_w"].T.astype(jnp.bfloat16),
                "qkv_b": m["in_proj_b"].astype(jnp.float32),
                "out_w": m["out_w"].T.astype(jnp.bfloat16),
                "out_b": m["out_b"].astype(jnp.float32)}

    def prep_enc(e):
        p = prep_mha(e["attn"])
        p.update({"w1": e["lin1_w"].T.astype(jnp.bfloat16), "b1": e["lin1_b"],
                  "w2": e["lin2_w"].T.astype(jnp.bfloat16), "b2": e["lin2_b"],
                  "n1_g": e["n1_g"], "n1_b": e["n1_b"],
                  "n2_g": e["n2_g"], "n2_b": e["n2_b"]})
        return p

    def prep_dec(dec):
        p = prep_enc(dec)
        cw, cb = dec["cross"]["in_proj_w"], dec["cross"]["in_proj_b"]
        p.update({"cq_w": cw[:d].T.astype(jnp.bfloat16), "cq_b": cb[:d],
                  "ckv_w": cw[d:].T.astype(jnp.bfloat16), "ckv_b": cb[d:],
                  "cout_w": dec["cross"]["out_w"].T.astype(jnp.bfloat16),
                  "cout_b": dec["cross"]["out_b"],
                  "n3_g": dec["n3_g"], "n3_b": dec["n3_b"]})
        return p

    conv1_w, conv1_b = fold_conv(raw["conv1"], cin_scale=fi)  # fold feature scale
    conv2_w, conv2_b = fold_conv(raw["conv2"])
    conv3_w, conv3_b = fold_conv(raw["conv3"])

    return {
        "conv1_w": conv1_w, "conv1_b": conv1_b,
        "conv2_w": conv2_w, "conv2_b": conv2_b,
        "conv3_w": conv3_w, "conv3_b": conv3_b,
        "pe": positional_encoding(seq_len, d),
        "enc_layers": [prep_enc(e) for e in raw["enc_layers"]],
        "dec_layers": [prep_dec(e) for e in raw["dec_layers"]],
        "final_norm_g": raw["final_norm_g"], "final_norm_b": raw["final_norm_b"],
        "a1_w": raw["attn1_w"].T.astype(jnp.bfloat16), "a1_b": raw["attn1_b"],
        "a2_w": raw["attn2_w"].T.astype(jnp.bfloat16), "a2_b": raw["attn2_b"],
        "fc1_w": raw["fc1_w"].T.astype(jnp.bfloat16), "fc1_b": raw["fc1_b"],
        "fc2_w": raw["fc2_w"].T.astype(jnp.bfloat16), "fc2_b": raw["fc2_b"],
        "res_w": (raw["res_w"].T * fi[:, None]).astype(jnp.bfloat16),
        "res_b": raw["res_b"],
    }


if __name__ == "__main__":
    B, S, F, H = 2, 8, 4, 32       # batch, seq, feature_dim, hidden (d_model=64)
    NHEAD = 4
    x = jax.random.normal(jax.random.PRNGKey(0), (B, S, F), dtype=jnp.float32)
    raw = init_params(jax.random.PRNGKey(42), F, H)
    pp = prepare_params(raw, H, S)            # one-time prep, outside jit

    fwd = jax.jit(functools.partial(emodel_cnn_transformer_forward, nhead=NHEAD))
    out = jax.block_until_ready(fwd(x, pp))

    assert out.shape == (B,), out.shape
    assert bool(jnp.all(jnp.isfinite(out)))
    print("KERNEL_OK")
</pallas_src>

<mosaic_0001>
module attributes {stable_mosaic.version = 11 : i64} {
  func.func @_conv_kernel(%arg0: i32, %arg1: memref<1x10x4xbf16, #tpu.memory_space<vmem>>, %arg2: memref<3x4x32xbf16, #tpu.memory_space<vmem>>, %arg3: memref<1x32xf32, #tpu.memory_space<vmem>>, %arg4: memref<1x8x32xf32, #tpu.memory_space<vmem>>) attributes {dimension_semantics = [#tpu.dimension_semantics<parallel>], iteration_bounds = array<i64: 2>, scalar_prefetch = 0 : i64, scratch_operands = 0 : i64, tpu.core_type = #tpu.core_type<tc>, window_params = [{transform_indices = @transform_0, window_bounds = array<i64: 1, 10, 4>}, {pipeline_mode = #tpu.pipeline_mode<synchronous>, transform_indices = @transform_1, window_bounds = array<i64: 3, 4, 32>}, {pipeline_mode = #tpu.pipeline_mode<synchronous>, transform_indices = @transform_2, window_bounds = array<i64: 1, 32>}, {transform_indices = @transform_3, window_bounds = array<i64: 1, 8, 32>}]} {
    %c0 = arith.constant 0 : index
    %c0_0 = arith.constant 0 : index
    %c0_1 = arith.constant 0 : index
    %0 = vector.load %arg1[%c0, %c0_0, %c0_1] : memref<1x10x4xbf16, #tpu.memory_space<vmem>>, vector<1x10x4xbf16>
    %1 = vector.shape_cast %0 : vector<1x10x4xbf16> to vector<10x4xbf16>
    %2 = vector.extract_strided_slice %1 {offsets = [0, 0], sizes = [8, 4], strides = [1, 1]} : vector<10x4xbf16> to vector<8x4xbf16>
    %c0_2 = arith.constant 0 : index
    %c0_3 = arith.constant 0 : index
    %c0_4 = arith.constant 0 : index
    %3 = vector.load %arg2[%c0_2, %c0_3, %c0_4] : memref<3x4x32xbf16, #tpu.memory_space<vmem>>, vector<1x4x32xbf16>
    %4 = vector.shape_cast %3 : vector<1x4x32xbf16> to vector<4x32xbf16>
    %cst = arith.constant dense<0.000000e+00> : vector<8x32xf32>
    %5 = tpu.matmul %2, %4, %cst {dimension_numbers = #tpu.dot_dimension_numbers<[1], [0], [0], [1], [0, 0, 1, 1], [], []>} : vector<8x4xbf16>, vector<4x32xbf16>, vector<8x32xf32> -> vector<8x32xf32>
    %6 = vector.extract_strided_slice %1 {offsets = [1, 0], sizes = [8, 4], strides = [1, 1]} : vector<10x4xbf16> to vector<8x4xbf16>
    %c1 = arith.constant 1 : index
    %c0_5 = arith.constant 0 : index
    %c0_6 = arith.constant 0 : index
    %7 = vector.load %arg2[%c1, %c0_5, %c0_6] : memref<3x4x32xbf16, #tpu.memory_space<vmem>>, vector<1x4x32xbf16>
    %8 = vector.shape_cast %7 : vector<1x4x32xbf16> to vector<4x32xbf16>
    %cst_7 = arith.constant dense<0.000000e+00> : vector<8x32xf32>
    %9 = tpu.matmul %6, %8, %cst_7 {dimension_numbers = #tpu.dot_dimension_numbers<[1], [0], [0], [1], [0, 0, 1, 1], [], []>} : vector<8x4xbf16>, vector<4x32xbf16>, vector<8x32xf32> -> vector<8x32xf32>
    %10 = arith.addf %5, %9 : vector<8x32xf32>
    %11 = vector.extract_strided_slice %1 {offsets = [2, 0], sizes = [8, 4], strides = [1, 1]} : vector<10x4xbf16> to vector<8x4xbf16>
    %c2 = arith.constant 2 : index
    %c0_8 = arith.constant 0 : index
    %c0_9 = arith.constant 0 : index
    %12 = vector.load %arg2[%c2, %c0_8, %c0_9] : memref<3x4x32xbf16, #tpu.memory_space<vmem>>, vector<1x4x32xbf16>
    %13 = vector.shape_cast %12 : vector<1x4x32xbf16> to vector<4x32xbf16>
    %cst_10 = arith.constant dense<0.000000e+00> : vector<8x32xf32>
    %14 = tpu.matmul %11, %13, %cst_10 {dimension_numbers = #tpu.dot_dimension_numbers<[1], [0], [0], [1], [0, 0, 1, 1], [], []>} : vector<8x4xbf16>, vector<4x32xbf16>, vector<8x32xf32> -> vector<8x32xf32>
    %15 = arith.addf %10, %14 : vector<8x32xf32>
    %c0_11 = arith.constant 0 : index
    %c0_12 = arith.constant 0 : index
    %16 = vector.load %arg3[%c0_11, %c0_12] : memref<1x32xf32, #tpu.memory_space<vmem>>, vector<1x32xf32>
    %17 = vector.broadcast %16 : vector<1x32xf32> to vector<8x32xf32>
    %18 = arith.addf %15, %17 : vector<8x32xf32>
    %cst_13 = arith.constant 0.000000e+00 : f32
    %19 = vector.broadcast %cst_13 : f32 to vector<8x32xf32>
    %20 = arith.maximumf %18, %19 : vector<8x32xf32>
    %c0_14 = arith.constant 0 : index
    %c0_15 = arith.constant 0 : index
    %c0_16 = arith.constant 0 : index
    %21 = vector.load %arg4[%c0_14, %c0_15, %c0_16] : memref<1x8x32xf32, #tpu.memory_space<vmem>>, vector<1x8x32xf32>
    %22 = vector.shape_cast %21 : vector<1x8x32xf32> to vector<8x32xf32>
    %23 = vector.shape_cast %20 : vector<8x32xf32> to vector<1x8x32xf32>
    tpu.vector_store %arg4[%c0_14, %c0_15, %c0_16], %23 {strides = array<i32>} : memref<1x8x32xf32, #tpu.memory_space<vmem>>, vector<1x8x32xf32>,
    return
  }
  func.func @transform_0(%arg0: i32) -> (i32, i32, i32) {
    %c0_i32 = arith.constant 0 : i32
    %c0_i32_0 = arith.constant 0 : i32
    %c0_i32_1 = arith.constant 0 : i32
    return %arg0, %c0_i32, %c0_i32_0 : i32, i32, i32
  }
  func.func @transform_1(%arg0: i32) -> (i32, i32, i32) {
    %c0_i32 = arith.constant 0 : i32
    %c0_i32_0 = arith.constant 0 : i32
    %c0_i32_1 = arith.constant 0 : i32
    %c0_i32_2 = arith.constant 0 : i32
    return %c0_i32, %c0_i32_0, %c0_i32_1 : i32, i32, i32
  }
  func.func @transform_2(%arg0: i32) -> (i32, i32) {
    %c0_i32 = arith.constant 0 : i32
    %c0_i32_0 = arith.constant 0 : i32
    %c0_i32_1 = arith.constant 0 : i32
    return %c0_i32, %c0_i32_0 : i32, i32
  }
  func.func @transform_3(%arg0: i32) -> (i32, i32, i32) {
    %c0_i32 = arith.constant 0 : i32
    %c0_i32_0 = arith.constant 0 : i32
    %c0_i32_1 = arith.constant 0 : i32
    return %arg0, %c0_i32, %c0_i32_0 : i32, i32, i32
  }
}

module attributes {stable_mosaic.version = 11 : i64} {
  func.func @_conv_kernel(%arg0: i32, %arg1: memref<1x12x32xbf16, #tpu.memory_space<vmem>>, %arg2: memref<5x32x32xbf16, #tpu.memory_space<vmem>>, %arg3: memref<1x32xf32, #tpu.memory_space<vmem>>, %arg4: memref<1x8x32xf32, #tpu.memory_space<vmem>>) attributes {dimension_semantics = [#tpu.dimension_semantics<parallel>], iteration_bounds = array<i64: 2>, scalar_prefetch = 0 : i64, scratch_operands = 0 : i64, tpu.core_type = #tpu.core_type<tc>, window_params = [{transform_indices = @transform_0, window_bounds = array<i64: 1, 12, 32>}, {pipeline_mode = #tpu.pipeline_mode<synchronous>, transform_indices = @transform_1, window_bounds = array<i64: 5, 32, 32>}, {pipeline_mode = #tpu.pipeline_mode<synchronous>, transform_indices = @transform_2, window_bounds = array<i64: 1, 32>}, {transform_indices = @transform_3, window_bounds = array<i64: 1, 8, 32>}]} {
    %c0 = arith.constant 0 : index
    %c0_0 = arith.constant 0 : index
    %c0_1 = arith.constant 0 : index
    %0 = vector.load %arg1[%c0, %c0_0, %c0_1] : memref<1x12x32xbf16, #tpu.memory_space<vmem>>, vector<1x12x32xbf16>
    %1 = vector.shape_cast %0 : vector<1x12x32xbf16> to vector<12x32xbf16>
    %2 = vector.extract_strided_slice %1 {offsets = [0, 0], sizes = [8, 32], strides = [1, 1]} : vector<12x32xbf16> to vector<8x32xbf16>
    %c0_2 = arith.constant 0 : index
    %c0_3 = arith.constant 0 : index
    %c0_4 = arith.constant 0 : index
    %3 = vector.load %arg2[%c0_2, %c0_3, %c0_4] : memref<5x32x32xbf16, #tpu.memory_space<vmem>>, vector<1x32x32xbf16>
    %4 = vector.shape_cast %3 : vector<1x32x32xbf16> to vector<32x32xbf16>
    %cst = arith.constant dense<0.000000e+00> : vector<8x32xf32>
    %5 = tpu.matmul %2, %4, %cst {dimension_numbers = #tpu.dot_dimension_numbers<[1], [0], [0], [1], [0, 0, 1, 1], [], []>} : vector<8x32xbf16>, vector<32x32xbf16>, vector<8x32xf32> -> vector<8x32xf32>
    %6 = vector.extract_strided_slice %1 {offsets = [1, 0], sizes = [8, 32], strides = [1, 1]} : vector<12x32xbf16> to vector<8x32xbf16>
    %c1 = arith.constant 1 : index
    %c0_5 = arith.constant 0 : index
    %c0_6 = arith.constant 0 : index
    %7 = vector.load %arg2[%c1, %c0_5, %c0_6] : memref<5x32x32xbf16, #tpu.memory_space<vmem>>, vector<1x32x32xbf16>
    %8 = vector.shape_cast %7 : vector<1x32x32xbf16> to vector<32x32xbf16>
    %cst_7 = arith.constant dense<0.000000e+00> : vector<8x32xf32>
    %9 = tpu.matmul %6, %8, %cst_7 {dimension_numbers = #tpu.dot_dimension_numbers<[1], [0], [0], [1], [0, 0, 1, 1], [], []>} : vector<8x32xbf16>, vector<32x32xbf16>, vector<8x32xf32> -> vector<8x32xf32>
    %10 = arith.addf %5, %9 : vector<8x32xf32>
    %11 = vector.extract_strided_slice %1 {offsets = [2, 0], sizes = [8, 32], strides = [1, 1]} : vector<12x32xbf16> to vector<8x32xbf16>
    %c2 = arith.constant 2 : index
    %c0_8 = arith.constant 0 : index
    %c0_9 = arith.constant 0 : index
    %12 = vector.load %arg2[%c2, %c0_8, %c0_9] : memref<5x32x32xbf16, #tpu.memory_space<vmem>>, vector<1x32x32xbf16>
    %13 = vector.shape_cast %12 : vector<1x32x32xbf16> to vector<32x32xbf16>
    %cst_10 = arith.constant dense<0.000000e+00> : vector<8x32xf32>
    %14 = tpu.matmul %11, %13, %cst_10 {dimension_numbers = #tpu.dot_dimension_numbers<[1], [0], [0], [1], [0, 0, 1, 1], [], []>} : vector<8x32xbf16>, vector<32x32xbf16>, vector<8x32xf32> -> vector<8x32xf32>
    %15 = arith.addf %10, %14 : vector<8x32xf32>
    %16 = vector.extract_strided_slice %1 {offsets = [3, 0], sizes = [8, 32], strides = [1, 1]} : vector<12x32xbf16> to vector<8x32xbf16>
    %c3 = arith.constant 3 : index
    %c0_11 = arith.constant 0 : index
    %c0_12 = arith.constant 0 : index
    %17 = vector.load %arg2[%c3, %c0_11, %c0_12] : memref<5x32x32xbf16, #tpu.memory_space<vmem>>, vector<1x32x32xbf16>
    %18 = vector.shape_cast %17 : vector<1x32x32xbf16> to vector<32x32xbf16>
    %cst_13 = arith.constant dense<0.000000e+00> : vector<8x32xf32>
    %19 = tpu.matmul %16, %18, %cst_13 {dimension_numbers = #tpu.dot_dimension_numbers<[1], [0], [0], [1], [0, 0, 1, 1], [], []>} : vector<8x32xbf16>, vector<32x32xbf16>, vector<8x32xf32> -> vector<8x32xf32>
    %20 = arith.addf %15, %19 : vector<8x32xf32>
    %21 = vector.extract_strided_slice %1 {offsets = [4, 0], sizes = [8, 32], strides = [1, 1]} : vector<12x32xbf16> to vector<8x32xbf16>
    %c4 = arith.constant 4 : index
    %c0_14 = arith.constant 0 : index
    %c0_15 = arith.constant 0 : index
    %22 = vector.load %arg2[%c4, %c0_14, %c0_15] : memref<5x32x32xbf16, #tpu.memory_space<vmem>>, vector<1x32x32xbf16>
    %23 = vector.shape_cast %22 : vector<1x32x32xbf16> to vector<32x32xbf16>
    %cst_16 = arith.constant dense<0.000000e+00> : vector<8x32xf32>
    %24 = tpu.matmul %21, %23, %cst_16 {dimension_numbers = #tpu.dot_dimension_numbers<[1], [0], [0], [1], [0, 0, 1, 1], [], []>} : vector<8x32xbf16>, vector<32x32xbf16>, vector<8x32xf32> -> vector<8x32xf32>
    %25 = arith.addf %20, %24 : vector<8x32xf32>
    %c0_17 = arith.constant 0 : index
    %c0_18 = arith.constant 0 : index
    %26 = vector.load %arg3[%c0_17, %c0_18] : memref<1x32xf32, #tpu.memory_space<vmem>>, vector<1x32xf32>
    %27 = vector.broadcast %26 : vector<1x32xf32> to vector<8x32xf32>
    %28 = arith.addf %25, %27 : vector<8x32xf32>
    %cst_19 = arith.constant 0.000000e+00 : f32
    %29 = vector.broadcast %cst_19 : f32 to vector<8x32xf32>
    %30 = arith.maximumf %28, %29 : vector<8x32xf32>
    %c0_20 = arith.constant 0 : index
    %c0_21 = arith.constant 0 : index
    %c0_22 = arith.constant 0 : index
    %31 = vector.load %arg4[%c0_20, %c0_21, %c0_22] : memref<1x8x32xf32, #tpu.memory_space<vmem>>, vector<1x8x32xf32>
    %32 = vector.shape_cast %31 : vector<1x8x32xf32> to vector<8x32xf32>
    %33 = vector.shape_cast %30 : vector<8x32xf32> to vector<1x8x32xf32>
    tpu.vector_store %arg4[%c0_20, %c0_21, %c0_22], %33 {strides = array<i32>} : memref<1x8x32xf32, #tpu.memory_space<vmem>>, vector<1x8x32xf32>,
    return
  }
  func.func @transform_0(%arg0: i32) -> (i32, i32, i32) {
    %c0_i32 = arith.constant 0 : i32
    %c0_i32_0 = arith.constant 0 : i32
    %c0_i32_1 = arith.constant 0 : i32
    return %arg0, %c0_i32, %c0_i32_0 : i32, i32, i32
  }
  func.func @transform_1(%arg0: i32) -> (i32, i32, i32) {
    %c0_i32 = arith.constant 0 : i32
    %c0_i32_0 = arith.constant 0 : i32
    %c0_i32_1 = arith.constant 0 : i32
    %c0_i32_2 = arith.constant 0 : i32
    return %c0_i32, %c0_i32_0, %c0_i32_1 : i32, i32, i32
  }
  func.func @transform_2(%arg0: i32) -> (i32, i32) {
    %c0_i32 = arith.constant 0 : i32
    %c0_i32_0 = arith.constant 0 : i32
    %c0_i32_1 = arith.constant 0 : i32
    return %c0_i32, %c0_i32_0 : i32, i32
  }
  func.func @transform_3(%arg0: i32) -> (i32, i32, i32) {
    %c0_i32 = arith.constant 0 : i32
    %c0_i32_0 = arith.constant 0 : i32
    %c0_i32_1 = arith.constant 0 : i32
    return %arg0, %c0_i32, %c0_i32_0 : i32, i32, i32
  }
}

module attributes {stable_mosaic.version = 11 : i64} {
  func.func @_conv_kernel(%arg0: i32, %arg1: memref<1x14x32xbf16, #tpu.memory_space<vmem>>, %arg2: memref<7x32x64xbf16, #tpu.memory_space<vmem>>, %arg3: memref<1x64xf32, #tpu.memory_space<vmem>>, %arg4: memref<8x64xf32, #tpu.memory_space<vmem>>, %arg5: memref<1x8x64xf32, #tpu.memory_space<vmem>>) attributes {dimension_semantics = [#tpu.dimension_semantics<parallel>], iteration_bounds = array<i64: 2>, scalar_prefetch = 0 : i64, scratch_operands = 0 : i64, tpu.core_type = #tpu.core_type<tc>, window_params = [{transform_indices = @transform_0, window_bounds = array<i64: 1, 14, 32>}, {pipeline_mode = #tpu.pipeline_mode<synchronous>, transform_indices = @transform_1, window_bounds = array<i64: 7, 32, 64>}, {pipeline_mode = #tpu.pipeline_mode<synchronous>, transform_indices = @transform_2, window_bounds = array<i64: 1, 64>}, {pipeline_mode = #tpu.pipeline_mode<synchronous>, transform_indices = @transform_3, window_bounds = array<i64: 8, 64>}, {transform_indices = @transform_4, window_bounds = array<i64: 1, 8, 64>}]} {
    %c0 = arith.constant 0 : index
    %c0_0 = arith.constant 0 : index
    %c0_1 = arith.constant 0 : index
    %0 = vector.load %arg1[%c0, %c0_0, %c0_1] : memref<1x14x32xbf16, #tpu.memory_space<vmem>>, vector<1x14x32xbf16>
    %1 = vector.shape_cast %0 : vector<1x14x32xbf16> to vector<14x32xbf16>
    %2 = vector.extract_strided_slice %1 {offsets = [0, 0], sizes = [8, 32], strides = [1, 1]} : vector<14x32xbf16> to vector<8x32xbf16>
    %c0_2 = arith.constant 0 : index
    %c0_3 = arith.constant 0 : index
    %c0_4 = arith.constant 0 : index
    %3 = vector.load %arg2[%c0_2, %c0_3, %c0_4] : memref<7x32x64xbf16, #tpu.memory_space<vmem>>, vector<1x32x64xbf16>
    %4 = vector.shape_cast %3 : vector<1x32x64xbf16> to vector<32x64xbf16>
    %cst = arith.constant dense<0.000000e+00> : vector<8x64xf32>
    %5 = tpu.matmul %2, %4, %cst {dimension_numbers = #tpu.dot_dimension_numbers<[1], [0], [0], [1], [0, 0, 1, 1], [], []>} : vector<8x32xbf16>, vector<32x64xbf16>, vector<8x64xf32> -> vector<8x64xf32>
    %6 = vector.extract_strided_slice %1 {offsets = [1, 0], sizes = [8, 32], strides = [1, 1]} : vector<14x32xbf16> to vector<8x32xbf16>
    %c1 = arith.constant 1 : index
    %c0_5 = arith.constant 0 : index
    %c0_6 = arith.constant 0 : index
    %7 = vector.load %arg2[%c1, %c0_5, %c0_6] : memref<7x32x64xbf16, #tpu.memory_space<vmem>>, vector<1x32x64xbf16>
    %8 = vector.shape_cast %7 : vector<1x32x64xbf16> to vector<32x64xbf16>
    %cst_7 = arith.constant dense<0.000000e+00> : vector<8x64xf32>
    %9 = tpu.matmul %6, %8, %cst_7 {dimension_numbers = #tpu.dot_dimension_numbers<[1], [0], [0], [1], [0, 0, 1, 1], [], []>} : vector<8x32xbf16>, vector<32x64xbf16>, vector<8x64xf32> -> vector<8x64xf32>
    %10 = arith.addf %5, %9 : vector<8x64xf32>
    %11 = vector.extract_strided_slice %1 {offsets = [2, 0], sizes = [8, 32], strides = [1, 1]} : vector<14x32xbf16> to vector<8x32xbf16>
    %c2 = arith.constant 2 : index
    %c0_8 = arith.constant 0 : index
    %c0_9 = arith.constant 0 : index
    %12 = vector.load %arg2[%c2, %c0_8, %c0_9] : memref<7x32x64xbf16, #tpu.memory_space<vmem>>, vector<1x32x64xbf16>
    %13 = vector.shape_cast %12 : vector<1x32x64xbf16> to vector<32x64xbf16>
    %cst_10 = arith.constant dense<0.000000e+00> : vector<8x64xf32>
    %14 = tpu.matmul %11, %13, %cst_10 {dimension_numbers = #tpu.dot_dimension_numbers<[1], [0], [0], [1], [0, 0, 1, 1], [], []>} : vector<8x32xbf16>, vector<32x64xbf16>, vector<8x64xf32> -> vector<8x64xf32>
    %15 = arith.addf %10, %14 : vector<8x64xf32>
    %16 = vector.extract_strided_slice %1 {offsets = [3, 0], sizes = [8, 32], strides = [1, 1]} : vector<14x32xbf16> to vector<8x32xbf16>
    %c3 = arith.constant 3 : index
    %c0_11 = arith.constant 0 : index
    %c0_12 = arith.constant 0 : index
    %17 = vector.load %arg2[%c3, %c0_11, %c0_12] : memref<7x32x64xbf16, #tpu.memory_space<vmem>>, vector<1x32x64xbf16>
    %18 = vector.shape_cast %17 : vector<1x32x64xbf16> to vector<32x64xbf16>
    %cst_13 = arith.constant dense<0.000000e+00> : vector<8x64xf32>
    %19 = tpu.matmul %16, %18, %cst_13 {dimension_numbers = #tpu.dot_dimension_numbers<[1], [0], [0], [1], [0, 0, 1, 1], [], []>} : vector<8x32xbf16>, vector<32x64xbf16>, vector<8x64xf32> -> vector<8x64xf32>
    %20 = arith.addf %15, %19 : vector<8x64xf32>
    %21 = vector.extract_strided_slice %1 {offsets = [4, 0], sizes = [8, 32], strides = [1, 1]} : vector<14x32xbf16> to vector<8x32xbf16>
    %c4 = arith.constant 4 : index
    %c0_14 = arith.constant 0 : index
    %c0_15 = arith.constant 0 : index
    %22 = vector.load %arg2[%c4, %c0_14, %c0_15] : memref<7x32x64xbf16, #tpu.memory_space<vmem>>, vector<1x32x64xbf16>
    %23 = vector.shape_cast %22 : vector<1x32x64xbf16> to vector<32x64xbf16>
    %cst_16 = arith.constant dense<0.000000e+00> : vector<8x64xf32>
    %24 = tpu.matmul %21, %23, %cst_16 {dimension_numbers = #tpu.dot_dimension_numbers<[1], [0], [0], [1], [0, 0, 1, 1], [], []>} : vector<8x32xbf16>, vector<32x64xbf16>, vector<8x64xf32> -> vector<8x64xf32>
    %25 = arith.addf %20, %24 : vector<8x64xf32>
    %26 = vector.extract_strided_slice %1 {offsets = [5, 0], sizes = [8, 32], strides = [1, 1]} : vector<14x32xbf16> to vector<8x32xbf16>
    %c5 = arith.constant 5 : index
    %c0_17 = arith.constant 0 : index
    %c0_18 = arith.constant 0 : index
    %27 = vector.load %arg2[%c5, %c0_17, %c0_18] : memref<7x32x64xbf16, #tpu.memory_space<vmem>>, vector<1x32x64xbf16>
    %28 = vector.shape_cast %27 : vector<1x32x64xbf16> to vector<32x64xbf16>
    %cst_19 = arith.constant dense<0.000000e+00> : vector<8x64xf32>
    %29 = tpu.matmul %26, %28, %cst_19 {dimension_numbers = #tpu.dot_dimension_numbers<[1], [0], [0], [1], [0, 0, 1, 1], [], []>} : vector<8x32xbf16>, vector<32x64xbf16>, vector<8x64xf32> -> vector<8x64xf32>
    %30 = arith.addf %25, %29 : vector<8x64xf32>
    %31 = vector.extract_strided_slice %1 {offsets = [6, 0], sizes = [8, 32], strides = [1, 1]} : vector<14x32xbf16> to vector<8x32xbf16>
    %c6 = arith.constant 6 : index
    %c0_20 = arith.constant 0 : index
    %c0_21 = arith.constant 0 : index
    %32 = vector.load %arg2[%c6, %c0_20, %c0_21] : memref<7x32x64xbf16, #tpu.memory_space<vmem>>, vector<1x32x64xbf16>
    %33 = vector.shape_cast %32 : vector<1x32x64xbf16> to vector<32x64xbf16>
    %cst_22 = arith.constant dense<0.000000e+00> : vector<8x64xf32>
    %34 = tpu.matmul %31, %33, %cst_22 {dimension_numbers = #tpu.dot_dimension_numbers<[1], [0], [0], [1], [0, 0, 1, 1], [], []>} : vector<8x32xbf16>, vector<32x64xbf16>, vector<8x64xf32> -> vector<8x64xf32>
    %35 = arith.addf %30, %34 : vector<8x64xf32>
    %c0_23 = arith.constant 0 : index
    %c0_24 = arith.constant 0 : index
    %36 = vector.load %arg3[%c0_23, %c0_24] : memref<1x64xf32, #tpu.memory_space<vmem>>, vector<1x64xf32>
    %37 = vector.broadcast %36 : vector<1x64xf32> to vector<8x64xf32>
    %38 = arith.addf %35, %37 : vector<8x64xf32>
    %cst_25 = arith.constant 0.000000e+00 : f32
    %39 = vector.broadcast %cst_25 : f32 to vector<8x64xf32>
    %40 = arith.maximumf %38, %39 : vector<8x64xf32>
    %c0_26 = arith.constant 0 : index
    %c0_27 = arith.constant 0 : index
    %41 = vector.load %arg4[%c0_26, %c0_27] : memref<8x64xf32, #tpu.memory_space<vmem>>, vector<8x64xf32>
    %42 = arith.addf %40, %41 : vector<8x64xf32>
    %c0_28 = arith.constant 0 : index
    %c0_29 = arith.constant 0 : index
    %c0_30 = arith.constant 0 : index
    %43 = vector.load %arg5[%c0_28, %c0_29, %c0_30] : memref<1x8x64xf32, #tpu.memory_space<vmem>>, vector<1x8x64xf32>
    %44 = vector.shape_cast %43 : vector<1x8x64xf32> to vector<8x64xf32>
    %45 = vector.shape_cast %42 : vector<8x64xf32> to vector<1x8x64xf32>
    tpu.vector_store %arg5[%c0_28, %c0_29, %c0_30], %45 {strides = array<i32>} : memref<1x8x64xf32, #tpu.memory_space<vmem>>, vector<1x8x64xf32>,
    return
  }
  func.func @transform_0(%arg0: i32) -> (i32, i32, i32) {
    %c0_i32 = arith.constant 0 : i32
    %c0_i32_0 = arith.constant 0 : i32
    %c0_i32_1 = arith.constant 0 : i32
    return %arg0, %c0_i32, %c0_i32_0 : i32, i32, i32
  }
  func.func @transform_1(%arg0: i32) -> (i32, i32, i32) {
    %c0_i32 = arith.constant 0 : i32
    %c0_i32_0 = arith.constant 0 : i32
    %c0_i32_1 = arith.constant 0 : i32
    %c0_i32_2 = arith.constant 0 : i32
    return %c0_i32, %c0_i32_0, %c0_i32_1 : i32, i32, i32
  }
  func.func @transform_2(%arg0: i32) -> (i32, i32) {
    %c0_i32 = arith.constant 0 : i32
    %c0_i32_0 = arith.constant 0 : i32
    %c0_i32_1 = arith.constant 0 : i32
    return %c0_i32, %c0_i32_0 : i32, i32
  }
  func.func @transform_3(%arg0: i32) -> (i32, i32) {
    %c0_i32 = arith.constant 0 : i32
    %c0_i32_0 = arith.constant 0 : i32
    %c0_i32_1 = arith.constant 0 : i32
    return %c0_i32, %c0_i32_0 : i32, i32
  }
  func.func @transform_4(%arg0: i32) -> (i32, i32, i32) {
    %c0_i32 = arith.constant 0 : i32
    %c0_i32_0 = arith.constant 0 : i32
    %c0_i32_1 = arith.constant 0 : i32
    return %arg0, %c0_i32, %c0_i32_0 : i32, i32, i32
  }
}

module attributes {stable_mosaic.version = 11 : i64} {
  func.func @_matmul_bias_kernel(%arg0: i32, %arg1: i32, %arg2: i32, %arg3: memref<16x64xbf16, #tpu.memory_space<vmem>>, %arg4: memref<64x192xbf16, #tpu.memory_space<vmem>>, %arg5: memref<1x192xf32, #tpu.memory_space<vmem>>, %arg6: memref<16x192xbf16, #tpu.memory_space<vmem>>) attributes {dimension_semantics = [#tpu.dimension_semantics<parallel>, #tpu.dimension_semantics<parallel>, #tpu.dimension_semantics<arbitrary>], iteration_bounds = array<i64: 1, 1, 1>, scalar_prefetch = 0 : i64, scratch_operands = 0 : i64, tpu.core_type = #tpu.core_type<tc>, window_params = [{transform_indices = @transform_0, window_bounds = array<i64: 16, 64>}, {transform_indices = @transform_1, window_bounds = array<i64: 64, 192>}, {transform_indices = @transform_2, window_bounds = array<i64: 1, 192>}, {transform_indices = @transform_3, window_bounds = array<i64: 16, 192>}]} {
    %c0 = arith.constant 0 : index
    %c0_0 = arith.constant 0 : index
    %0 = vector.load %arg3[%c0, %c0_0] : memref<16x64xbf16, #tpu.memory_space<vmem>>, vector<16x64xbf16>
    %c0_1 = arith.constant 0 : index
    %c0_2 = arith.constant 0 : index
    %1 = vector.load %arg4[%c0_1, %c0_2] : memref<64x192xbf16, #tpu.memory_space<vmem>>, vector<64x192xbf16>
    %cst = arith.constant dense<0.000000e+00> : vector<16x192xf32>
    %2 = tpu.matmul %0, %1, %cst {dimension_numbers = #tpu.dot_dimension_numbers<[1], [0], [0], [1], [0, 0, 1, 1], [], []>} : vector<16x64xbf16>, vector<64x192xbf16>, vector<16x192xf32> -> vector<16x192xf32>
    %c0_3 = arith.constant 0 : index
    %c0_4 = arith.constant 0 : index
    %3 = vector.load %arg5[%c0_3, %c0_4] : memref<1x192xf32, #tpu.memory_space<vmem>>, vector<1x192xf32>
    %4 = vector.broadcast %3 : vector<1x192xf32> to vector<16x192xf32>
    %5 = arith.addf %2, %4 : vector<16x192xf32>
    %6 = arith.truncf %5 : vector<16x192xf32> to vector<16x192xbf16>
    %c0_5 = arith.constant 0 : index
    %c0_6 = arith.constant 0 : index
    %7 = vector.load %arg6[%c0_5, %c0_6] : memref<16x192xbf16, #tpu.memory_space<vmem>>, vector<16x192xbf16>
    tpu.vector_store %arg6[%c0_5, %c0_6], %6 {strides = array<i32>} : memref<16x192xbf16, #tpu.memory_space<vmem>>, vector<16x192xbf16>,
    return
  }
  func.func @transform_0(%arg0: i32, %arg1: i32, %arg2: i32) -> (i32, i32) {
    %c0_i32 = arith.constant 0 : i32
    return %arg0, %arg2 : i32, i32
  }
  func.func @transform_1(%arg0: i32, %arg1: i32, %arg2: i32) -> (i32, i32) {
    %c0_i32 = arith.constant 0 : i32
    return %arg2, %arg1 : i32, i32
  }
  func.func @transform_2(%arg0: i32, %arg1: i32, %arg2: i32) -> (i32, i32) {
    %c0_i32 = arith.constant 0 : i32
    %c0_i32_0 = arith.constant 0 : i32
    return %c0_i32, %arg1 : i32, i32
  }
  func.func @transform_3(%arg0: i32, %arg1: i32, %arg2: i32) -> (i32, i32) {
    %c0_i32 = arith.constant 0 : i32
    return %arg0, %arg1 : i32, i32
  }
}

module attributes {stable_mosaic.version = 11 : i64} {
  func.func @_self_attn_kernel(%arg0: i32, %arg1: memref<1x8x192xbf16, #tpu.memory_space<vmem>>, %arg2: memref<1x8x64xf32, #tpu.memory_space<vmem>>) attributes {dimension_semantics = [#tpu.dimension_semantics<parallel>], iteration_bounds = array<i64: 2>, scalar_prefetch = 0 : i64, scratch_operands = 0 : i64, tpu.core_type = #tpu.core_type<tc>, window_params = [{transform_indices = @transform_0, window_bounds = array<i64: 1, 8, 192>}, {transform_indices = @transform_1, window_bounds = array<i64: 1, 8, 64>}]} {
    %c0 = arith.constant 0 : index
    %c0_0 = arith.constant 0 : index
    %c0_1 = arith.constant 0 : index
    %0 = vector.load %arg1[%c0, %c0_0, %c0_1] : memref<1x8x192xbf16, #tpu.memory_space<vmem>>, vector<1x8x192xbf16>
    %1 = vector.shape_cast %0 : vector<1x8x192xbf16> to vector<8x192xbf16>
    %2 = vector.extract_strided_slice %1 {offsets = [0, 0], sizes = [8, 64], strides = [1, 1]} : vector<8x192xbf16> to vector<8x64xbf16>
    %3 = vector.extract_strided_slice %1 {offsets = [0, 64], sizes = [8, 64], strides = [1, 1]} : vector<8x192xbf16> to vector<8x64xbf16>
    %4 = vector.extract_strided_slice %1 {offsets = [0, 128], sizes = [8, 64], strides = [1, 1]} : vector<8x192xbf16> to vector<8x64xbf16>
    %5 = vector.extract_strided_slice %2 {offsets = [0, 0], sizes = [8, 16], strides = [1, 1]} : vector<8x64xbf16> to vector<8x16xbf16>
    %6 = vector.extract_strided_slice %3 {offsets = [0, 0], sizes = [8, 16], strides = [1, 1]} : vector<8x64xbf16> to vector<8x16xbf16>
    %cst = arith.constant dense<0.000000e+00> : vector<8x8xf32>
    %7 = tpu.matmul %5, %6, %cst {dimension_numbers = #tpu.dot_dimension_numbers<[1], [1], [0], [0], [0, 0, 1, 0], [], []>} : vector<8x16xbf16>, vector<8x16xbf16>, vector<8x8xf32> -> vector<8x8xf32>
    %cst_2 = arith.constant 2.500000e-01 : f32
    %8 = vector.broadcast %cst_2 : f32 to vector<8x8xf32>
    %9 = arith.mulf %7, %8 : vector<8x8xf32>
    %cst_3 = arith.constant dense<0xFF800000> : vector<8xf32>
    %10 = vector.multi_reduction <maximumf>, %9, %cst_3 [1] : vector<8x8xf32> to vector<8xf32>
    %11 = vector.shape_cast %10 : vector<8xf32> to vector<8x1xf32>
    %12 = vector.broadcast %11 : vector<8x1xf32> to vector<8x8xf32>
    %13 = arith.subf %9, %12 : vector<8x8xf32>
    %14 = math.exp %13 : vector<8x8xf32>
    %cst_4 = arith.constant dense<0.000000e+00> : vector<8xf32>
    %15 = vector.multi_reduction <add>, %14, %cst_4 [1] : vector<8x8xf32> to vector<8xf32>
    %16 = vector.shape_cast %15 : vector<8xf32> to vector<8x1xf32>
    %17 = tpu.reciprocal %16 {approx = true} : vector<8x1xf32> -> vector<8x1xf32>
    %18 = vector.broadcast %17 : vector<8x1xf32> to vector<8x8xf32>
    %19 = arith.mulf %14, %18 : vector<8x8xf32>
    %20 = arith.truncf %19 : vector<8x8xf32> to vector<8x8xbf16>
    %21 = vector.extract_strided_slice %4 {offsets = [0, 0], sizes = [8, 16], strides = [1, 1]} : vector<8x64xbf16> to vector<8x16xbf16>
    %cst_5 = arith.constant dense<0.000000e+00> : vector<8x16xf32>
    %22 = tpu.matmul %20, %21, %cst_5 {dimension_numbers = #tpu.dot_dimension_numbers<[1], [0], [0], [1], [0, 0, 1, 1], [], []>} : vector<8x8xbf16>, vector<8x16xbf16>, vector<8x16xf32> -> vector<8x16xf32>
    %23 = vector.extract_strided_slice %2 {offsets = [0, 16], sizes = [8, 16], strides = [1, 1]} : vector<8x64xbf16> to vector<8x16xbf16>
    %24 = vector.extract_strided_slice %3 {offsets = [0, 16], sizes = [8, 16], strides = [1, 1]} : vector<8x64xbf16> to vector<8x16xbf16>
    %cst_6 = arith.constant dense<0.000000e+00> : vector<8x8xf32>
    %25 = tpu.matmul %23, %24, %cst_6 {dimension_numbers = #tpu.dot_dimension_numbers<[1], [1], [0], [0], [0, 0, 1, 0], [], []>} : vector<8x16xbf16>, vector<8x16xbf16>, vector<8x8xf32> -> vector<8x8xf32>
    %cst_7 = arith.constant 2.500000e-01 : f32
    %26 = vector.broadcast %cst_7 : f32 to vector<8x8xf32>
    %27 = arith.mulf %25, %26 : vector<8x8xf32>
    %cst_8 = arith.constant dense<0xFF800000> : vector<8xf32>
    %28 = vector.multi_reduction <maximumf>, %27, %cst_8 [1] : vector<8x8xf32> to vector<8xf32>
    %29 = vector.shape_cast %28 : vector<8xf32> to vector<8x1xf32>
    %30 = vector.broadcast %29 : vector<8x1xf32> to vector<8x8xf32>
    %31 = arith.subf %27, %30 : vector<8x8xf32>
    %32 = math.exp %31 : vector<8x8xf32>
    %cst_9 = arith.constant dense<0.000000e+00> : vector<8xf32>
    %33 = vector.multi_reduction <add>, %32, %cst_9 [1] : vector<8x8xf32> to vector<8xf32>
    %34 = vector.shape_cast %33 : vector<8xf32> to vector<8x1xf32>
    %35 = tpu.reciprocal %34 {approx = true} : vector<8x1xf32> -> vector<8x1xf32>
    %36 = vector.broadcast %35 : vector<8x1xf32> to vector<8x8xf32>
    %37 = arith.mulf %32, %36 : vector<8x8xf32>
    %38 = arith.truncf %37 : vector<8x8xf32> to vector<8x8xbf16>
    %39 = vector.extract_strided_slice %4 {offsets = [0, 16], sizes = [8, 16], strides = [1, 1]} : vector<8x64xbf16> to vector<8x16xbf16>
    %cst_10 = arith.constant dense<0.000000e+00> : vector<8x16xf32>
    %40 = tpu.matmul %38, %39, %cst_10 {dimension_numbers = #tpu.dot_dimension_numbers<[1], [0], [0], [1], [0, 0, 1, 1], [], []>} : vector<8x8xbf16>, vector<8x16xbf16>, vector<8x16xf32> -> vector<8x16xf32>
    %41 = vector.extract_strided_slice %2 {offsets = [0, 32], sizes = [8, 16], strides = [1, 1]} : vector<8x64xbf16> to vector<8x16xbf16>
    %42 = vector.extract_strided_slice %3 {offsets = [0, 32], sizes = [8, 16], strides = [1, 1]} : vector<8x64xbf16> to vector<8x16xbf16>
    %cst_11 = arith.constant dense<0.000000e+00> : vector<8x8xf32>
    %43 = tpu.matmul %41, %42, %cst_11 {dimension_numbers = #tpu.dot_dimension_numbers<[1], [1], [0], [0], [0, 0, 1, 0], [], []>} : vector<8x16xbf16>, vector<8x16xbf16>, vector<8x8xf32> -> vector<8x8xf32>
    %cst_12 = arith.constant 2.500000e-01 : f32
    %44 = vector.broadcast %cst_12 : f32 to vector<8x8xf32>
    %45 = arith.mulf %43, %44 : vector<8x8xf32>
    %cst_13 = arith.constant dense<0xFF800000> : vector<8xf32>
    %46 = vector.multi_reduction <maximumf>, %45, %cst_13 [1] : vector<8x8xf32> to vector<8xf32>
    %47 = vector.shape_cast %46 : vector<8xf32> to vector<8x1xf32>
    %48 = vector.broadcast %47 : vector<8x1xf32> to vector<8x8xf32>
    %49 = arith.subf %45, %48 : vector<8x8xf32>
    %50 = math.exp %49 : vector<8x8xf32>
    %cst_14 = arith.constant dense<0.000000e+00> : vector<8xf32>
    %51 = vector.multi_reduction <add>, %50, %cst_14 [1] : vector<8x8xf32> to vector<8xf32>
    %52 = vector.shape_cast %51 : vector<8xf32> to vector<8x1xf32>
    %53 = tpu.reciprocal %52 {approx = true} : vector<8x1xf32> -> vector<8x1xf32>
    %54 = vector.broadcast %53 : vector<8x1xf32> to vector<8x8xf32>
    %55 = arith.mulf %50, %54 : vector<8x8xf32>
    %56 = arith.truncf %55 : vector<8x8xf32> to vector<8x8xbf16>
    %57 = vector.extract_strided_slice %4 {offsets = [0, 32], sizes = [8, 16], strides = [1, 1]} : vector<8x64xbf16> to vector<8x16xbf16>
    %cst_15 = arith.constant dense<0.000000e+00> : vector<8x16xf32>
    %58 = tpu.matmul %56, %57, %cst_15 {dimension_numbers = #tpu.dot_dimension_numbers<[1], [0], [0], [1], [0, 0, 1, 1], [], []>} : vector<8x8xbf16>, vector<8x16xbf16>, vector<8x16xf32> -> vector<8x16xf32>
    %59 = vector.extract_strided_slice %2 {offsets = [0, 48], sizes = [8, 16], strides = [1, 1]} : vector<8x64xbf16> to vector<8x16xbf16>
    %60 = vector.extract_strided_slice %3 {offsets = [0, 48], sizes = [8, 16], strides = [1, 1]} : vector<8x64xbf16> to vector<8x16xbf16>
    %cst_16 = arith.constant dense<0.000000e+00> : vector<8x8xf32>
    %61 = tpu.matmul %59, %60, %cst_16 {dimension_numbers = #tpu.dot_dimension_numbers<[1], [1], [0], [0], [0, 0, 1, 0], [], []>} : vector<8x16xbf16>, vector<8x16xbf16>, vector<8x8xf32> -> vector<8x8xf32>
    %cst_17 = arith.constant 2.500000e-01 : f32
    %62 = vector.broadcast %cst_17 : f32 to vector<8x8xf32>
    %63 = arith.mulf %61, %62 : vector<8x8xf32>
    %cst_18 = arith.constant dense<0xFF800000> : vector<8xf32>
    %64 = vector.multi_reduction <maximumf>, %63, %cst_18 [1] : vector<8x8xf32> to vector<8xf32>
    %65 = vector.shape_cast %64 : vector<8xf32> to vector<8x1xf32>
    %66 = vector.broadcast %65 : vector<8x1xf32> to vector<8x8xf32>
    %67 = arith.subf %63, %66 : vector<8x8xf32>
    %68 = math.exp %67 : vector<8x8xf32>
    %cst_19 = arith.constant dense<0.000000e+00> : vector<8xf32>
    %69 = vector.multi_reduction <add>, %68, %cst_19 [1] : vector<8x8xf32> to vector<8xf32>
    %70 = vector.shape_cast %69 : vector<8xf32> to vector<8x1xf32>
    %71 = tpu.reciprocal %70 {approx = true} : vector<8x1xf32> -> vector<8x1xf32>
    %72 = vector.broadcast %71 : vector<8x1xf32> to vector<8x8xf32>
    %73 = arith.mulf %68, %72 : vector<8x8xf32>
    %74 = arith.truncf %73 : vector<8x8xf32> to vector<8x8xbf16>
    %75 = vector.extract_strided_slice %4 {offsets = [0, 48], sizes = [8, 16], strides = [1, 1]} : vector<8x64xbf16> to vector<8x16xbf16>
    %cst_20 = arith.constant dense<0.000000e+00> : vector<8x16xf32>
    %76 = tpu.matmul %74, %75, %cst_20 {dimension_numbers = #tpu.dot_dimension_numbers<[1], [0], [0], [1], [0, 0, 1, 1], [], []>} : vector<8x8xbf16>, vector<8x16xbf16>, vector<8x16xf32> -> vector<8x16xf32>
    %77 = tpu.concatenate %22, %40, %58, %76 in 1 : vector<8x16xf32>, vector<8x16xf32>, vector<8x16xf32>, vector<8x16xf32> -> vector<8x64xf32>
    %c0_21 = arith.constant 0 : index
    %c0_22 = arith.constant 0 : index
    %c0_23 = arith.constant 0 : index
    %78 = vector.load %arg2[%c0_21, %c0_22, %c0_23] : memref<1x8x64xf32, #tpu.memory_space<vmem>>, vector<1x8x64xf32>
    %79 = vector.shape_cast %78 : vector<1x8x64xf32> to vector<8x64xf32>
    %80 = vector.shape_cast %77 : vector<8x64xf32> to vector<1x8x64xf32>
    tpu.vector_store %arg2[%c0_21, %c0_22, %c0_23], %80 {strides = array<i32>} : memref<1x8x64xf32, #tpu.memory_space<vmem>>, vector<1x8x64xf32>,
    return
  }
  func.func @transform_0(%arg0: i32) -> (i32, i32, i32) {
    %c0_i32 = arith.constant 0 : i32
    %c0_i32_0 = arith.constant 0 : i32
    %c0_i32_1 = arith.constant 0 : i32
    return %arg0, %c0_i32, %c0_i32_0 : i32, i32, i32
  }
  func.func @transform_1(%arg0: i32) -> (i32, i32, i32) {
    %c0_i32 = arith.constant 0 : i32
    %c0_i32_0 = arith.constant 0 : i32
    %c0_i32_1 = arith.constant 0 : i32
    return %arg0, %c0_i32, %c0_i32_0 : i32, i32, i32
  }
}

module attributes {stable_mosaic.version = 11 : i64} {
  func.func @_ffn_res_ln_kernel(%arg0: i32, %arg1: memref<16x64xf32, #tpu.memory_space<vmem>>, %arg2: memref<64x256xbf16, #tpu.memory_space<vmem>>, %arg3: memref<1x256xf32, #tpu.memory_space<vmem>>, %arg4: memref<256x64xbf16, #tpu.memory_space<vmem>>, %arg5: memref<1x64xf32, #tpu.memory_space<vmem>>, %arg6: memref<1x64xf32, #tpu.memory_space<vmem>>, %arg7: memref<1x64xf32, #tpu.memory_space<vmem>>, %arg8: memref<16x64xf32, #tpu.memory_space<vmem>>) attributes {dimension_semantics = [#tpu.dimension_semantics<parallel>], iteration_bounds = array<i64: 1>, scalar_prefetch = 0 : i64, scratch_operands = 0 : i64, tpu.core_type = #tpu.core_type<tc>, window_params = [{transform_indices = @transform_0, window_bounds = array<i64: 16, 64>}, {pipeline_mode = #tpu.pipeline_mode<synchronous>, transform_indices = @transform_1, window_bounds = array<i64: 64, 256>}, {pipeline_mode = #tpu.pipeline_mode<synchronous>, transform_indices = @transform_2, window_bounds = array<i64: 1, 256>}, {pipeline_mode = #tpu.pipeline_mode<synchronous>, transform_indices = @transform_3, window_bounds = array<i64: 256, 64>}, {pipeline_mode = #tpu.pipeline_mode<synchronous>, transform_indices = @transform_4, window_bounds = array<i64: 1, 64>}, {pipeline_mode = #tpu.pipeline_mode<synchronous>, transform_indices = @transform_5, window_bounds = array<i64: 1, 64>}, {pipeline_mode = #tpu.pipeline_mode<synchronous>, transform_indices = @transform_6, window_bounds = array<i64: 1, 64>}, {transform_indices = @transform_7, window_bounds = array<i64: 16, 64>}]} {
    %c0 = arith.constant 0 : index
    %c0_0 = arith.constant 0 : index
    %0 = vector.load %arg1[%c0, %c0_0] : memref<16x64xf32, #tpu.memory_space<vmem>>, vector<16x64xf32>
    %1 = arith.truncf %0 : vector<16x64xf32> to vector<16x64xbf16>
    %c0_1 = arith.constant 0 : index
    %c0_2 = arith.constant 0 : index
    %2 = vector.load %arg2[%c0_1, %c0_2] : memref<64x256xbf16, #tpu.memory_space<vmem>>, vector<64x256xbf16>
    %cst = arith.constant dense<0.000000e+00> : vector<16x256xf32>
    %3 = tpu.matmul %1, %2, %cst {dimension_numbers = #tpu.dot_dimension_numbers<[1], [0], [0], [1], [0, 0, 1, 1], [], []>} : vector<16x64xbf16>, vector<64x256xbf16>, vector<16x256xf32> -> vector<16x256xf32>
    %c0_3 = arith.constant 0 : index
    %c0_4 = arith.constant 0 : index
    %4 = vector.load %arg3[%c0_3, %c0_4] : memref<1x256xf32, #tpu.memory_space<vmem>>, vector<1x256xf32>
    %5 = vector.broadcast %4 : vector<1x256xf32> to vector<16x256xf32>
    %6 = arith.addf %3, %5 : vector<16x256xf32>
    %cst_5 = arith.constant 0.000000e+00 : f32
    %7 = vector.broadcast %cst_5 : f32 to vector<16x256xf32>
    %8 = arith.maximumf %6, %7 : vector<16x256xf32>
    %9 = arith.truncf %8 : vector<16x256xf32> to vector<16x256xbf16>
    %c0_6 = arith.constant 0 : index
    %c0_7 = arith.constant 0 : index
    %10 = vector.load %arg4[%c0_6, %c0_7] : memref<256x64xbf16, #tpu.memory_space<vmem>>, vector<256x64xbf16>
    %cst_8 = arith.constant dense<0.000000e+00> : vector<16x64xf32>
    %11 = tpu.matmul %9, %10, %cst_8 {dimension_numbers = #tpu.dot_dimension_numbers<[1], [0], [0], [1], [0, 0, 1, 1], [], []>} : vector<16x256xbf16>, vector<256x64xbf16>, vector<16x64xf32> -> vector<16x64xf32>
    %c0_9 = arith.constant 0 : index
    %c0_10 = arith.constant 0 : index
    %12 = vector.load %arg5[%c0_9, %c0_10] : memref<1x64xf32, #tpu.memory_space<vmem>>, vector<1x64xf32>
    %13 = vector.broadcast %12 : vector<1x64xf32> to vector<16x64xf32>
    %14 = arith.addf %11, %13 : vector<16x64xf32>
    %15 = arith.addf %14, %0 : vector<16x64xf32>
    %cst_11 = arith.constant dense<0.000000e+00> : vector<16xf32>
    %16 = vector.multi_reduction <add>, %15, %cst_11 [1] : vector<16x64xf32> to vector<16xf32>
    %17 = vector.shape_cast %16 : vector<16xf32> to vector<16x1xf32>
    %cst_12 = arith.constant 6.400000e+01 : f32
    %18 = vector.broadcast %cst_12 : f32 to vector<16x1xf32>
    %19 = arith.divf %17, %18 : vector<16x1xf32>
    %20 = vector.broadcast %19 : vector<16x1xf32> to vector<16x64xf32>
    %21 = arith.subf %15, %20 : vector<16x64xf32>
    %22 = arith.mulf %21, %21 : vector<16x64xf32>
    %cst_13 = arith.constant dense<0.000000e+00> : vector<16xf32>
    %23 = vector.multi_reduction <add>, %22, %cst_13 [1] : vector<16x64xf32> to vector<16xf32>
    %24 = vector.shape_cast %23 : vector<16xf32> to vector<16x1xf32>
    %cst_14 = arith.constant 6.400000e+01 : f32
    %25 = vector.broadcast %cst_14 : f32 to vector<16x1xf32>
    %26 = arith.divf %24, %25 : vector<16x1xf32>
    %cst_15 = arith.constant 9.99999974E-6 : f32
    %27 = vector.broadcast %cst_15 : f32 to vector<16x1xf32>
    %28 = arith.addf %26, %27 : vector<16x1xf32>
    %29 = math.rsqrt %28 : vector<16x1xf32>
    %30 = vector.broadcast %29 : vector<16x1xf32> to vector<16x64xf32>
    %31 = arith.mulf %21, %30 : vector<16x64xf32>
    %c0_16 = arith.constant 0 : index
    %c0_17 = arith.constant 0 : index
    %32 = vector.load %arg6[%c0_16, %c0_17] : memref<1x64xf32, #tpu.memory_space<vmem>>, vector<1x64xf32>
    %33 = vector.broadcast %32 : vector<1x64xf32> to vector<16x64xf32>
    %34 = arith.mulf %31, %33 : vector<16x64xf32>
    %c0_18 = arith.constant 0 : index
    %c0_19 = arith.constant 0 : index
    %35 = vector.load %arg7[%c0_18, %c0_19] : memref<1x64xf32, #tpu.memory_space<vmem>>, vector<1x64xf32>
    %36 = vector.broadcast %35 : vector<1x64xf32> to vector<16x64xf32>
    %37 = arith.addf %34, %36 : vector<16x64xf32>
    %c0_20 = arith.constant 0 : index
    %c0_21 = arith.constant 0 : index
    %38 = vector.load %arg8[%c0_20, %c0_21] : memref<16x64xf32, #tpu.memory_space<vmem>>, vector<16x64xf32>
    tpu.vector_store %arg8[%c0_20, %c0_21], %37 {strides = array<i32>} : memref<16x64xf32, #tpu.memory_space<vmem>>, vector<16x64xf32>,
    return
  }
  func.func @transform_0(%arg0: i32) -> (i32, i32) {
    %c0_i32 = arith.constant 0 : i32
    %c0_i32_0 = arith.constant 0 : i32
    return %arg0, %c0_i32 : i32, i32
  }
  func.func @transform_1(%arg0: i32) -> (i32, i32) {
    %c0_i32 = arith.constant 0 : i32
    %c0_i32_0 = arith.constant 0 : i32
    %c0_i32_1 = arith.constant 0 : i32
    return %c0_i32, %c0_i32_0 : i32, i32
  }
  func.func @transform_2(%arg0: i32) -> (i32, i32) {
    %c0_i32 = arith.constant 0 : i32
    %c0_i32_0 = arith.constant 0 : i32
    %c0_i32_1 = arith.constant 0 : i32
    return %c0_i32, %c0_i32_0 : i32, i32
  }
  func.func @transform_3(%arg0: i32) -> (i32, i32) {
    %c0_i32 = arith.constant 0 : i32
    %c0_i32_0 = arith.constant 0 : i32
    %c0_i32_1 = arith.constant 0 : i32
    return %c0_i32, %c0_i32_0 : i32, i32
  }
  func.func @transform_4(%arg0: i32) -> (i32, i32) {
    %c0_i32 = arith.constant 0 : i32
    %c0_i32_0 = arith.constant 0 : i32
    %c0_i32_1 = arith.constant 0 : i32
    return %c0_i32, %c0_i32_0 : i32, i32
  }
  func.func @transform_5(%arg0: i32) -> (i32, i32) {
    %c0_i32 = arith.constant 0 : i32
    %c0_i32_0 = arith.constant 0 : i32
    %c0_i32_1 = arith.constant 0 : i32
    return %c0_i32, %c0_i32_0 : i32, i32
  }
  func.func @transform_6(%arg0: i32) -> (i32, i32) {
    %c0_i32 = arith.constant 0 : i32
    %c0_i32_0 = arith.constant 0 : i32
    %c0_i32_1 = arith.constant 0 : i32
    return %c0_i32, %c0_i32_0 : i32, i32
  }
  func.func @transform_7(%arg0: i32) -> (i32, i32) {
    %c0_i32 = arith.constant 0 : i32
    %c0_i32_0 = arith.constant 0 : i32
    return %arg0, %c0_i32 : i32, i32
  }
}

module attributes {stable_mosaic.version = 11 : i64} {
  func.func @_matmul_bias_kernel(%arg0: i32, %arg1: i32, %arg2: i32, %arg3: memref<16x64xbf16, #tpu.memory_space<vmem>>, %arg4: memref<64x128xbf16, #tpu.memory_space<vmem>>, %arg5: memref<1x128xf32, #tpu.memory_space<vmem>>, %arg6: memref<16x128xbf16, #tpu.memory_space<vmem>>) attributes {dimension_semantics = [#tpu.dimension_semantics<parallel>, #tpu.dimension_semantics<parallel>, #tpu.dimension_semantics<arbitrary>], iteration_bounds = array<i64: 1, 1, 1>, scalar_prefetch = 0 : i64, scratch_operands = 0 : i64, tpu.core_type = #tpu.core_type<tc>, window_params = [{transform_indices = @transform_0, window_bounds = array<i64: 16, 64>}, {transform_indices = @transform_1, window_bounds = array<i64: 64, 128>}, {transform_indices = @transform_2, window_bounds = array<i64: 1, 128>}, {transform_indices = @transform_3, window_bounds = array<i64: 16, 128>}]} {
    %c0 = arith.constant 0 : index
    %c0_0 = arith.constant 0 : index
    %0 = vector.load %arg3[%c0, %c0_0] : memref<16x64xbf16, #tpu.memory_space<vmem>>, vector<16x64xbf16>
    %c0_1 = arith.constant 0 : index
    %c0_2 = arith.constant 0 : index
    %1 = vector.load %arg4[%c0_1, %c0_2] : memref<64x128xbf16, #tpu.memory_space<vmem>>, vector<64x128xbf16>
    %cst = arith.constant dense<0.000000e+00> : vector<16x128xf32>
    %2 = tpu.matmul %0, %1, %cst {dimension_numbers = #tpu.dot_dimension_numbers<[1], [0], [0], [1], [0, 0, 1, 1], [], []>} : vector<16x64xbf16>, vector<64x128xbf16>, vector<16x128xf32> -> vector<16x128xf32>
    %c0_3 = arith.constant 0 : index
    %c0_4 = arith.constant 0 : index
    %3 = vector.load %arg5[%c0_3, %c0_4] : memref<1x128xf32, #tpu.memory_space<vmem>>, vector<1x128xf32>
    %4 = vector.broadcast %3 : vector<1x128xf32> to vector<16x128xf32>
    %5 = arith.addf %2, %4 : vector<16x128xf32>
    %6 = arith.truncf %5 : vector<16x128xf32> to vector<16x128xbf16>
    %c0_5 = arith.constant 0 : index
    %c0_6 = arith.constant 0 : index
    %7 = vector.load %arg6[%c0_5, %c0_6] : memref<16x128xbf16, #tpu.memory_space<vmem>>, vector<16x128xbf16>
    tpu.vector_store %arg6[%c0_5, %c0_6], %6 {strides = array<i32>} : memref<16x128xbf16, #tpu.memory_space<vmem>>, vector<16x128xbf16>,
    return
  }
  func.func @transform_0(%arg0: i32, %arg1: i32, %arg2: i32) -> (i32, i32) {
    %c0_i32 = arith.constant 0 : i32
    return %arg0, %arg2 : i32, i32
  }
  func.func @transform_1(%arg0: i32, %arg1: i32, %arg2: i32) -> (i32, i32) {
    %c0_i32 = arith.constant 0 : i32
    return %arg2, %arg1 : i32, i32
  }
  func.func @transform_2(%arg0: i32, %arg1: i32, %arg2: i32) -> (i32, i32) {
    %c0_i32 = arith.constant 0 : i32
    %c0_i32_0 = arith.constant 0 : i32
    return %c0_i32, %arg1 : i32, i32
  }
  func.func @transform_3(%arg0: i32, %arg1: i32, %arg2: i32) -> (i32, i32) {
    %c0_i32 = arith.constant 0 : i32
    return %arg0, %arg1 : i32, i32
  }
}

module attributes {stable_mosaic.version = 11 : i64} {
  func.func @_proj_res_ln_kernel(%arg0: i32, %arg1: memref<16x64xf32, #tpu.memory_space<vmem>>, %arg2: memref<64x64xbf16, #tpu.memory_space<vmem>>, %arg3: memref<1x64xf32, #tpu.memory_space<vmem>>, %arg4: memref<16x64xf32, #tpu.memory_space<vmem>>, %arg5: memref<1x64xf32, #tpu.memory_space<vmem>>, %arg6: memref<1x64xf32, #tpu.memory_space<vmem>>, %arg7: memref<16x64xf32, #tpu.memory_space<vmem>>) attributes {dimension_semantics = [#tpu.dimension_semantics<parallel>], iteration_bounds = array<i64: 1>, scalar_prefetch = 0 : i64, scratch_operands = 0 : i64, tpu.core_type = #tpu.core_type<tc>, window_params = [{transform_indices = @transform_0, window_bounds = array<i64: 16, 64>}, {pipeline_mode = #tpu.pipeline_mode<synchronous>, transform_indices = @transform_1, window_bounds = array<i64: 64, 64>}, {pipeline_mode = #tpu.pipeline_mode<synchronous>, transform_indices = @transform_2, window_bounds = array<i64: 1, 64>}, {transform_indices = @transform_3, window_bounds = array<i64: 16, 64>}, {pipeline_mode = #tpu.pipeline_mode<synchronous>, transform_indices = @transform_4, window_bounds = array<i64: 1, 64>}, {pipeline_mode = #tpu.pipeline_mode<synchronous>, transform_indices = @transform_5, window_bounds = array<i64: 1, 64>}, {transform_indices = @transform_6, window_bounds = array<i64: 16, 64>}]} {
    %c0 = arith.constant 0 : index
    %c0_0 = arith.constant 0 : index
    %0 = vector.load %arg1[%c0, %c0_0] : memref<16x64xf32, #tpu.memory_space<vmem>>, vector<16x64xf32>
    %1 = arith.truncf %0 : vector<16x64xf32> to vector<16x64xbf16>
    %c0_1 = arith.constant 0 : index
    %c0_2 = arith.constant 0 : index
    %2 = vector.load %arg2[%c0_1, %c0_2] : memref<64x64xbf16, #tpu.memory_space<vmem>>, vector<64x64xbf16>
    %cst = arith.constant dense<0.000000e+00> : vector<16x64xf32>
    %3 = tpu.matmul %1, %2, %cst {dimension_numbers = #tpu.dot_dimension_numbers<[1], [0], [0], [1], [0, 0, 1, 1], [], []>} : vector<16x64xbf16>, vector<64x64xbf16>, vector<16x64xf32> -> vector<16x64xf32>
    %c0_3 = arith.constant 0 : index
    %c0_4 = arith.constant 0 : index
    %4 = vector.load %arg3[%c0_3, %c0_4] : memref<1x64xf32, #tpu.memory_space<vmem>>, vector<1x64xf32>
    %5 = vector.broadcast %4 : vector<1x64xf32> to vector<16x64xf32>
    %6 = arith.addf %3, %5 : vector<16x64xf32>
    %c0_5 = arith.constant 0 : index
    %c0_6 = arith.constant 0 : index
    %7 = vector.load %arg4[%c0_5, %c0_6] : memref<16x64xf32, #tpu.memory_space<vmem>>, vector<16x64xf32>
    %8 = arith.addf %6, %7 : vector<16x64xf32>
    %cst_7 = arith.constant dense<0.000000e+00> : vector<16xf32>
    %9 = vector.multi_reduction <add>, %8, %cst_7 [1] : vector<16x64xf32> to vector<16xf32>
    %10 = vector.shape_cast %9 : vector<16xf32> to vector<16x1xf32>
    %cst_8 = arith.constant 6.400000e+01 : f32
    %11 = vector.broadcast %cst_8 : f32 to vector<16x1xf32>
    %12 = arith.divf %10, %11 : vector<16x1xf32>
    %13 = vector.broadcast %12 : vector<16x1xf32> to vector<16x64xf32>
    %14 = arith.subf %8, %13 : vector<16x64xf32>
    %15 = arith.mulf %14, %14 : vector<16x64xf32>
    %cst_9 = arith.constant dense<0.000000e+00> : vector<16xf32>
    %16 = vector.multi_reduction <add>, %15, %cst_9 [1] : vector<16x64xf32> to vector<16xf32>
    %17 = vector.shape_cast %16 : vector<16xf32> to vector<16x1xf32>
    %cst_10 = arith.constant 6.400000e+01 : f32
    %18 = vector.broadcast %cst_10 : f32 to vector<16x1xf32>
    %19 = arith.divf %17, %18 : vector<16x1xf32>
    %cst_11 = arith.constant 9.99999974E-6 : f32
    %20 = vector.broadcast %cst_11 : f32 to vector<16x1xf32>
    %21 = arith.addf %19, %20 : vector<16x1xf32>
    %22 = math.rsqrt %21 : vector<16x1xf32>
    %23 = vector.broadcast %22 : vector<16x1xf32> to vector<16x64xf32>
    %24 = arith.mulf %14, %23 : vector<16x64xf32>
    %c0_12 = arith.constant 0 : index
    %c0_13 = arith.constant 0 : index
    %25 = vector.load %arg5[%c0_12, %c0_13] : memref<1x64xf32, #tpu.memory_space<vmem>>, vector<1x64xf32>
    %26 = vector.broadcast %25 : vector<1x64xf32> to vector<16x64xf32>
    %27 = arith.mulf %24, %26 : vector<16x64xf32>
    %c0_14 = arith.constant 0 : index
    %c0_15 = arith.constant 0 : index
    %28 = vector.load %arg6[%c0_14, %c0_15] : memref<1x64xf32, #tpu.memory_space<vmem>>, vector<1x64xf32>
    %29 = vector.broadcast %28 : vector<1x64xf32> to vector<16x64xf32>
    %30 = arith.addf %27, %29 : vector<16x64xf32>
    %c0_16 = arith.constant 0 : index
    %c0_17 = arith.constant 0 : index
    %31 = vector.load %arg7[%c0_16, %c0_17] : memref<16x64xf32, #tpu.memory_space<vmem>>, vector<16x64xf32>
    tpu.vector_store %arg7[%c0_16, %c0_17], %30 {strides = array<i32>} : memref<16x64xf32, #tpu.memory_space<vmem>>, vector<16x64xf32>,
    return
  }
  func.func @transform_0(%arg0: i32) -> (i32, i32) {
    %c0_i32 = arith.constant 0 : i32
    %c0_i32_0 = arith.constant 0 : i32
    return %arg0, %c0_i32 : i32, i32
  }
  func.func @transform_1(%arg0: i32) -> (i32, i32) {
    %c0_i32 = arith.constant 0 : i32
    %c0_i32_0 = arith.constant 0 : i32
    %c0_i32_1 = arith.constant 0 : i32
    return %c0_i32, %c0_i32_0 : i32, i32
  }
  func.func @transform_2(%arg0: i32) -> (i32, i32) {
    %c0_i32 = arith.constant 0 : i32
    %c0_i32_0 = arith.constant 0 : i32
    %c0_i32_1 = arith.constant 0 : i32
    return %c0_i32, %c0_i32_0 : i32, i32
  }
  func.func @transform_3(%arg0: i32) -> (i32, i32) {
    %c0_i32 = arith.constant 0 : i32
    %c0_i32_0 = arith.constant 0 : i32
    return %arg0, %c0_i32 : i32, i32
  }
  func.func @transform_4(%arg0: i32) -> (i32, i32) {
    %c0_i32 = arith.constant 0 : i32
    %c0_i32_0 = arith.constant 0 : i32
    %c0_i32_1 = arith.constant 0 : i32
    return %c0_i32, %c0_i32_0 : i32, i32
  }
  func.func @transform_5(%arg0: i32) -> (i32, i32) {
    %c0_i32 = arith.constant 0 : i32
    %c0_i32_0 = arith.constant 0 : i32
    %c0_i32_1 = arith.constant 0 : i32
    return %c0_i32, %c0_i32_0 : i32, i32
  }
  func.func @transform_6(%arg0: i32) -> (i32, i32) {
    %c0_i32 = arith.constant 0 : i32
    %c0_i32_0 = arith.constant 0 : i32
    return %arg0, %c0_i32 : i32, i32
  }
}

module attributes {stable_mosaic.version = 11 : i64} {
  func.func @_matmul_bias_kernel(%arg0: i32, %arg1: i32, %arg2: i32, %arg3: memref<16x64xbf16, #tpu.memory_space<vmem>>, %arg4: memref<64x64xbf16, #tpu.memory_space<vmem>>, %arg5: memref<1x64xf32, #tpu.memory_space<vmem>>, %arg6: memref<16x64xbf16, #tpu.memory_space<vmem>>) attributes {dimension_semantics = [#tpu.dimension_semantics<parallel>, #tpu.dimension_semantics<parallel>, #tpu.dimension_semantics<arbitrary>], iteration_bounds = array<i64: 1, 1, 1>, scalar_prefetch = 0 : i64, scratch_operands = 0 : i64, tpu.core_type = #tpu.core_type<tc>, window_params = [{transform_indices = @transform_0, window_bounds = array<i64: 16, 64>}, {transform_indices = @transform_1, window_bounds = array<i64: 64, 64>}, {transform_indices = @transform_2, window_bounds = array<i64: 1, 64>}, {transform_indices = @transform_3, window_bounds = array<i64: 16, 64>}]} {
    %c0 = arith.constant 0 : index
    %c0_0 = arith.constant 0 : index
    %0 = vector.load %arg3[%c0, %c0_0] : memref<16x64xbf16, #tpu.memory_space<vmem>>, vector<16x64xbf16>
    %c0_1 = arith.constant 0 : index
    %c0_2 = arith.constant 0 : index
    %1 = vector.load %arg4[%c0_1, %c0_2] : memref<64x64xbf16, #tpu.memory_space<vmem>>, vector<64x64xbf16>
    %cst = arith.constant dense<0.000000e+00> : vector<16x64xf32>
    %2 = tpu.matmul %0, %1, %cst {dimension_numbers = #tpu.dot_dimension_numbers<[1], [0], [0], [1], [0, 0, 1, 1], [], []>} : vector<16x64xbf16>, vector<64x64xbf16>, vector<16x64xf32> -> vector<16x64xf32>
    %c0_3 = arith.constant 0 : index
    %c0_4 = arith.constant 0 : index
    %3 = vector.load %arg5[%c0_3, %c0_4] : memref<1x64xf32, #tpu.memory_space<vmem>>, vector<1x64xf32>
    %4 = vector.broadcast %3 : vector<1x64xf32> to vector<16x64xf32>
    %5 = arith.addf %2, %4 : vector<16x64xf32>
    %6 = arith.truncf %5 : vector<16x64xf32> to vector<16x64xbf16>
    %c0_5 = arith.constant 0 : index
    %c0_6 = arith.constant 0 : index
    %7 = vector.load %arg6[%c0_5, %c0_6] : memref<16x64xbf16, #tpu.memory_space<vmem>>, vector<16x64xbf16>
    tpu.vector_store %arg6[%c0_5, %c0_6], %6 {strides = array<i32>} : memref<16x64xbf16, #tpu.memory_space<vmem>>, vector<16x64xbf16>,
    return
  }
  func.func @transform_0(%arg0: i32, %arg1: i32, %arg2: i32) -> (i32, i32) {
    %c0_i32 = arith.constant 0 : i32
    return %arg0, %arg2 : i32, i32
  }
  func.func @transform_1(%arg0: i32, %arg1: i32, %arg2: i32) -> (i32, i32) {
    %c0_i32 = arith.constant 0 : i32
    return %arg2, %arg1 : i32, i32
  }
  func.func @transform_2(%arg0: i32, %arg1: i32, %arg2: i32) -> (i32, i32) {
    %c0_i32 = arith.constant 0 : i32
    %c0_i32_0 = arith.constant 0 : i32
    return %c0_i32, %arg1 : i32, i32
  }
  func.func @transform_3(%arg0: i32, %arg1: i32, %arg2: i32) -> (i32, i32) {
    %c0_i32 = arith.constant 0 : i32
    return %arg0, %arg1 : i32, i32
  }
}

module attributes {stable_mosaic.version = 11 : i64} {
  func.func @_cross_attn_kernel(%arg0: i32, %arg1: memref<1x8x64xbf16, #tpu.memory_space<vmem>>, %arg2: memref<1x8x128xbf16, #tpu.memory_space<vmem>>, %arg3: memref<1x8x64xf32, #tpu.memory_space<vmem>>) attributes {dimension_semantics = [#tpu.dimension_semantics<parallel>], iteration_bounds = array<i64: 2>, scalar_prefetch = 0 : i64, scratch_operands = 0 : i64, tpu.core_type = #tpu.core_type<tc>, window_params = [{transform_indices = @transform_0, window_bounds = array<i64: 1, 8, 64>}, {transform_indices = @transform_1, window_bounds = array<i64: 1, 8, 128>}, {transform_indices = @transform_2, window_bounds = array<i64: 1, 8, 64>}]} {
    %c0 = arith.constant 0 : index
    %c0_0 = arith.constant 0 : index
    %c0_1 = arith.constant 0 : index
    %0 = vector.load %arg1[%c0, %c0_0, %c0_1] : memref<1x8x64xbf16, #tpu.memory_space<vmem>>, vector<1x8x64xbf16>
    %1 = vector.shape_cast %0 : vector<1x8x64xbf16> to vector<8x64xbf16>
    %c0_2 = arith.constant 0 : index
    %c0_3 = arith.constant 0 : index
    %c0_4 = arith.constant 0 : index
    %2 = vector.load %arg2[%c0_2, %c0_3, %c0_4] : memref<1x8x128xbf16, #tpu.memory_space<vmem>>, vector<1x8x128xbf16>
    %3 = vector.shape_cast %2 : vector<1x8x128xbf16> to vector<8x128xbf16>
    %4 = vector.extract_strided_slice %3 {offsets = [0, 0], sizes = [8, 64], strides = [1, 1]} : vector<8x128xbf16> to vector<8x64xbf16>
    %5 = vector.extract_strided_slice %3 {offsets = [0, 64], sizes = [8, 64], strides = [1, 1]} : vector<8x128xbf16> to vector<8x64xbf16>
    %6 = vector.extract_strided_slice %1 {offsets = [0, 0], sizes = [8, 16], strides = [1, 1]} : vector<8x64xbf16> to vector<8x16xbf16>
    %7 = vector.extract_strided_slice %4 {offsets = [0, 0], sizes = [8, 16], strides = [1, 1]} : vector<8x64xbf16> to vector<8x16xbf16>
    %cst = arith.constant dense<0.000000e+00> : vector<8x8xf32>
    %8 = tpu.matmul %6, %7, %cst {dimension_numbers = #tpu.dot_dimension_numbers<[1], [1], [0], [0], [0, 0, 1, 0], [], []>} : vector<8x16xbf16>, vector<8x16xbf16>, vector<8x8xf32> -> vector<8x8xf32>
    %cst_5 = arith.constant 2.500000e-01 : f32
    %9 = vector.broadcast %cst_5 : f32 to vector<8x8xf32>
    %10 = arith.mulf %8, %9 : vector<8x8xf32>
    %cst_6 = arith.constant dense<0xFF800000> : vector<8xf32>
    %11 = vector.multi_reduction <maximumf>, %10, %cst_6 [1] : vector<8x8xf32> to vector<8xf32>
    %12 = vector.shape_cast %11 : vector<8xf32> to vector<8x1xf32>
    %13 = vector.broadcast %12 : vector<8x1xf32> to vector<8x8xf32>
    %14 = arith.subf %10, %13 : vector<8x8xf32>
    %15 = math.exp %14 : vector<8x8xf32>
    %cst_7 = arith.constant dense<0.000000e+00> : vector<8xf32>
    %16 = vector.multi_reduction <add>, %15, %cst_7 [1] : vector<8x8xf32> to vector<8xf32>
    %17 = vector.shape_cast %16 : vector<8xf32> to vector<8x1xf32>
    %18 = tpu.reciprocal %17 {approx = true} : vector<8x1xf32> -> vector<8x1xf32>
    %19 = vector.broadcast %18 : vector<8x1xf32> to vector<8x8xf32>
    %20 = arith.mulf %15, %19 : vector<8x8xf32>
    %21 = arith.truncf %20 : vector<8x8xf32> to vector<8x8xbf16>
    %22 = vector.extract_strided_slice %5 {offsets = [0, 0], sizes = [8, 16], strides = [1, 1]} : vector<8x64xbf16> to vector<8x16xbf16>
    %cst_8 = arith.constant dense<0.000000e+00> : vector<8x16xf32>
    %23 = tpu.matmul %21, %22, %cst_8 {dimension_numbers = #tpu.dot_dimension_numbers<[1], [0], [0], [1], [0, 0, 1, 1], [], []>} : vector<8x8xbf16>, vector<8x16xbf16>, vector<8x16xf32> -> vector<8x16xf32>
    %24 = vector.extract_strided_slice %1 {offsets = [0, 16], sizes = [8, 16], strides = [1, 1]} : vector<8x64xbf16> to vector<8x16xbf16>
    %25 = vector.extract_strided_slice %4 {offsets = [0, 16], sizes = [8, 16], strides = [1, 1]} : vector<8x64xbf16> to vector<8x16xbf16>
    %cst_9 = arith.constant dense<0.000000e+00> : vector<8x8xf32>
    %26 = tpu.matmul %24, %25, %cst_9 {dimension_numbers = #tpu.dot_dimension_numbers<[1], [1], [0], [0], [0, 0, 1, 0], [], []>} : vector<8x16xbf16>, vector<8x16xbf16>, vector<8x8xf32> -> vector<8x8xf32>
    %cst_10 = arith.constant 2.500000e-01 : f32
    %27 = vector.broadcast %cst_10 : f32 to vector<8x8xf32>
    %28 = arith.mulf %26, %27 : vector<8x8xf32>
    %cst_11 = arith.constant dense<0xFF800000> : vector<8xf32>
    %29 = vector.multi_reduction <maximumf>, %28, %cst_11 [1] : vector<8x8xf32> to vector<8xf32>
    %30 = vector.shape_cast %29 : vector<8xf32> to vector<8x1xf32>
    %31 = vector.broadcast %30 : vector<8x1xf32> to vector<8x8xf32>
    %32 = arith.subf %28, %31 : vector<8x8xf32>
    %33 = math.exp %32 : vector<8x8xf32>
    %cst_12 = arith.constant dense<0.000000e+00> : vector<8xf32>
    %34 = vector.multi_reduction <add>, %33, %cst_12 [1] : vector<8x8xf32> to vector<8xf32>
    %35 = vector.shape_cast %34 : vector<8xf32> to vector<8x1xf32>
    %36 = tpu.reciprocal %35 {approx = true} : vector<8x1xf32> -> vector<8x1xf32>
    %37 = vector.broadcast %36 : vector<8x1xf32> to vector<8x8xf32>
    %38 = arith.mulf %33, %37 : vector<8x8xf32>
    %39 = arith.truncf %38 : vector<8x8xf32> to vector<8x8xbf16>
    %40 = vector.extract_strided_slice %5 {offsets = [0, 16], sizes = [8, 16], strides = [1, 1]} : vector<8x64xbf16> to vector<8x16xbf16>
    %cst_13 = arith.constant dense<0.000000e+00> : vector<8x16xf32>
    %41 = tpu.matmul %39, %40, %cst_13 {dimension_numbers = #tpu.dot_dimension_numbers<[1], [0], [0], [1], [0, 0, 1, 1], [], []>} : vector<8x8xbf16>, vector<8x16xbf16>, vector<8x16xf32> -> vector<8x16xf32>
    %42 = vector.extract_strided_slice %1 {offsets = [0, 32], sizes = [8, 16], strides = [1, 1]} : vector<8x64xbf16> to vector<8x16xbf16>
    %43 = vector.extract_strided_slice %4 {offsets = [0, 32], sizes = [8, 16], strides = [1, 1]} : vector<8x64xbf16> to vector<8x16xbf16>
    %cst_14 = arith.constant dense<0.000000e+00> : vector<8x8xf32>
    %44 = tpu.matmul %42, %43, %cst_14 {dimension_numbers = #tpu.dot_dimension_numbers<[1], [1], [0], [0], [0, 0, 1, 0], [], []>} : vector<8x16xbf16>, vector<8x16xbf16>, vector<8x8xf32> -> vector<8x8xf32>
    %cst_15 = arith.constant 2.500000e-01 : f32
    %45 = vector.broadcast %cst_15 : f32 to vector<8x8xf32>
    %46 = arith.mulf %44, %45 : vector<8x8xf32>
    %cst_16 = arith.constant dense<0xFF800000> : vector<8xf32>
    %47 = vector.multi_reduction <maximumf>, %46, %cst_16 [1] : vector<8x8xf32> to vector<8xf32>
    %48 = vector.shape_cast %47 : vector<8xf32> to vector<8x1xf32>
    %49 = vector.broadcast %48 : vector<8x1xf32> to vector<8x8xf32>
    %50 = arith.subf %46, %49 : vector<8x8xf32>
    %51 = math.exp %50 : vector<8x8xf32>
    %cst_17 = arith.constant dense<0.000000e+00> : vector<8xf32>
    %52 = vector.multi_reduction <add>, %51, %cst_17 [1] : vector<8x8xf32> to vector<8xf32>
    %53 = vector.shape_cast %52 : vector<8xf32> to vector<8x1xf32>
    %54 = tpu.reciprocal %53 {approx = true} : vector<8x1xf32> -> vector<8x1xf32>
    %55 = vector.broadcast %54 : vector<8x1xf32> to vector<8x8xf32>
    %56 = arith.mulf %51, %55 : vector<8x8xf32>
    %57 = arith.truncf %56 : vector<8x8xf32> to vector<8x8xbf16>
    %58 = vector.extract_strided_slice %5 {offsets = [0, 32], sizes = [8, 16], strides = [1, 1]} : vector<8x64xbf16> to vector<8x16xbf16>
    %cst_18 = arith.constant dense<0.000000e+00> : vector<8x16xf32>
    %59 = tpu.matmul %57, %58, %cst_18 {dimension_numbers = #tpu.dot_dimension_numbers<[1], [0], [0], [1], [0, 0, 1, 1], [], []>} : vector<8x8xbf16>, vector<8x16xbf16>, vector<8x16xf32> -> vector<8x16xf32>
    %60 = vector.extract_strided_slice %1 {offsets = [0, 48], sizes = [8, 16], strides = [1, 1]} : vector<8x64xbf16> to vector<8x16xbf16>
    %61 = vector.extract_strided_slice %4 {offsets = [0, 48], sizes = [8, 16], strides = [1, 1]} : vector<8x64xbf16> to vector<8x16xbf16>
    %cst_19 = arith.constant dense<0.000000e+00> : vector<8x8xf32>
    %62 = tpu.matmul %60, %61, %cst_19 {dimension_numbers = #tpu.dot_dimension_numbers<[1], [1], [0], [0], [0, 0, 1, 0], [], []>} : vector<8x16xbf16>, vector<8x16xbf16>, vector<8x8xf32> -> vector<8x8xf32>
    %cst_20 = arith.constant 2.500000e-01 : f32
    %63 = vector.broadcast %cst_20 : f32 to vector<8x8xf32>
    %64 = arith.mulf %62, %63 : vector<8x8xf32>
    %cst_21 = arith.constant dense<0xFF800000> : vector<8xf32>
    %65 = vector.multi_reduction <maximumf>, %64, %cst_21 [1] : vector<8x8xf32> to vector<8xf32>
    %66 = vector.shape_cast %65 : vector<8xf32> to vector<8x1xf32>
    %67 = vector.broadcast %66 : vector<8x1xf32> to vector<8x8xf32>
    %68 = arith.subf %64, %67 : vector<8x8xf32>
    %69 = math.exp %68 : vector<8x8xf32>
    %cst_22 = arith.constant dense<0.000000e+00> : vector<8xf32>
    %70 = vector.multi_reduction <add>, %69, %cst_22 [1] : vector<8x8xf32> to vector<8xf32>
    %71 = vector.shape_cast %70 : vector<8xf32> to vector<8x1xf32>
    %72 = tpu.reciprocal %71 {approx = true} : vector<8x1xf32> -> vector<8x1xf32>
    %73 = vector.broadcast %72 : vector<8x1xf32> to vector<8x8xf32>
    %74 = arith.mulf %69, %73 : vector<8x8xf32>
    %75 = arith.truncf %74 : vector<8x8xf32> to vector<8x8xbf16>
    %76 = vector.extract_strided_slice %5 {offsets = [0, 48], sizes = [8, 16], strides = [1, 1]} : vector<8x64xbf16> to vector<8x16xbf16>
    %cst_23 = arith.constant dense<0.000000e+00> : vector<8x16xf32>
    %77 = tpu.matmul %75, %76, %cst_23 {dimension_numbers = #tpu.dot_dimension_numbers<[1], [0], [0], [1], [0, 0, 1, 1], [], []>} : vector<8x8xbf16>, vector<8x16xbf16>, vector<8x16xf32> -> vector<8x16xf32>
    %78 = tpu.concatenate %23, %41, %59, %77 in 1 : vector<8x16xf32>, vector<8x16xf32>, vector<8x16xf32>, vector<8x16xf32> -> vector<8x64xf32>
    %c0_24 = arith.constant 0 : index
    %c0_25 = arith.constant 0 : index
    %c0_26 = arith.constant 0 : index
    %79 = vector.load %arg3[%c0_24, %c0_25, %c0_26] : memref<1x8x64xf32, #tpu.memory_space<vmem>>, vector<1x8x64xf32>
    %80 = vector.shape_cast %79 : vector<1x8x64xf32> to vector<8x64xf32>
    %81 = vector.shape_cast %78 : vector<8x64xf32> to vector<1x8x64xf32>
    tpu.vector_store %arg3[%c0_24, %c0_25, %c0_26], %81 {strides = array<i32>} : memref<1x8x64xf32, #tpu.memory_space<vmem>>, vector<1x8x64xf32>,
    return
  }
  func.func @transform_0(%arg0: i32) -> (i32, i32, i32) {
    %c0_i32 = arith.constant 0 : i32
    %c0_i32_0 = arith.constant 0 : i32
    %c0_i32_1 = arith.constant 0 : i32
    return %arg0, %c0_i32, %c0_i32_0 : i32, i32, i32
  }
  func.func @transform_1(%arg0: i32) -> (i32, i32, i32) {
    %c0_i32 = arith.constant 0 : i32
    %c0_i32_0 = arith.constant 0 : i32
    %c0_i32_1 = arith.constant 0 : i32
    return %arg0, %c0_i32, %c0_i32_0 : i32, i32, i32
  }
  func.func @transform_2(%arg0: i32) -> (i32, i32, i32) {
    %c0_i32 = arith.constant 0 : i32
    %c0_i32_0 = arith.constant 0 : i32
    %c0_i32_1 = arith.constant 0 : i32
    return %arg0, %c0_i32, %c0_i32_0 : i32, i32, i32
  }
}

module attributes {stable_mosaic.version = 11 : i64} {
  func.func @_matmul_bias_kernel(%arg0: i32, %arg1: i32, %arg2: i32, %arg3: memref<2x4xbf16, #tpu.memory_space<vmem>>, %arg4: memref<4x64xbf16, #tpu.memory_space<vmem>>, %arg5: memref<1x64xf32, #tpu.memory_space<vmem>>, %arg6: memref<2x64xf32, #tpu.memory_space<vmem>>) attributes {dimension_semantics = [#tpu.dimension_semantics<parallel>, #tpu.dimension_semantics<parallel>, #tpu.dimension_semantics<arbitrary>], iteration_bounds = array<i64: 1, 1, 1>, scalar_prefetch = 0 : i64, scratch_operands = 0 : i64, tpu.core_type = #tpu.core_type<tc>, window_params = [{transform_indices = @transform_0, window_bounds = array<i64: 2, 4>}, {transform_indices = @transform_1, window_bounds = array<i64: 4, 64>}, {transform_indices = @transform_2, window_bounds = array<i64: 1, 64>}, {transform_indices = @transform_3, window_bounds = array<i64: 2, 64>}]} {
    %c0 = arith.constant 0 : index
    %c0_0 = arith.constant 0 : index
    %0 = vector.load %arg3[%c0, %c0_0] : memref<2x4xbf16, #tpu.memory_space<vmem>>, vector<2x4xbf16>
    %c0_1 = arith.constant 0 : index
    %c0_2 = arith.constant 0 : index
    %1 = vector.load %arg4[%c0_1, %c0_2] : memref<4x64xbf16, #tpu.memory_space<vmem>>, vector<4x64xbf16>
    %cst = arith.constant dense<0.000000e+00> : vector<2x64xf32>
    %2 = tpu.matmul %0, %1, %cst {dimension_numbers = #tpu.dot_dimension_numbers<[1], [0], [0], [1], [0, 0, 1, 1], [], []>} : vector<2x4xbf16>, vector<4x64xbf16>, vector<2x64xf32> -> vector<2x64xf32>
    %c0_3 = arith.constant 0 : index
    %c0_4 = arith.constant 0 : index
    %3 = vector.load %arg5[%c0_3, %c0_4] : memref<1x64xf32, #tpu.memory_space<vmem>>, vector<1x64xf32>
    %4 = vector.broadcast %3 : vector<1x64xf32> to vector<2x64xf32>
    %5 = arith.addf %2, %4 : vector<2x64xf32>
    %cst_5 = arith.constant 0.000000e+00 : f32
    %6 = vector.broadcast %cst_5 : f32 to vector<2x64xf32>
    %7 = arith.maximumf %5, %6 : vector<2x64xf32>
    %c0_6 = arith.constant 0 : index
    %c0_7 = arith.constant 0 : index
    %8 = vector.load %arg6[%c0_6, %c0_7] : memref<2x64xf32, #tpu.memory_space<vmem>>, vector<2x64xf32>
    tpu.vector_store %arg6[%c0_6, %c0_7], %7 {strides = array<i32>} : memref<2x64xf32, #tpu.memory_space<vmem>>, vector<2x64xf32>,
    return
  }
  func.func @transform_0(%arg0: i32, %arg1: i32, %arg2: i32) -> (i32, i32) {
    %c0_i32 = arith.constant 0 : i32
    return %arg0, %arg2 : i32, i32
  }
  func.func @transform_1(%arg0: i32, %arg1: i32, %arg2: i32) -> (i32, i32) {
    %c0_i32 = arith.constant 0 : i32
    return %arg2, %arg1 : i32, i32
  }
  func.func @transform_2(%arg0: i32, %arg1: i32, %arg2: i32) -> (i32, i32) {
    %c0_i32 = arith.constant 0 : i32
    %c0_i32_0 = arith.constant 0 : i32
    return %c0_i32, %arg1 : i32, i32
  }
  func.func @transform_3(%arg0: i32, %arg1: i32, %arg2: i32) -> (i32, i32) {
    %c0_i32 = arith.constant 0 : i32
    return %arg0, %arg1 : i32, i32
  }
}

module attributes {stable_mosaic.version = 11 : i64} {
  func.func @_head_kernel(%arg0: i32, %arg1: memref<1x8x64xf32, #tpu.memory_space<vmem>>, %arg2: memref<1x1x64xf32, #tpu.memory_space<vmem>>, %arg3: memref<1x64xf32, #tpu.memory_space<vmem>>, %arg4: memref<1x64xf32, #tpu.memory_space<vmem>>, %arg5: memref<64x64xbf16, #tpu.memory_space<vmem>>, %arg6: memref<1x64xf32, #tpu.memory_space<vmem>>, %arg7: memref<64x1xbf16, #tpu.memory_space<vmem>>, %arg8: memref<1x1xf32, #tpu.memory_space<vmem>>, %arg9: memref<64x128xbf16, #tpu.memory_space<vmem>>, %arg10: memref<1x128xf32, #tpu.memory_space<vmem>>, %arg11: memref<128x1xbf16, #tpu.memory_space<vmem>>, %arg12: memref<1x1xf32, #tpu.memory_space<vmem>>, %arg13: memref<1x1x1xf32, #tpu.memory_space<vmem>>) attributes {dimension_semantics = [#tpu.dimension_semantics<parallel>], iteration_bounds = array<i64: 2>, scalar_prefetch = 0 : i64, scratch_operands = 0 : i64, tpu.core_type = #tpu.core_type<tc>, window_params = [{transform_indices = @transform_0, window_bounds = array<i64: 1, 8, 64>}, {transform_indices = @transform_1, window_bounds = array<i64: 1, 1, 64>}, {pipeline_mode = #tpu.pipeline_mode<synchronous>, transform_indices = @transform_2, window_bounds = array<i64: 1, 64>}, {pipeline_mode = #tpu.pipeline_mode<synchronous>, transform_indices = @transform_3, window_bounds = array<i64: 1, 64>}, {pipeline_mode = #tpu.pipeline_mode<synchronous>, transform_indices = @transform_4, window_bounds = array<i64: 64, 64>}, {pipeline_mode = #tpu.pipeline_mode<synchronous>, transform_indices = @transform_5, window_bounds = array<i64: 1, 64>}, {pipeline_mode = #tpu.pipeline_mode<synchronous>, transform_indices = @transform_6, window_bounds = array<i64: 64, 1>}, {pipeline_mode = #tpu.pipeline_mode<synchronous>, transform_indices = @transform_7, window_bounds = array<i64: 1, 1>}, {pipeline_mode = #tpu.pipeline_mode<synchronous>, transform_indices = @transform_8, window_bounds = array<i64: 64, 128>}, {pipeline_mode = #tpu.pipeline_mode<synchronous>, transform_indices = @transform_9, window_bounds = array<i64: 1, 128>}, {pipeline_mode = #tpu.pipeline_mode<synchronous>, transform_indices = @transform_10, window_bounds = array<i64: 128, 1>}, {pipeline_mode = #tpu.pipeline_mode<synchronous>, transform_indices = @transform_11, window_bounds = array<i64: 1, 1>}, {transform_indices = @transform_12, window_bounds = array<i64: 1, 1, 1>}]} {
    %c0 = arith.constant 0 : index
    %c0_0 = arith.constant 0 : index
    %c0_1 = arith.constant 0 : index
    %0 = vector.load %arg1[%c0, %c0_0, %c0_1] : memref<1x8x64xf32, #tpu.memory_space<vmem>>, vector<1x8x64xf32>
    %1 = vector.shape_cast %0 : vector<1x8x64xf32> to vector<8x64xf32>
    %cst = arith.constant dense<0.000000e+00> : vector<8xf32>
    %2 = vector.multi_reduction <add>, %1, %cst [1] : vector<8x64xf32> to vector<8xf32>
    %3 = vector.shape_cast %2 : vector<8xf32> to vector<8x1xf32>
    %cst_2 = arith.constant 6.400000e+01 : f32
    %4 = vector.broadcast %cst_2 : f32 to vector<8x1xf32>
    %5 = arith.divf %3, %4 : vector<8x1xf32>
    %6 = vector.broadcast %5 : vector<8x1xf32> to vector<8x64xf32>
    %7 = arith.subf %1, %6 : vector<8x64xf32>
    %8 = arith.mulf %7, %7 : vector<8x64xf32>
    %cst_3 = arith.constant dense<0.000000e+00> : vector<8xf32>
    %9 = vector.multi_reduction <add>, %8, %cst_3 [1] : vector<8x64xf32> to vector<8xf32>
    %10 = vector.shape_cast %9 : vector<8xf32> to vector<8x1xf32>
    %cst_4 = arith.constant 6.400000e+01 : f32
    %11 = vector.broadcast %cst_4 : f32 to vector<8x1xf32>
    %12 = arith.divf %10, %11 : vector<8x1xf32>
    %cst_5 = arith.constant 9.99999974E-6 : f32
    %13 = vector.broadcast %cst_5 : f32 to vector<8x1xf32>
    %14 = arith.addf %12, %13 : vector<8x1xf32>
    %15 = math.rsqrt %14 : vector<8x1xf32>
    %16 = vector.broadcast %15 : vector<8x1xf32> to vector<8x64xf32>
    %17 = arith.mulf %7, %16 : vector<8x64xf32>
    %c0_6 = arith.constant 0 : index
    %c0_7 = arith.constant 0 : index
    %18 = vector.load %arg3[%c0_6, %c0_7] : memref<1x64xf32, #tpu.memory_space<vmem>>, vector<1x64xf32>
    %19 = vector.broadcast %18 : vector<1x64xf32> to vector<8x64xf32>
    %20 = arith.mulf %17, %19 : vector<8x64xf32>
    %c0_8 = arith.constant 0 : index
    %c0_9 = arith.constant 0 : index
    %21 = vector.load %arg4[%c0_8, %c0_9] : memref<1x64xf32, #tpu.memory_space<vmem>>, vector<1x64xf32>
    %22 = vector.broadcast %21 : vector<1x64xf32> to vector<8x64xf32>
    %23 = arith.addf %20, %22 : vector<8x64xf32>
    %c0_10 = arith.constant 0 : index
    %c0_11 = arith.constant 0 : index
    %c0_12 = arith.constant 0 : index
    %24 = vector.load %arg2[%c0_10, %c0_11, %c0_12] : memref<1x1x64xf32, #tpu.memory_space<vmem>>, vector<1x1x64xf32>
    %25 = vector.shape_cast %24 : vector<1x1x64xf32> to vector<1x64xf32>
    %26 = vector.broadcast %25 : vector<1x64xf32> to vector<8x64xf32>
    %27 = arith.addf %23, %26 : vector<8x64xf32>
    %28 = arith.truncf %27 : vector<8x64xf32> to vector<8x64xbf16>
    %c0_13 = arith.constant 0 : index
    %c0_14 = arith.constant 0 : index
    %29 = vector.load %arg5[%c0_13, %c0_14] : memref<64x64xbf16, #tpu.memory_space<vmem>>, vector<64x64xbf16>
    %cst_15 = arith.constant dense<0.000000e+00> : vector<8x64xf32>
    %30 = tpu.matmul %28, %29, %cst_15 {dimension_numbers = #tpu.dot_dimension_numbers<[1], [0], [0], [1], [0, 0, 1, 1], [], []>} : vector<8x64xbf16>, vector<64x64xbf16>, vector<8x64xf32> -> vector<8x64xf32>
    %c0_16 = arith.constant 0 : index
    %c0_17 = arith.constant 0 : index
    %31 = vector.load %arg6[%c0_16, %c0_17] : memref<1x64xf32, #tpu.memory_space<vmem>>, vector<1x64xf32>
    %32 = vector.broadcast %31 : vector<1x64xf32> to vector<8x64xf32>
    %33 = arith.addf %30, %32 : vector<8x64xf32>
    %34 = math.tanh %33 : vector<8x64xf32>
    %35 = arith.truncf %34 : vector<8x64xf32> to vector<8x64xbf16>
    %c0_18 = arith.constant 0 : index
    %c0_19 = arith.constant 0 : index
    %36 = vector.load %arg7[%c0_18, %c0_19] : memref<64x1xbf16, #tpu.memory_space<vmem>>, vector<64x1xbf16>
    %cst_20 = arith.constant dense<0.000000e+00> : vector<8x1xf32>
    %37 = tpu.matmul %35, %36, %cst_20 {dimension_numbers = #tpu.dot_dimension_numbers<[1], [0], [0], [1], [0, 0, 1, 1], [], []>} : vector<8x64xbf16>, vector<64x1xbf16>, vector<8x1xf32> -> vector<8x1xf32>
    %c0_21 = arith.constant 0 : index
    %c0_22 = arith.constant 0 : index
    %38 = vector.load %arg8[%c0_21, %c0_22] : memref<1x1xf32, #tpu.memory_space<vmem>>, vector<1x1xf32>
    %39 = vector.broadcast %38 : vector<1x1xf32> to vector<8x1xf32>
    %40 = arith.addf %37, %39 : vector<8x1xf32>
    %cst_23 = arith.constant dense<0xFF800000> : vector<1xf32>
    %41 = vector.multi_reduction <maximumf>, %40, %cst_23 [0] : vector<8x1xf32> to vector<1xf32>
    %42 = vector.shape_cast %41 : vector<1xf32> to vector<1x1xf32>
    %43 = vector.broadcast %42 : vector<1x1xf32> to vector<8x1xf32>
    %44 = arith.subf %40, %43 : vector<8x1xf32>
    %45 = math.exp %44 : vector<8x1xf32>
    %cst_24 = arith.constant dense<0.000000e+00> : vector<1xf32>
    %46 = vector.multi_reduction <add>, %45, %cst_24 [0] : vector<8x1xf32> to vector<1xf32>
    %47 = vector.shape_cast %46 : vector<1xf32> to vector<1x1xf32>
    %48 = tpu.reciprocal %47 {approx = true} : vector<1x1xf32> -> vector<1x1xf32>
    %49 = vector.broadcast %48 : vector<1x1xf32> to vector<8x1xf32>
    %50 = arith.mulf %45, %49 : vector<8x1xf32>
    %51 = vector.broadcast %50 : vector<8x1xf32> to vector<8x64xf32>
    %52 = arith.mulf %27, %51 : vector<8x64xf32>
    %cst_25 = arith.constant dense<0.000000e+00> : vector<64xf32>
    %53 = vector.multi_reduction <add>, %52, %cst_25 [0] : vector<8x64xf32> to vector<64xf32>
    %54 = vector.shape_cast %53 : vector<64xf32> to vector<1x64xf32>
    %55 = arith.truncf %54 : vector<1x64xf32> to vector<1x64xbf16>
    %c0_26 = arith.constant 0 : index
    %c0_27 = arith.constant 0 : index
    %56 = vector.load %arg9[%c0_26, %c0_27] : memref<64x128xbf16, #tpu.memory_space<vmem>>, vector<64x128xbf16>
    %cst_28 = arith.constant dense<0.000000e+00> : vector<1x128xf32>
    %57 = tpu.matmul %55, %56, %cst_28 {dimension_numbers = #tpu.dot_dimension_numbers<[1], [0], [0], [1], [0, 0, 1, 1], [], []>} : vector<1x64xbf16>, vector<64x128xbf16>, vector<1x128xf32> -> vector<1x128xf32>
    %c0_29 = arith.constant 0 : index
    %c0_30 = arith.constant 0 : index
    %58 = vector.load %arg10[%c0_29, %c0_30] : memref<1x128xf32, #tpu.memory_space<vmem>>, vector<1x128xf32>
    %59 = arith.addf %57, %58 : vector<1x128xf32>
    %cst_31 = arith.constant 0.000000e+00 : f32
    %60 = vector.broadcast %cst_31 : f32 to vector<1x128xf32>
    %61 = arith.maximumf %59, %60 : vector<1x128xf32>
    %62 = arith.truncf %61 : vector<1x128xf32> to vector<1x128xbf16>
    %c0_32 = arith.constant 0 : index
    %c0_33 = arith.constant 0 : index
    %63 = vector.load %arg11[%c0_32, %c0_33] : memref<128x1xbf16, #tpu.memory_space<vmem>>, vector<128x1xbf16>
    %cst_34 = arith.constant dense<0.000000e+00> : vector<1x1xf32>
    %64 = tpu.matmul %62, %63, %cst_34 {dimension_numbers = #tpu.dot_dimension_numbers<[1], [0], [0], [1], [0, 0, 1, 1], [], []>} : vector<1x128xbf16>, vector<128x1xbf16>, vector<1x1xf32> -> vector<1x1xf32>
    %c0_35 = arith.constant 0 : index
    %c0_36 = arith.constant 0 : index
    %65 = vector.load %arg12[%c0_35, %c0_36] : memref<1x1xf32, #tpu.memory_space<vmem>>, vector<1x1xf32>
    %66 = arith.addf %64, %65 : vector<1x1xf32>
    %c0_37 = arith.constant 0 : index
    %c0_38 = arith.constant 0 : index
    %c0_39 = arith.constant 0 : index
    %67 = vector.load %arg13[%c0_37, %c0_38, %c0_39] : memref<1x1x1xf32, #tpu.memory_space<vmem>>, vector<1x1x1xf32>
    %68 = vector.shape_cast %67 : vector<1x1x1xf32> to vector<1x1xf32>
    %69 = vector.shape_cast %66 : vector<1x1xf32> to vector<1x1x1xf32>
    tpu.vector_store %arg13[%c0_37, %c0_38, %c0_39], %69 {strides = array<i32>} : memref<1x1x1xf32, #tpu.memory_space<vmem>>, vector<1x1x1xf32>,
    return
  }
  func.func @transform_0(%arg0: i32) -> (i32, i32, i32) {
    %c0_i32 = arith.constant 0 : i32
    %c0_i32_0 = arith.constant 0 : i32
    %c0_i32_1 = arith.constant 0 : i32
    return %arg0, %c0_i32, %c0_i32_0 : i32, i32, i32
  }
  func.func @transform_1(%arg0: i32) -> (i32, i32, i32) {
    %c0_i32 = arith.constant 0 : i32
    %c0_i32_0 = arith.constant 0 : i32
    %c0_i32_1 = arith.constant 0 : i32
    return %arg0, %c0_i32, %c0_i32_0 : i32, i32, i32
  }
  func.func @transform_2(%arg0: i32) -> (i32, i32) {
    %c0_i32 = arith.constant 0 : i32
    %c0_i32_0 = arith.constant 0 : i32
    %c0_i32_1 = arith.constant 0 : i32
    return %c0_i32, %c0_i32_0 : i32, i32
  }
  func.func @transform_3(%arg0: i32) -> (i32, i32) {
    %c0_i32 = arith.constant 0 : i32
    %c0_i32_0 = arith.constant 0 : i32
    %c0_i32_1 = arith.constant 0 : i32
    return %c0_i32, %c0_i32_0 : i32, i32
  }
  func.func @transform_4(%arg0: i32) -> (i32, i32) {
    %c0_i32 = arith.constant 0 : i32
    %c0_i32_0 = arith.constant 0 : i32
    %c0_i32_1 = arith.constant 0 : i32
    return %c0_i32, %c0_i32_0 : i32, i32
  }
  func.func @transform_5(%arg0: i32) -> (i32, i32) {
    %c0_i32 = arith.constant 0 : i32
    %c0_i32_0 = arith.constant 0 : i32
    %c0_i32_1 = arith.constant 0 : i32
    return %c0_i32, %c0_i32_0 : i32, i32
  }
  func.func @transform_6(%arg0: i32) -> (i32, i32) {
    %c0_i32 = arith.constant 0 : i32
    %c0_i32_0 = arith.constant 0 : i32
    %c0_i32_1 = arith.constant 0 : i32
    return %c0_i32, %c0_i32_0 : i32, i32
  }
  func.func @transform_7(%arg0: i32) -> (i32, i32) {
    %c0_i32 = arith.constant 0 : i32
    %c0_i32_0 = arith.constant 0 : i32
    %c0_i32_1 = arith.constant 0 : i32
    return %c0_i32, %c0_i32_0 : i32, i32
  }
  func.func @transform_8(%arg0: i32) -> (i32, i32) {
    %c0_i32 = arith.constant 0 : i32
    %c0_i32_0 = arith.constant 0 : i32
    %c0_i32_1 = arith.constant 0 : i32
    return %c0_i32, %c0_i32_0 : i32, i32
  }
  func.func @transform_9(%arg0: i32) -> (i32, i32) {
    %c0_i32 = arith.constant 0 : i32
    %c0_i32_0 = arith.constant 0 : i32
    %c0_i32_1 = arith.constant 0 : i32
    return %c0_i32, %c0_i32_0 : i32, i32
  }
  func.func @transform_10(%arg0: i32) -> (i32, i32) {
    %c0_i32 = arith.constant 0 : i32
    %c0_i32_0 = arith.constant 0 : i32
    %c0_i32_1 = arith.constant 0 : i32
    return %c0_i32, %c0_i32_0 : i32, i32
  }
  func.func @transform_11(%arg0: i32) -> (i32, i32) {
    %c0_i32 = arith.constant 0 : i32
    %c0_i32_0 = arith.constant 0 : i32
    %c0_i32_1 = arith.constant 0 : i32
    return %c0_i32, %c0_i32_0 : i32, i32
  }
  func.func @transform_12(%arg0: i32) -> (i32, i32, i32) {
    %c0_i32 = arith.constant 0 : i32
    %c0_i32_0 = arith.constant 0 : i32
    %c0_i32_1 = arith.constant 0 : i32
    return %arg0, %c0_i32, %c0_i32_0 : i32, i32, i32
  }
}

</mosaic_0001>

<bundles_post_ra>
// kernel: emodel_cnn_transformer_forward.30
= control target key start
LH: loop header
LB: loop body
LE: loop exit
PB: predicated region body
PF: predicated region fallthrough
CT: control target
= control target key end

     0   :  { %s478_s12 = smov 0   ;;  %s523_s0 = inlined_call_operand.vmem [shape: bf16[2,10,4], index: 0, kind: input, shape index: {}]   ;;  %s524_s1 = inlined_call_operand.vmem [shape: bf16[3,4,32], index: 1, kind: input, shape index: {}]   ;;  %s525_s2 = inlined_call_operand.vmem [shape: f32[1,32], index: 2, kind: input, shape index: {}]   ;;  %s526_s3 = inlined_call_operand.vmem [shape: f32[2,8,32], index: 3, kind: output, shape index: {}]  }
   0x1 LB: > { %s395_s13 = sadd.s32 4294967295, %s454_s12   ;;  %p399_p0 = scmp.ge.s32.totalorder %s454_s12, 1  ;;  %s454_s12 = sphi %s478_s12, %s13_s12  }
   0x2   : > { %p137_p1 = scmp.lt.s32.totalorder %s454_s12, 3 }
   0x4   : > { %p138_p2 = pnand %p399_p0, %p137_p1 }
   0x5   : > { %v403_v0 = vld [vmem:[%s524_s1 + $0x2] sm:$0x3] (!%p138_p2)  ;;  %vm191_vm0 = vcmask (!%p138_p2), 1041408   ;;  %v172_v1 = vld [vmem:[%s524_s1] sm:$0x3] (!%p138_p2)  ;;  %v456_v2 = vmov (!%p138_p2), 0.0  }
   0x6   : > { %141 = sbr.rel (%p138_p2) target bundleno = 252 (0xfc), region = 32  ;;  %419 = vmatprep.subr.bf16.mxu0 (!%p138_p2), %v456_v2  ;;  %v193_v3 = vsel (!%p138_p2), %vm191_vm0, %v403_v0, 0  ;;  %425 = vmatprep.subr.bf16.mxu1 (!%p138_p2), %v456_v2  ;;  %v239_v4 = vsel (!%p138_p2), %vm191_vm0, %v172_v1, 0  ;;  %p160_p3 = scmp.lt.s32.totalorder (!%p138_p2), %s395_s13, 1  ;;  %vm457_vm1 = vmmov (!%p138_p2), 0   ;;  %vm187_vm2 = vcmask (!%p138_p2), 31744  }
   0x7   : > { %420 = vmatpush3.bf16.msra.mxu0 (!%p138_p2), %v193_v3  ;;  %426 = vmatpush3.bf16.msra.mxu1 (!%p138_p2), %v239_v4  ;;  %v407_v10 = vld [vmem:[%s524_s1 + $0x4] sm:$0x3] (!%p138_p2)  ;;  %v409_v25 = vld [vmem:[%s525_s2] ss:$0 sm:$0xff] (!%p138_p2)  ;;  %vm340_vm3 = vcmask (!%p138_p2), 261120  }
   0x8   : > { %421 = vmatprep.mubr.msk.bf16.mxu0 (!%p138_p2), %vm457_vm1, %v456_v2  ;;  %427 = vmatprep.mubr.msk.bf16.mxu1 (!%p138_p2), %vm457_vm1, %v456_v2  ;;  %v288_v13 = vsel (!%p138_p2), %vm191_vm0, %v407_v10, 0 }
   0x9   : > { %431 = vmatprep.subr.bf16.mxu0 (!%p138_p2), %v456_v2 }
   0xd   : > { %s528_s13 = smov (!%p160_p3, %s395_s13), 1 }
   0xe   : > { %s412_s18 = sshll.u32 %s528_s13, 3 }
   0xf   : > { %s164_s21 = scalar_lea.vmem %s523_s0, %s412_s18  ;;  %s168_s28 = scalar_lea.vmem %s526_s3, %s412_s18 }
  0x10   : > { %v170_v5 = vld [vmem:[%s164_s21] sm:$0xf]  ;;  %v171_v6 = vld [vmem:[%s164_s21 + $0x4] sm:$0x1] }
  0x11   : > { %v404_v7 = vcombine.low %v170_v5, %v171_v6  ;;  %428 = vmatmul.mubr.msk.bf16.vlgmr.msra.gmra.mrb[0].mxu1 %vm187_vm2, %v170_v5 }
  0x13   : > { %v181_v8 = vshrl.u32 %v404_v7, 16  ;;  %v183_v9 = vshll.u32 %v404_v7, 16  ;;  %v283_v14 = vrot.slane %v404_v7, 1 }
  0x15   : > { %v185_v11 = vrot.slane %v183_v9, 1 }
  0x17   : > { %v186_v12 = vor.u32 %v185_v11, %v181_v8 }
  0x19   : > { %422 = vmatmul.mubr.msk.bf16.vlgmr.msra.gmra.mrb[0].mxu0 %vm187_vm2, %v186_v12 }
  0x1a   : > { %432 = vmatpush3.bf16.msra.mxu0 %v288_v13  ;;  %433 = vmatprep.mubr.msk.bf16.mxu0 %vm457_vm1, %v456_v2 }
  0x21   : > { %434 = vmatmul.mubr.msk.bf16.vlgmr.msra.gmra.mrb[4].mxu0 %vm187_vm2, %v283_v14 }
  0xe4   : > { %v275_v15 = vpop.f32.mrb[0].mxu1 }
  0xe5   : > { %v429_v16 = vpop.f32.mrb[1].mxu1 }
  0xe6   : > { %v278_v17 = vpop.f32.mrb[2].mxu1 }
  0xe7   : > { %v430_v18 = vpop.f32.mrb[3].mxu1 }
  0xec   : > { %v229_v19 = vpop.f32.mrb[0].mxu0 }
  0xed   : > { %v276_v20 = vadd.f32 %v275_v15, %v229_v19  ;;  %v423_v21 = vpop.f32.mrb[1].mxu0 }
  0xee   : > { %v232_v22 = vpop.f32.mrb[2].mxu0 }
  0xef   : > { %v424_v23 = vpop.f32.mrb[3].mxu0 }
  0xf4   : > { %v324_v24 = vpop.f32.mrb[4].mxu0 }
  0xf5   : > { %v330_v26 = vadd.f32 %v324_v24, %v276_v20  ;;  %v435_v27 = vpop.f32.mrb[5].mxu0 }
  0xf6   : > { %v327_v28 = vpop.f32.mrb[6].mxu0 }
  0xf7   : > { %v338_v29 = vadd.f32 %v409_v25, %v330_v26  ;;  %v436_v30 = vpop.f32.mrb[7].mxu0 }
  0xf9   : > { %v339_v31 = vmax.f32 %v338_v29, 0.0 }
  0xfb   : > { %341 = vst.msk [vmem:[%s168_s28] sm:$0xff] %vm340_vm3, %v339_v31 }
  0xfc PF: > { %s13_s12 = sadd.s32 1, %s454_s12  }
  0xfd   : > { %p10_p4 = scmp.ge.s32.totalorder %s13_s12, 4  }
  0xff   :  { %12 = sbr.rel (!%p10_p4) target bundleno = 1 (0x1), region = 64 }

// kernel: emodel_cnn_transformer_forward.31
= control target key start
LH: loop header
LB: loop body
LE: loop exit
PB: predicated region body
PF: predicated region fallthrough
CT: control target
= control target key end

     0   :  { %s705_s12 = smov 0   ;;  %s773_s0 = inlined_call_operand.vmem [shape: bf16[2,12,32], index: 0, kind: input, shape index: {}]   ;;  %s774_s1 = inlined_call_operand.vmem [shape: bf16[5,32,32], index: 1, kind: input, shape index: {}]   ;;  %s775_s2 = inlined_call_operand.vmem [shape: f32[1,32], index: 2, kind: input, shape index: {}]   ;;  %s776_s3 = inlined_call_operand.vmem [shape: f32[2,8,32], index: 3, kind: output, shape index: {}]  }
   0x1 LB: > { %s555_s13 = sadd.s32 4294967295, %s681_s12   ;;  %p559_p0 = scmp.ge.s32.totalorder %s681_s12, 1  ;;  %s681_s12 = sphi %s705_s12, %s13_s12  }
   0x2   : > { %p137_p1 = scmp.lt.s32.totalorder %s681_s12, 3 }
   0x4   : > { %p138_p2 = pnand %p559_p0, %p137_p1 }
   0x5   : > { %v664_v0 = vld [vmem:[%s774_s1 + $0x10] sm:$0xff] (!%p138_p2)   ;;  %v683_v1 = vmov (!%p138_p2), 0.0   ;;  %v665_v2 = vld [vmem:[%s774_s1] sm:$0xff] (!%p138_p2)   ;;  %v666_v3 = vld [vmem:[%s774_s1 + $0x18] sm:$0xff] (!%p138_p2)   ;;  %vm684_vm0 = vmmov (!%p138_p2), 0   ;;  %p160_p3 = scmp.lt.s32.totalorder (!%p138_p2), %s555_s13, 1 }
   0x6   : > { %141 = sbr.rel (%p138_p2) target bundleno = 260 (0x104), region = 32  ;;  %614 = vmatprep.subr.bf16.mxu0 (!%p138_p2), %v683_v1  ;;  %622 = vmatprep.subr.bf16.mxu1 (!%p138_p2), %v683_v1  ;;  %v667_v4 = vld [vmem:[%s774_s1 + $0x8] sm:$0xff] (!%p138_p2)   ;;  %vm205_vm1 = vcmask (!%p138_p2), 261120   ;;  %v670_v5 = vld [vmem:[%s774_s1 + $0x30] sm:$0xff] (!%p138_p2)   ;;  %v672_v11 = vld [vmem:[%s774_s1 + $0x38] sm:$0xff] (!%p138_p2)  }
   0x7   : > { %615 = vmatpush3.bf16.msra.mxu0 (!%p138_p2), %v664_v0  ;;  %618 = vmatprep.mubr.msk.bf16.mxu0 (!%p138_p2), %vm684_vm0, %v683_v1  ;;  %v669_v15 = vld [vmem:[%s774_s1 + $0x20] sm:$0xff] (!%p138_p2)   ;;  %v671_v18 = vld [vmem:[%s774_s1 + $0x28] sm:$0xff] (!%p138_p2)  }
   0x8   : > { %623 = vmatpush3.bf16.msra.mxu1 (!%p138_p2), %v665_v2  ;;  %616 = vmatprep.subr.bf16.mxu0 (!%p138_p2), %v683_v1  ;;  %v673_v20 = vld [vmem:[%s774_s1 + $0x40] sm:$0xff] (!%p138_p2)   ;;  %v674_v21 = vld [vmem:[%s774_s1 + $0x48] sm:$0xff] (!%p138_p2)  }
   0x9   : > { %624 = vmatprep.subr.bf16.mxu1 (!%p138_p2), %v683_v1  ;;  %626 = vmatprep.mubr.msk.bf16.mxu1 (!%p138_p2), %vm684_vm0, %v683_v1  ;;  %v595_v43 = vld [vmem:[%s775_s2] ss:$0 sm:$0xff] (!%p138_p2) }
   0xb   : > { %617 = vmatpush3.bf16.msra.mxu0 (!%p138_p2), %v666_v3 }
   0xc   : > { %625 = vmatpush3.bf16.msra.mxu1 (!%p138_p2), %v667_v4  ;;  %630 = vmatprep.subr.bf16.mxu0 (!%p138_p2), %v683_v1 }
   0xd   : > { %s778_s13 = smov (!%p160_p3, %s555_s13), 1  ;;  %638 = vmatprep.subr.bf16.mxu1 %v683_v1 }
   0xe   : > { %s598_s22 = sshll.u32 %s778_s13, 3 }
   0xf   : > { %s164_s25 = scalar_lea.vmem %s773_s0, %s598_s22  ;;  %s168_s17 = scalar_lea.vmem %s776_s3, %s598_s22 }
  0x10   : > { %v170_v6 = vld [vmem:[%s164_s25] sm:$0xf]  ;;  %v171_v7 = vld [vmem:[%s164_s25 + $0x4] sm:$0x3] }
  0x11   : > { %v567_v8 = vcombine.low %v170_v6, %v171_v7  ;;  %627 = vmatmul.mubr.msk.bf16.vlgmr.msra.gmra.mrb[0].mxu1 %vm205_vm1, %v170_v6 }
  0x12   : > { %639 = vmatpush3.bf16.msra.mxu1 %v670_v5  ;;  %642 = vmatprep.mubr.msk.bf16.mxu1 %vm684_vm0, %v683_v1 }
  0x13   : > { %v187_v9 = vshrl.u32 %v567_v8, 16  ;;  %v189_v10 = vshll.u32 %v567_v8, 16  ;;  %640 = vmatprep.subr.bf16.mxu1 %v683_v1  ;;  %v309_v19 = vrot.slane %v567_v8, 1  ;;  %v435_v22 = vrot.slane %v567_v8, 2 }
  0x15   : > { %v191_v12 = vrot.slane %v189_v10, 1  ;;  %v371_v13 = vrot.slane %v187_v9, 1  ;;  %v372_v14 = vrot.slane %v189_v10, 2 }
  0x16   : > { %641 = vmatpush3.bf16.msra.mxu1 %v672_v11 }
  0x17   : > { %v192_v16 = vor.u32 %v191_v12, %v187_v9  ;;  %v373_v17 = vor.u32 %v372_v14, %v371_v13 }
  0x19   : > { %619 = vmatmul.mubr.msk.bf16.vlgmr.msra.gmra.mrb[0].mxu0 %vm205_vm1, %v192_v16  ;;  %643 = vmatmul.mubr.msk.bf16.vlgmr.msra.gmra.mrb[4].mxu1 %vm205_vm1, %v373_v17 }
  0x1a   : > { %631 = vmatpush3.bf16.msra.mxu0 %v669_v15  ;;  %634 = vmatprep.mubr.msk.bf16.mxu0 %vm684_vm0, %v683_v1 }
  0x1b   : > { %632 = vmatprep.subr.bf16.mxu0 %v683_v1 }
  0x1e   : > { %633 = vmatpush3.bf16.msra.mxu0 %v671_v18 }
  0x1f   : > { %646 = vmatprep.subr.bf16.mxu0 %v683_v1 }
  0x21   : > { %635 = vmatmul.mubr.msk.bf16.vlgmr.msra.gmra.mrb[4].mxu0 %vm205_vm1, %v309_v19 }
  0x22   : > { %647 = vmatpush3.bf16.msra.mxu0 %v673_v20  ;;  %650 = vmatprep.mubr.msk.bf16.mxu0 %vm684_vm0, %v683_v1 }
  0x23   : > { %648 = vmatprep.subr.bf16.mxu0 %v683_v1 }
  0x26   : > { %649 = vmatpush3.bf16.msra.mxu0 %v674_v21 }
  0x29   : > { %651 = vmatmul.mubr.msk.bf16.vlgmr.msra.gmra.mrb[8].mxu0 %vm205_vm1, %v435_v22 }
  0xe4   : > { %v298_v23 = vpop.f32.mrb[0].mxu1 }
  0xe5   : > { %v628_v24 = vpop.f32.mrb[1].mxu1 }
  0xe6   : > { %v301_v25 = vpop.f32.mrb[2].mxu1 }
  0xe7   : > { %v629_v26 = vpop.f32.mrb[3].mxu1 }
  0xec   : > { %v243_v27 = vpop.f32.mrb[0].mxu0  ;;  %v423_v31 = vpop.f32.mrb[4].mxu1 }
  0xed   : > { %v299_v28 = vadd.f32 %v298_v23, %v243_v27  ;;  %v620_v29 = vpop.f32.mrb[1].mxu0  ;;  %v644_v33 = vpop.f32.mrb[5].mxu1 }
  0xee   : > { %v246_v30 = vpop.f32.mrb[2].mxu0  ;;  %v426_v34 = vpop.f32.mrb[6].mxu1 }
  0xef   : > { %v621_v32 = vpop.f32.mrb[3].mxu0  ;;  %v645_v35 = vpop.f32.mrb[7].mxu1 }
  0xf4   : > { %v359_v36 = vpop.f32.mrb[4].mxu0 }
  0xf5   : > { %v365_v37 = vadd.f32 %v359_v36, %v299_v28  ;;  %v636_v38 = vpop.f32.mrb[5].mxu0 }
  0xf6   : > { %v362_v39 = vpop.f32.mrb[6].mxu0 }
  0xf7   : > { %v429_v40 = vadd.f32 %v423_v31, %v365_v37  ;;  %v637_v41 = vpop.f32.mrb[7].mxu0 }
  0xfc   : > { %v485_v42 = vpop.f32.mrb[8].mxu0 }
  0xfd   : > { %v491_v44 = vadd.f32 %v485_v42, %v429_v40  ;;  %v652_v45 = vpop.f32.mrb[9].mxu0 }
  0xfe   : > { %v488_v46 = vpop.f32.mrb[10].mxu0 }
  0xff   : > { %v499_v47 = vadd.f32 %v595_v43, %v491_v44  ;;  %v653_v48 = vpop.f32.mrb[11].mxu0 }
 0x101   : > { %v500_v49 = vmax.f32 %v499_v47, 0.0 }
 0x103   : > { %501 = vst.msk [vmem:[%s168_s17] sm:$0xff] %vm205_vm1, %v500_v49 }
 0x104 PF: > { %s13_s12 = sadd.s32 1, %s681_s12  }
 0x105   : > { %p10_p4 = scmp.ge.s32.totalorder %s13_s12, 4  }
 0x107   :  { %12 = sbr.rel (!%p10_p4) target bundleno = 1 (0x1), region = 66 }

// kernel: emodel_cnn_transformer_forward.33
= control target key start
LH: loop header
LB: loop body
LE: loop exit
PB: predicated region body
PF: predicated region fallthrough
CT: control target
= control target key end

     0   :  { %v178_v1 = vmov 0   ;;  %vm82_vm0 = vcmask 523264   ;;  %v27_v10 = vlaneseq  ;;  %vm141_vm1 = vcmask 1043456   ;;  %s235_s1 = inlined_call_operand.vmem [shape: bf16[64,192], index: 1, kind: input, shape index: {}]   ;;  %s236_s0 = inlined_call_operand.vmem [shape: bf16[16,64], index: 0, kind: input, shape index: {}]   ;;  %s237_s2 = inlined_call_operand.vmem [shape: f32[1,192], index: 2, kind: input, shape index: {}]   ;;  %s238_s3 = inlined_call_operand.vmem [shape: bf16[16,192], index: 3, kind: output, shape index: {}]  }
   0x1   :  { %v165_v0 = vld [vmem:[%s235_s1 + $0x4] ss:$8 sps:$4 sm:$0xff]   ;;  %118 = vmatprep.mubr.bf16.mxu0 %v178_v1  ;;  %v167_v2 = vld [vmem:[%s235_s1] ss:$8 sps:$4 sm:$0xff]   ;;  %v168_v3 = vld [vmem:[%s235_s1 + $0x14] ss:$8 sps:$4 sm:$0xff]  }
   0x2   :  { %86 = vmatprep.subr.bf16.mxu0 %v165_v0  ;;  %v170_v4 = vld [vmem:[%s235_s1 + $0x10] ss:$8 sps:$4 sm:$0xff]   ;;  %v171_v5 = vld [vmem:[%s235_s1 + $0x24] ss:$8 sps:$4 sm:$0xff]   ;;  %v173_v6 = vld [vmem:[%s235_s1 + $0x20] ss:$8 sps:$4 sm:$0xff]  }
   0x3   :  { %87 = vmatpush1.bf16.msra.mxu0 %v167_v2  ;;  %v174_v7 = vld [vmem:[%s235_s1 + $0x34] ss:$8 sps:$4 sm:$0xff]   ;;  %v176_v8 = vld [vmem:[%s235_s1 + $0x30] ss:$8 sps:$4 sm:$0xff]   ;;  %v177_v9 = vld [vmem:[%s236_s0] sm:$0xff]   ;;  %v28_v11 = vshrl.u32 %v27_v10, 7 }
   0x4   :  { %88 = vmatprep.subr.bf16.mxu0 %v168_v3  ;;  %v25_v13 = vld [vmem:[%s237_s2] sm:$0x3]  ;;  %vm142_vm2 = vcmask 523268  }
   0x5   :  { %v29_v12 = vsub.s32 0, %v28_v11  ;;  %v33_v14 = vsub.s32 1, %v28_v11  ;;  %vm143_vm3 = vmor %vm142_vm2, %vm141_vm1 }
   0x7   :  { %89 = vmatpush1.bf16.msra.mxu0 %v170_v4  ;;  %v30_v15 = vrot.slane %v25_v13, %v29_v12  ;;  %v34_v16 = vrot.slane %v25_v13, %v33_v14 }
   0x8   :  { %90 = vmatprep.subr.bf16.mxu0 %v171_v5 }
   0xb   :  { %91 = vmatpush1.bf16.msra.mxu0 %v173_v6 }
   0xc   :  { %92 = vmatprep.subr.bf16.mxu0 %v174_v7 }
   0xf   :  { %93 = vmatpush1.bf16.msra.mxu0 %v176_v8 }
  0x12   :  { %159 = vmatmul.mubr.msk.bf16.vlgmr.msra.gmra.mrb[0].mxu0 %vm82_vm0, %v177_v9 }
  0xe5   :  { %v120_v17 = vpop.f32.mrb[0].mxu0 }
  0xe6   :  { %v121_v18 = vadd.f32 %v120_v17, %v30_v15  ;;  %v122_v19 = vpop.f32.mrb[1].mxu0 }
  0xe7   :  { %v123_v20 = vadd.f32 %v122_v19, %v34_v16  ;;  %v124_v21 = vpop.f32.mrb[2].mxu0 }
  0xe8   :  { %v125_v22 = vadd.f32 %v124_v21, %v30_v15  ;;  %v126_v23 = vpop.f32.mrb[3].mxu0 }
  0xe9   :  { %v162_v24 = vpack.c.bf16 %v123_v20, %v121_v18  ;;  %v127_v25 = vadd.f32 %v126_v23, %v34_v16 }
  0xeb   :  { %144 = vst.msk [vmem:[%s238_s3] sm:$0xff] %vm143_vm3, %v162_v24  ;;  %v163_v26 = vpack.c.bf16 %v127_v25, %v125_v22 }
  0xed   :  { %145 = vst.msk [vmem:[%s238_s3 + $0x8] sm:$0xff] %vm143_vm3, %v163_v26 }

// kernel: emodel_cnn_transformer_forward.32
= control target key start
LH: loop header
LB: loop body
LE: loop exit
PB: predicated region body
PF: predicated region fallthrough
CT: control target
= control target key end

     0   :  { %s906_s15 = smov 0   ;;  %s1013_s0 = inlined_call_operand.vmem [shape: bf16[2,14,32], index: 0, kind: input, shape index: {}]   ;;  %s1014_s1 = inlined_call_operand.vmem [shape: bf16[7,32,64], index: 1, kind: input, shape index: {}]   ;;  %s1015_s2 = inlined_call_operand.vmem [shape: f32[1,64], index: 2, kind: input, shape index: {}]   ;;  %s1016_s3 = inlined_call_operand.vmem [shape: f32[8,64], index: 3, kind: input, shape index: {}]   ;;  %s1017_s4 = inlined_call_operand.vmem [shape: f32[2,8,64], index: 4, kind: output, shape index: {}]  }
   0x1 LB: > { %s711_s16 = sadd.s32 4294967295, %s877_s15   ;;  %p715_p0 = scmp.ge.s32.totalorder %s877_s15, 1  ;;  %s877_s15 = sphi %s906_s15, %s14_s15  }
   0x2   : > { %p162_p1 = scmp.lt.s32.totalorder %s877_s15, 3 }
   0x4   : > { %p163_p2 = pnand %p715_p0, %p162_p1 }
   0x5   : > { %v856_v0 = vld [vmem:[%s1014_s1 + $0x10] sm:$0xff] (!%p163_p2)   ;;  %v879_v1 = vmov (!%p163_p2), 0.0   ;;  %v857_v2 = vld [vmem:[%s1014_s1] sm:$0xff] (!%p163_p2)   ;;  %v858_v3 = vld [vmem:[%s1014_s1 + $0x18] sm:$0xff] (!%p163_p2)   ;;  %vm880_vm0 = vmmov (!%p163_p2), 0   ;;  %p187_p3 = scmp.lt.s32.totalorder (!%p163_p2), %s711_s16, 1 }
   0x6   : > { %166 = sbr.rel (%p163_p2) target bundleno = 270 (0x10e), region = 36  ;;  %790 = vmatprep.subr.bf16.mxu0 (!%p163_p2), %v879_v1  ;;  %798 = vmatprep.subr.bf16.mxu1 (!%p163_p2), %v879_v1  ;;  %v859_v4 = vld [vmem:[%s1014_s1 + $0x8] sm:$0xff] (!%p163_p2)   ;;  %vm232_vm1 = vcmask (!%p163_p2), 261120   ;;  %v862_v5 = vld [vmem:[%s1014_s1 + $0x30] sm:$0xff] (!%p163_p2)   ;;  %v864_v11 = vld [vmem:[%s1014_s1 + $0x38] sm:$0xff] (!%p163_p2)   ;;  %vm656_vm2 = vcmask (!%p163_p2), 523264  }
   0x7   : > { %791 = vmatpush3.bf16.msra.mxu0 (!%p163_p2), %v856_v0  ;;  %794 = vmatprep.mubr.msk.bf16.mxu0 (!%p163_p2), %vm880_vm0, %v879_v1  ;;  %v861_v15 = vld [vmem:[%s1014_s1 + $0x20] sm:$0xff] (!%p163_p2)   ;;  %v866_v18 = vld [vmem:[%s1014_s1 + $0x50] sm:$0xff] (!%p163_p2)   ;;  %v863_v19 = vld [vmem:[%s1014_s1 + $0x28] sm:$0xff] (!%p163_p2)  }
   0x8   : > { %799 = vmatpush3.bf16.msra.mxu1 (!%p163_p2), %v857_v2  ;;  %792 = vmatprep.subr.bf16.mxu0 (!%p163_p2), %v879_v1  ;;  %v868_v22 = vld [vmem:[%s1014_s1 + $0x58] sm:$0xff] (!%p163_p2)   ;;  %v865_v24 = vld [vmem:[%s1014_s1 + $0x40] sm:$0xff] (!%p163_p2)   ;;  %v867_v26 = vld [vmem:[%s1014_s1 + $0x48] sm:$0xff] (!%p163_p2)  }
   0x9   : > { %800 = vmatprep.subr.bf16.mxu1 (!%p163_p2), %v879_v1  ;;  %802 = vmatprep.mubr.msk.bf16.mxu1 (!%p163_p2), %vm880_vm0, %v879_v1  ;;  %v869_v28 = vld [vmem:[%s1014_s1 + $0x60] sm:$0xff] (!%p163_p2)   ;;  %v870_v29 = vld [vmem:[%s1014_s1 + $0x68] sm:$0xff] (!%p163_p2)  }
   0xa   : > { %v765_v61 = vld [vmem:[%s1015_s2] ss:$0 sm:$0xff] (!%p163_p2) }
   0xb   : > { %793 = vmatpush3.bf16.msra.mxu0 (!%p163_p2), %v858_v3  ;;  %v654_v3 = vld [vmem:[%s1016_s3] sm:$0xff] (!%p163_p2) }
   0xc   : > { %801 = vmatpush3.bf16.msra.mxu1 (!%p163_p2), %v859_v4  ;;  %806 = vmatprep.subr.bf16.mxu0 (!%p163_p2), %v879_v1 }
   0xd   : > { %s1019_s16 = smov (!%p187_p3, %s711_s16), 1  ;;  %814 = vmatprep.subr.bf16.mxu1 %v879_v1 }
   0xe   : > { %s768_s25 = sshll.u32 %s1019_s16, 3 }
   0xf   : > { %s191_s28 = scalar_lea.vmem %s1013_s0, %s768_s25  ;;  %s195_s6 = scalar_lea.vmem %s1017_s4, %s768_s25 }
  0x10   : > { %v197_v6 = vld [vmem:[%s191_s28] sm:$0xf]  ;;  %v198_v7 = vld [vmem:[%s191_s28 + $0x4] sm:$0x7] }
  0x11   : > { %v723_v8 = vcombine.low %v197_v6, %v198_v7  ;;  %803 = vmatmul.mubr.msk.bf16.vlgmr.msra.gmra.mrb[0].mxu1 %vm232_vm1, %v197_v6 }
  0x12   : > { %815 = vmatpush3.bf16.msra.mxu1 %v862_v5  ;;  %818 = vmatprep.mubr.msk.bf16.mxu1 %vm880_vm0, %v879_v1 }
  0x13   : > { %v214_v9 = vshrl.u32 %v723_v8, 16  ;;  %v216_v10 = vshll.u32 %v723_v8, 16  ;;  %816 = vmatprep.subr.bf16.mxu1 %v879_v1  ;;  %v336_v23 = vrot.slane %v723_v8, 1  ;;  %v462_v27 = vrot.slane %v723_v8, 2 }
  0x14   : > { %v588_v30 = vrot.slane %v723_v8, 3 }
  0x15   : > { %v218_v12 = vrot.slane %v216_v10, 1  ;;  %v398_v13 = vrot.slane %v214_v9, 1  ;;  %v399_v14 = vrot.slane %v216_v10, 2  ;;  %v524_v20 = vrot.slane %v214_v9, 2 }
  0x16   : > { %817 = vmatpush3.bf16.msra.mxu1 %v864_v11  ;;  %v525_v21 = vrot.slane %v216_v10, 3 }
  0x17   : > { %v219_v16 = vor.u32 %v218_v12, %v214_v9  ;;  %v400_v17 = vor.u32 %v399_v14, %v398_v13  ;;  %830 = vmatprep.subr.bf16.mxu1 %v879_v1 }
  0x18   : > { %v526_v25 = vor.u32 %v525_v21, %v524_v20 }
  0x19   : > { %795 = vmatmul.mubr.msk.bf16.vlgmr.msra.gmra.mrb[0].mxu0 %vm232_vm1, %v219_v16  ;;  %819 = vmatmul.mubr.msk.bf16.vlgmr.msra.gmra.mrb[4].mxu1 %vm232_vm1, %v400_v17 }
  0x1a   : > { %807 = vmatpush3.bf16.msra.mxu0 %v861_v15  ;;  %810 = vmatprep.mubr.msk.bf16.mxu0 %vm880_vm0, %v879_v1 }
  0x1b   : > { %808 = vmatprep.subr.bf16.mxu0 %v879_v1  ;;  %831 = vmatpush3.bf16.msra.mxu1 %v866_v18 }
  0x1c   : > { %834 = vmatprep.mubr.msk.bf16.mxu1 %vm880_vm0, %v879_v1  ;;  %832 = vmatprep.subr.bf16.mxu1 %v879_v1 }
  0x1e   : > { %809 = vmatpush3.bf16.msra.mxu0 %v863_v19 }
  0x1f   : > { %822 = vmatprep.subr.bf16.mxu0 %v879_v1  ;;  %833 = vmatpush3.bf16.msra.mxu1 %v868_v22 }
  0x21   : > { %811 = vmatmul.mubr.msk.bf16.vlgmr.msra.gmra.mrb[4].mxu0 %vm232_vm1, %v336_v23 }
  0x22   : > { %823 = vmatpush3.bf16.msra.mxu0 %v865_v24  ;;  %826 = vmatprep.mubr.msk.bf16.mxu0 %vm880_vm0, %v879_v1 }
  0x23   : > { %824 = vmatprep.subr.bf16.mxu0 %v879_v1  ;;  %835 = vmatmul.mubr.msk.bf16.vlgmr.msra.gmra.mrb[8].mxu1 %vm232_vm1, %v526_v25 }
  0x26   : > { %825 = vmatpush3.bf16.msra.mxu0 %v867_v26 }
  0x27   : > { %838 = vmatprep.subr.bf16.mxu0 %v879_v1 }
  0x29   : > { %827 = vmatmul.mubr.msk.bf16.vlgmr.msra.gmra.mrb[8].mxu0 %vm232_vm1, %v462_v27 }
  0x2a   : > { %839 = vmatpush3.bf16.msra.mxu0 %v869_v28  ;;  %842 = vmatprep.mubr.msk.bf16.mxu0 %vm880_vm0, %v879_v1 }
  0x2b   : > { %840 = vmatprep.subr.bf16.mxu0 %v879_v1 }
  0x2e   : > { %841 = vmatpush3.bf16.msra.mxu0 %v870_v29 }
  0x31   : > { %843 = vmatmul.mubr.msk.bf16.vlgmr.msra.gmra.mrb[12].mxu0 %vm232_vm1, %v588_v30 }
  0xe4   : > { %v325_v31 = vpop.f32.mrb[0].mxu1 }
  0xe5   : > { %v804_v32 = vpop.f32.mrb[1].mxu1 }
  0xe6   : > { %v328_v33 = vpop.f32.mrb[2].mxu1 }
  0xe7   : > { %v805_v34 = vpop.f32.mrb[3].mxu1 }
  0xec   : > { %v270_v35 = vpop.f32.mrb[0].mxu0  ;;  %v450_v39 = vpop.f32.mrb[4].mxu1 }
  0xed   : > { %v326_v36 = vadd.f32 %v325_v31, %v270_v35  ;;  %v796_v37 = vpop.f32.mrb[1].mxu0  ;;  %v820_v41 = vpop.f32.mrb[5].mxu1 }
  0xee   : > { %v273_v38 = vpop.f32.mrb[2].mxu0  ;;  %v453_v42 = vpop.f32.mrb[6].mxu1 }
  0xef   : > { %v797_v40 = vpop.f32.mrb[3].mxu0  ;;  %v821_v43 = vpop.f32.mrb[7].mxu1 }
  0xf4   : > { %v386_v44 = vpop.f32.mrb[4].mxu0 }
  0xf5   : > { %v392_v45 = vadd.f32 %v386_v44, %v326_v36  ;;  %v812_v46 = vpop.f32.mrb[5].mxu0 }
  0xf6   : > { %v389_v47 = vpop.f32.mrb[6].mxu0  ;;  %v576_v48 = vpop.f32.mrb[8].mxu1 }
  0xf7   : > { %v456_v49 = vadd.f32 %v450_v39, %v392_v45  ;;  %v813_v50 = vpop.f32.mrb[7].mxu0  ;;  %v836_v51 = vpop.f32.mrb[9].mxu1 }
  0xf8   : > { %v579_v52 = vpop.f32.mrb[10].mxu1 }
  0xf9   : > { %v837_v53 = vpop.f32.mrb[11].mxu1 }
  0xfc   : > { %v512_v54 = vpop.f32.mrb[8].mxu0 }
  0xfd   : > { %v518_v55 = vadd.f32 %v512_v54, %v456_v49  ;;  %v828_v56 = vpop.f32.mrb[9].mxu0 }
  0xfe   : > { %v515_v57 = vpop.f32.mrb[10].mxu0 }
  0xff   : > { %v582_v58 = vadd.f32 %v576_v48, %v518_v55  ;;  %v829_v59 = vpop.f32.mrb[11].mxu0 }
 0x104   : > { %v638_v60 = vpop.f32.mrb[12].mxu0 }
 0x105   : > { %v644_v62 = vadd.f32 %v638_v60, %v582_v58  ;;  %v844_v63 = vpop.f32.mrb[13].mxu0 }
 0x106   : > { %v641_v0 = vpop.f32.mrb[14].mxu0 }
 0x107   : > { %v652_v1 = vadd.f32 %v765_v61, %v644_v62  ;;  %v845_v2 = vpop.f32.mrb[15].mxu0 }
 0x109   : > { %v653_v4 = vmax.f32 %v652_v1, 0.0 }
 0x10b   : > { %v655_v5 = vadd.f32 %v654_v3, %v653_v4 }
 0x10d   : > { %657 = vst.msk [vmem:[%s195_s6] sm:$0xff] %vm656_vm2, %v655_v5 }
 0x10e PF: > { %s14_s15 = sadd.s32 1, %s877_s15  }
 0x10f   : > { %p11_p4 = scmp.ge.s32.totalorder %s14_s15, 4  }
 0x111   :  { %13 = sbr.rel (!%p11_p4) target bundleno = 1 (0x1), region = 72 }

// kernel: emodel_cnn_transformer_forward.45
= control target key start
LH: loop header
LB: loop body
LE: loop exit
PB: predicated region body
PF: predicated region fallthrough
CT: control target
= control target key end

     0   :  { %v160_v0 = vmov 0.0   ;;  %vm161_vm0 = vmmov 0   ;;  %vm61_vm1 = vcmask 523264   ;;  %s203_s1 = inlined_call_operand.vmem [shape: bf16[64,128], index: 1, kind: input, shape index: {}]   ;;  %s204_s0 = inlined_call_operand.vmem [shape: bf16[16,64], index: 0, kind: input, shape index: {}]   ;;  %s205_s2 = inlined_call_operand.vmem [shape: f32[1,128], index: 2, kind: input, shape index: {}]   ;;  %s206_s3 = inlined_call_operand.vmem [shape: bf16[16,128], index: 3, kind: output, shape index: {}]  }
   0x1   :  { %141 = vmatprep.subr.bf16.mxu0 %v160_v0  ;;  %v155_v1 = vld [vmem:[%s203_s1] sm:$0xff]   ;;  %149 = vmatprep.mubr.msk.bf16.mxu0 %vm161_vm0, %v160_v0  ;;  %v156_v2 = vld [vmem:[%s203_s1 + $0x8] sm:$0xff]   ;;  %v157_v3 = vld [vmem:[%s203_s1 + $0x10] sm:$0xff]  }
   0x2   :  { %142 = vmatpush3.bf16.msra.mxu0 %v155_v1  ;;  %v158_v4 = vld [vmem:[%s203_s1 + $0x18] sm:$0xff]   ;;  %v159_v5 = vld [vmem:[%s204_s0] sm:$0xff]  }
   0x3   :  { %143 = vmatprep.subr.bf16.mxu0 %v160_v0  ;;  %v120_v6 = vld [vmem:[%s205_s2] ss:$0 sm:$0xff] }
   0x6   :  { %144 = vmatpush3.bf16.msra.mxu0 %v156_v2 }
   0x7   :  { %145 = vmatprep.subr.bf16.mxu0 %v160_v0 }
   0xa   :  { %146 = vmatpush3.bf16.msra.mxu0 %v157_v3 }
   0xb   :  { %147 = vmatprep.subr.bf16.mxu0 %v160_v0 }
   0xe   :  { %148 = vmatpush3.bf16.msra.mxu0 %v158_v4 }
  0x11   :  { %150 = vmatmul.mubr.msk.bf16.vlgmr.msra.gmra.mrb[0].mxu0 %vm61_vm1, %v159_v5 }
  0xe4   :  { %v99_v7 = vpop.f32.mrb[0].mxu0 }
  0xe5   :  { %v151_v8 = vpop.f32.mrb[1].mxu0  ;;  %v100_v10 = vadd.f32 %v120_v6, %v99_v7 }
  0xe6   :  { %v102_v9 = vpop.f32.mrb[2].mxu0 }
  0xe7   :  { %v103_v11 = vadd.f32 %v120_v6, %v102_v9  ;;  %v152_v12 = vpop.f32.mrb[3].mxu0 }
  0xe9   :  { %v134_v13 = vpack.c.bf16 %v103_v11, %v100_v10 }
  0xeb   :  { %135 = vst [vmem:[%s206_s3] sm:$0xff] %v134_v13  }

// kernel: emodel_cnn_transformer_forward.34
= control target key start
LH: loop header
LB: loop body
LE: loop exit
PB: predicated region body
PF: predicated region fallthrough
CT: control target
= control target key end

     0   :  { %s784_s6 = smov 0   ;;  %s878_s0 = inlined_call_operand.vmem [shape: bf16[2,8,192], index: 0, kind: input, shape index: {}]   ;;  %s879_s1 = inlined_call_operand.vmem [shape: f32[2,8,64], index: 1, kind: output, shape index: {}]  }
   0x1 LB: > { %s637_s7 = sadd.s32 4294967295, %s763_s6   ;;  %p641_p0 = scmp.ge.s32.totalorder %s763_s6, 1  ;;  %s763_s6 = sphi %s784_s6, %s11_s6  }
   0x2   : > { %p87_p1 = scmp.lt.s32.totalorder %s763_s6, 3 }
   0x4   : > { %p88_p2 = pnand %p641_p0, %p87_p1 }
   0x5   : > { %p106_p3 = scmp.lt.s32.totalorder (!%p88_p2), %s637_s7, 1  ;;  %v765_v0 = vmov (!%p88_p2), 0.0   ;;  %vm766_vm0 = vmmov (!%p88_p2), 0   ;;  %s767_s12 = smov (!%p88_p2), 64   ;;  %vm122_vm1 = vcmask (!%p88_p2), 130048   ;;  %vm170_vm2 = vcmask (!%p88_p2), 64512  }
   0x6   : > { %91 = sbr.rel (%p88_p2) target bundleno = 1555 (0x613), region = 24  ;;  %674 = vmatprep.subr.bf16.mxu0 (!%p88_p2), %v765_v0  ;;  %676 = vmatprep.mubr.msk.bf16.mxu0 (!%p88_p2), %vm766_vm0, %v765_v0  ;;  %s768_s13 = smov (!%p88_p2), 48   ;;  %vm188_vm3 = vcmask (!%p88_p2), 1043456   ;;  %vm578_vm4 = vcmask (!%p88_p2), 261120   ;;  %vm580_vm5 = vcmask (!%p88_p2), 392192   ;;  %vm582_vm6 = vcmask (!%p88_p2), 523264  }
   0x7   : > { %680 = vmatprep.subr.bf16.mxu1 (!%p88_p2), %v765_v0  ;;  %682 = vmatprep.mubr.msk.bf16.mxu1 (!%p88_p2), %vm766_vm0, %v765_v0  ;;  %s769_s14 = smov (!%p88_p2), 80   ;;  %s770_s15 = smov (!%p88_p2), 112  }
   0x8   : > { %s771_s16 = smov (!%p88_p2), 32   ;;  %s772_s17 = smov (!%p88_p2), 96  }
   0x9   : > { %s773_s18 = smov (!%p88_p2), 16  }
   0xd   : > { %s881_s7 = smov (!%p106_p3, %s637_s7), 1 }
   0xe   : > { %s657_s8 = sshll.u32 %s881_s7, 3 }
   0xf   : > { %s110_s11 = scalar_lea.vmem %s878_s0, %s657_s8  ;;  %s114_s21 = scalar_lea.vmem %s879_s1, %s657_s8 }
  0x10   : > { %v116_v1 = vld [vmem:[%s110_s11] sm:$0xff] }
  0x11   : > { %v645_v2 = vcombine.low %v116_v1, %v116_v1  ;;  %v815_v16 = vcombine.high %v116_v1, %v116_v1 }
  0x13   : > { %120 = vrot.lane.b32.xlu0 %v645_v2, %s767_s12  ;;  %234 = vrot.lane.b32.xlu1 %v645_v2, %s768_s13  ;;  %v190_v17 = vsel %vm188_vm3, %v815_v16, 0 }
  0x14   : > { %681 = vmatpush3.bf16.msra.mxu1 %v190_v17 }
  0x15   : > { %686 = vmatprep.subr.bf16.mxu1 %v765_v0 }
  0x85   : > { %v121_v3 = vpop.permute.xlu0 %120  ;;  %v235_v18 = vpop.permute.xlu1 %234 }
  0x86   : > { %v127_v4 = vsel %vm122_vm1, %v121_v3, 0  ;;  %v240_v25 = vsel %vm122_vm1, %v235_v18, 0 }
  0x87   : > { %675 = vmatpush3.bf16.xpose.msra.mxu0 %v127_v4 }
  0x88   : > { %692 = vmatprep.subr.bf16.mxu0 %v765_v0 }
  0x8e   : > { %677 = vmatmul.mubr.msk.bf16.vlgmr.msra.gmra.mrb[0].mxu0 %vm122_vm1, %v116_v1 }
  0x8f   : > { %694 = vmatprep.mubr.msk.bf16.mxu0 %vm766_vm0, %v765_v0 }
 0x161   : > { %v163_v5 = vpop.f32.mrb[0].mxu0 }
 0x162   : > { %v169_v6 = vmul.f32 0.25, %v163_v5  ;;  %v678_v7 = vpop.f32.mrb[1].mxu0 }
 0x163   : > { %v166_v8 = vpop.f32.mrb[2].mxu0 }
 0x164   : > { %v679_v9 = vpop.f32.mrb[3].mxu0  ;;  %v171_v10 = vsel %vm170_vm2, %v169_v6, -inf }
 0x165   : > { %172 = vmax.xlane.f32.xlu0 %v171_v10 }
 0x17b   : > { %454 = vrot.lane.b32.xlu0 %v645_v2, %s769_s14 }
 0x1f2   : > { %v173_v11 = vpop.xlane.xlu0 %172 }
 0x1f3   : > { %v174_v12 = vsub.f32 %v169_v6, %v173_v11 }
 0x1f5   : > { %v175_v13 = vmul.f32 1.442695, %v174_v12 }
 0x1f6   : > { %v455_v30 = vpop.permute.xlu0 %454 }
 0x1f7   : > { %741 = vpow2.f32 %v175_v13 }
 0x201   : > { %v742_v14 = vpop.eup %741 }
 0x202   : > { %v177_v15 = vsel %vm170_vm2, %v742_v14, 0.0 }
 0x203   : > { %178 = vadd.xlane.f32.xlu1 %v177_v15 }
 0x214   : > { %232 = vrot.lane.b32.xlu1 %v645_v2, %s770_s15 }
 0x218   : > { %345 = vrot.lane.b32.xlu1 %v645_v2, %s771_s16 }
 0x21c   : > { %343 = vrot.lane.b32.xlu1 %v645_v2, %s772_s17 }
 0x220   : > { %456 = vrot.lane.b32.xlu1 %v645_v2, %s773_s18 }
 0x290   : > { %v179_v19 = vpop.xlane.xlu1 %178 }
 0x291   : > { %743 = vrcp.f32 %v179_v19 }
 0x294   : > { %v233_v20 = vpop.permute.xlu1 %232 }
 0x298   : > { %v346_v24 = vpop.permute.xlu1 %345 }
 0x299   : > { %v351_v27 = vsel %vm122_vm1, %v346_v24, 0 }
 0x29b   : > { %v744_v21 = vpop.eup %743 }
 0x29c   : > { %v181_v22 = vmul.f32 %v744_v21, %v742_v14  ;;  %v344_v26 = vpop.permute.xlu1 %343 }
 0x29e   : > { %v182_v23 = vpack.c.bf16 %v181_v22, %v181_v22 }
 0x2a0   : > { %683 = vmatmul.mubr.msk.bf16.vlgmr.msra.gmra.mrb[0].mxu1 %vm170_vm2, %v182_v23  ;;  %v457_v28 = vpop.permute.xlu1 %456 }
 0x2a1   : > { %687 = vmatpush3.bf16.xpose.msra.mxu1 %v240_v25  ;;  %688 = vmatprep.mubr.msk.bf16.mxu1 %vm766_vm0, %v765_v0  ;;  %v462_v29 = vsel %vm122_vm1, %v457_v28, 0 }
 0x2a2   : > { %698 = vmatprep.subr.bf16.mxu1 %v765_v0 }
 0x2a8   : > { %689 = vmatmul.mubr.msk.bf16.vlgmr.msra.gmra.mrb[4].mxu1 %vm122_vm1, %v233_v20 }
 0x2a9   : > { %699 = vmatpush3.bf16.xpose.msra.mxu1 %v351_v27  ;;  %700 = vmatprep.mubr.msk.bf16.mxu1 %vm766_vm0, %v765_v0 }
 0x2aa   : > { %710 = vmatprep.subr.bf16.mxu1 %v765_v0 }
 0x2b0   : > { %701 = vmatmul.mubr.msk.bf16.vlgmr.msra.gmra.mrb[8].mxu1 %vm122_vm1, %v344_v26 }
 0x2b1   : > { %711 = vmatpush3.bf16.xpose.msra.mxu1 %v462_v29  ;;  %712 = vmatprep.mubr.msk.bf16.mxu1 %vm766_vm0, %v765_v0 }
 0x2b8   : > { %713 = vmatmul.mubr.msk.bf16.vlgmr.msra.gmra.mrb[12].mxu1 %vm122_vm1, %v455_v30 }
 0x373   : > { %v839_v31 = vpop.f32.mrb[0].mxu1 }
 0x374   : > { %v684_v32 = vpop.f32.mrb[1].mxu1 }
 0x375   : > { %v229_v33 = vpop.f32.mrb[2].mxu1 }
 0x376   : > { %v685_v34 = vpop.f32.mrb[3].mxu1 }
 0x37b   : > { %v276_v35 = vpop.f32.mrb[4].mxu1 }
 0x37c   : > { %v282_v36 = vmul.f32 0.25, %v276_v35  ;;  %v690_v37 = vpop.f32.mrb[5].mxu1 }
 0x37d   : > { %v279_v38 = vpop.f32.mrb[6].mxu1 }
 0x37e   : > { %v691_v39 = vpop.f32.mrb[7].mxu1  ;;  %v283_v40 = vsel %vm170_vm2, %v282_v36, -inf }
 0x37f   : > { %284 = vmax.xlane.f32.xlu1 %v283_v40 }
 0x383   : > { %v387_v41 = vpop.f32.mrb[8].mxu1 }
 0x384   : > { %v393_v42 = vmul.f32 0.25, %v387_v41  ;;  %v702_v43 = vpop.f32.mrb[9].mxu1 }
 0x385   : > { %v390_v44 = vpop.f32.mrb[10].mxu1 }
 0x386   : > { %v703_v45 = vpop.f32.mrb[11].mxu1  ;;  %v394_v46 = vsel %vm170_vm2, %v393_v42, -inf }
 0x387   : > { %395 = vmax.xlane.f32.xlu0 %v394_v46 }
 0x38b   : > { %v498_v47 = vpop.f32.mrb[12].mxu1 }
 0x38c   : > { %v504_v48 = vmul.f32 0.25, %v498_v47  ;;  %v714_v49 = vpop.f32.mrb[13].mxu1 }
 0x38d   : > { %v501_v50 = vpop.f32.mrb[14].mxu1 }
 0x38e   : > { %v715_v51 = vpop.f32.mrb[15].mxu1  ;;  %v505_v52 = vsel %vm170_vm2, %v504_v48, -inf }
 0x38f   : > { %506 = vmax.xlane.f32.xlu1 %v505_v52 }
 0x39d   : > { %295 = vrot.lane.b32.xlu0 %v815_v16, %s770_s15 }
 0x3a0   : > { %406 = vrot.lane.b32.xlu1 %v815_v16, %s772_s17 }
 0x40c   : > { %v285_v53 = vpop.xlane.xlu1 %284 }
 0x40d   : > { %v286_v54 = vsub.f32 %v282_v36, %v285_v53 }
 0x40f   : > { %v287_v55 = vmul.f32 1.442695, %v286_v54 }
 0x411   : > { %745 = vpow2.f32 %v287_v55 }
 0x414   : > { %v396_v56 = vpop.xlane.xlu0 %395 }
 0x415   : > { %v397_v57 = vsub.f32 %v393_v42, %v396_v56 }
 0x417   : > { %v398_v58 = vmul.f32 1.442695, %v397_v57 }
 0x418   : > { %v296_v5 = vpop.permute.xlu0 %295 }
 0x419   : > { %747 = vpow2.f32 %v398_v58  ;;  %v301_v6 = vsel %vm188_vm3, %v296_v5, 0 }
 0x41a   : > { %693 = vmatpush3.bf16.msra.mxu0 %v301_v6 }
 0x41b   : > { %v746_v59 = vpop.eup %745  ;;  %704 = vmatprep.subr.bf16.mxu0 %v765_v0 }
 0x41c   : > { %v507_v60 = vpop.xlane.xlu1 %506  ;;  %v289_v61 = vsel %vm170_vm2, %v746_v59, 0.0 }
 0x41d   : > { %v508_v62 = vsub.f32 %v504_v48, %v507_v60  ;;  %290 = vadd.xlane.f32.xlu1 %v289_v61 }
 0x41f   : > { %v509_v63 = vmul.f32 1.442695, %v508_v62 }
 0x420   : > { %v407_v7 = vpop.permute.xlu1 %406 }
 0x421   : > { %749 = vpow2.f32 %v509_v63  ;;  %v412_v13 = vsel %vm188_vm3, %v407_v7, 0 }
 0x423   : > { %v748_v1 = vpop.eup %747 }
 0x424   : > { %v400_v2 = vsel %vm170_vm2, %v748_v1, 0.0 }
 0x425   : > { %401 = vadd.xlane.f32.xlu1 %v400_v2 }
 0x42b   : > { %v750_v3 = vpop.eup %749 }
 0x42c   : > { %v511_v4 = vsel %vm170_vm2, %v750_v3, 0.0 }
 0x42d   : > { %512 = vadd.xlane.f32.xlu1 %v511_v4 }
 0x43e   : > { %517 = vrot.lane.b32.xlu1 %v815_v16, %s769_s14 }
 0x4aa   : > { %v291_v8 = vpop.xlane.xlu1 %290 }
 0x4ab   : > { %751 = vrcp.f32 %v291_v8 }
 0x4b2   : > { %v402_v9 = vpop.xlane.xlu1 %401 }
 0x4b3   : > { %753 = vrcp.f32 %v402_v9 }
 0x4b5   : > { %v752_v10 = vpop.eup %751 }
 0x4b6   : > { %v293_v11 = vmul.f32 %v752_v10, %v746_v59 }
 0x4b8   : > { %v294_v12 = vpack.c.bf16 %v293_v11, %v293_v11 }
 0x4ba   : > { %v513_v14 = vpop.xlane.xlu1 %512  ;;  %695 = vmatmul.mubr.msk.bf16.vlgmr.msra.gmra.mrb[4].mxu0 %vm170_vm2, %v294_v12 }
 0x4bb   : > { %755 = vrcp.f32 %v513_v14  ;;  %705 = vmatpush3.bf16.msra.mxu0 %v412_v13  ;;  %706 = vmatprep.mubr.msk.bf16.mxu0 %vm766_vm0, %v765_v0 }
 0x4bc   : > { %716 = vmatprep.subr.bf16.mxu0 %v765_v0 }
 0x4bd   : > { %v754_v15 = vpop.eup %753 }
 0x4be   : > { %v404_v16 = vmul.f32 %v754_v15, %v748_v1  ;;  %v518_v17 = vpop.permute.xlu1 %517 }
 0x4bf   : > { %v523_v18 = vsel %vm188_vm3, %v518_v17, 0 }
 0x4c0   : > { %v405_v19 = vpack.c.bf16 %v404_v16, %v404_v16 }
 0x4c2   : > { %707 = vmatmul.mubr.msk.bf16.vlgmr.msra.gmra.mrb[8].mxu0 %vm170_vm2, %v405_v19 }
 0x4c3   : > { %717 = vmatpush3.bf16.msra.mxu0 %v523_v18  ;;  %718 = vmatprep.mubr.msk.bf16.mxu0 %vm766_vm0, %v765_v0 }
 0x4c5   : > { %v756_v20 = vpop.eup %755 }
 0x4c6   : > { %v515_v21 = vmul.f32 %v756_v20, %v750_v3 }
 0x4c8   : > { %v516_v22 = vpack.c.bf16 %v515_v21, %v515_v21 }
 0x4ca   : > { %719 = vmatmul.mubr.msk.bf16.vlgmr.msra.gmra.mrb[12].mxu0 %vm170_vm2, %v516_v22 }
 0x58d   : > { %v337_v23 = vpop.f32.mrb[4].mxu0 }
 0x58e   : > { %566 = vrot.lane.b32.xlu0 %v337_v23, %s773_s18  ;;  %v696_v24 = vpop.f32.mrb[5].mxu0 }
 0x58f   : > { %v340_v25 = vpop.f32.mrb[6].mxu0 }
 0x590   : > { %v697_v26 = vpop.f32.mrb[7].mxu0 }
 0x595   : > { %v448_v27 = vpop.f32.mrb[8].mxu0 }
 0x596   : > { %570 = vrot.lane.b32.xlu1 %v448_v27, %s771_s16  ;;  %v708_v28 = vpop.f32.mrb[9].mxu0 }
 0x597   : > { %v451_v29 = vpop.f32.mrb[10].mxu0 }
 0x598   : > { %v709_v30 = vpop.f32.mrb[11].mxu0 }
 0x59d   : > { %v559_v32 = vpop.f32.mrb[12].mxu0 }
 0x59e   : > { %574 = vrot.lane.b32.xlu0 %v559_v32, %s768_s13  ;;  %v720_v0 = vpop.f32.mrb[13].mxu0 }
 0x59f   : > { %v562_v33 = vpop.f32.mrb[14].mxu0 }
 0x5a0   : > { %v721_v34 = vpop.f32.mrb[15].mxu0 }
 0x600   : > { %v567_v35 = vpop.permute.xlu0 %566 }
 0x601   : > { %v577_v37 = vsel %vm122_vm1, %v839_v31, %v567_v35 }
 0x608   : > { %v571_v36 = vpop.permute.xlu1 %570 }
 0x609   : > { %v579_v38 = vsel %vm578_vm4, %v577_v37, %v571_v36 }
 0x610   : > { %v575_v39 = vpop.permute.xlu0 %574 }
 0x611   : > { %v581_v40 = vsel %vm580_vm5, %v579_v38, %v575_v39 }
 0x612   : > { %583 = vst.msk [vmem:[%s114_s21] sm:$0xff] %vm582_vm6, %v581_v40 }
 0x613 PF: > { %s11_s6 = sadd.s32 1, %s763_s6  }
 0x614   : > { %p8_p4 = scmp.ge.s32.totalorder %s11_s6, 4  }
 0x616   :  { %10 = sbr.rel (!%p8_p4) target bundleno = 1 (0x1), region = 54 }

// kernel: emodel_cnn_transformer_forward.36
= control target key start
LH: loop header
LB: loop body
LE: loop exit
PB: predicated region body
PF: predicated region fallthrough
CT: control target
= control target key end

     0   :  { %v455_v1 = vmov 0   ;;  %vm90_vm0 = vcmask 523264   ;;  %v40_v28 = vlaneseq  ;;  %s607_s1 = inlined_call_operand.vmem [shape: bf16[64,256], index: 1, kind: input, shape index: {}]   ;;  %s608_s3 = inlined_call_operand.vmem [shape: bf16[256,64], index: 3, kind: input, shape index: {}]   ;;  %s609_s0 = inlined_call_operand.vmem [shape: f32[16,64], index: 0, kind: input, shape index: {}]   ;;  %s610_s2 = inlined_call_operand.vmem [shape: f32[1,256], index: 2, kind: input, shape index: {}]   ;;  %s611_s4 = inlined_call_operand.vmem [shape: f32[1,64], index: 4, kind: input, shape index: {}]   ;;  %s612_s5 = inlined_call_operand.vmem [shape: f32[1,64], index: 5, kind: input, shape index: {}]   ;;  %s613_s6 = inlined_call_operand.vmem [shape: f32[1,64], index: 6, kind: input, shape index: {}]   ;;  %s614_s7 = inlined_call_operand.vmem [shape: f32[16,64], index: 7, kind: output, shape index: {}]  }
   0x1   :  { %v423_v0 = vld [vmem:[%s607_s1 + $0x4] ss:$8 sps:$4 sm:$0xff]   ;;  %126 = vmatprep.mubr.bf16.mxu0 %v455_v1  ;;  %v425_v2 = vld [vmem:[%s607_s1] ss:$8 sps:$4 sm:$0xff]   ;;  %v426_v3 = vld [vmem:[%s607_s1 + $0x14] ss:$8 sps:$4 sm:$0xff]  }
   0x2   :  { %94 = vmatprep.subr.bf16.mxu0 %v423_v0  ;;  %v428_v4 = vld [vmem:[%s607_s1 + $0x10] ss:$8 sps:$4 sm:$0xff]   ;;  %v429_v5 = vld [vmem:[%s607_s1 + $0x24] ss:$8 sps:$4 sm:$0xff]   ;;  %v431_v6 = vld [vmem:[%s607_s1 + $0x20] ss:$8 sps:$4 sm:$0xff]  }
   0x3   :  { %95 = vmatpush1.bf16.msra.mxu0 %v425_v2  ;;  %v432_v7 = vld [vmem:[%s607_s1 + $0x34] ss:$8 sps:$4 sm:$0xff]   ;;  %v435_v8 = vld [vmem:[%s608_s3 + $0x40] sm:$0xff]   ;;  %v437_v10 = vld [vmem:[%s608_s3 + $0x48] sm:$0xff]   ;;  %v41_v29 = vshrl.u32 %v40_v28, 7 }
   0x4   :  { %96 = vmatprep.subr.bf16.mxu0 %v426_v3  ;;  %v436_v9 = vld [vmem:[%s608_s3] sm:$0xff]   ;;  %400 = vmatprep.subr.bf16.mxu1 %v435_v8  ;;  %v434_v11 = vld [vmem:[%s607_s1 + $0x30] ss:$8 sps:$4 sm:$0xff]   ;;  %v438_v13 = vld [vmem:[%s608_s3 + $0x8] sm:$0xff]  }
   0x5   :  { %v532_v12 = vld [vmem:[%s609_s0] sm:$0xff]  ;;  %401 = vmatpush3.bf16.msra.mxu1 %v436_v9  ;;  %v439_v14 = vld [vmem:[%s608_s3 + $0x50] sm:$0xff]   ;;  %v543_v15 = vld [vmem:[%s609_s0 + $0x8] sm:$0xff]  ;;  %v42_v30 = vsub.s32 0, %v41_v29  ;;  %v46_v32 = vsub.s32 1, %v41_v29 }
   0x6   :  { %402 = vmatprep.subr.bf16.mxu1 %v437_v10  ;;  %v440_v16 = vld [vmem:[%s608_s3 + $0x10] sm:$0xff]   ;;  %v29_v17 = vpack.c.bf16 %v543_v15, %v532_v12  ;;  %v441_v18 = vld [vmem:[%s608_s3 + $0x58] sm:$0xff]   ;;  %v443_v20 = vld [vmem:[%s608_s3 + $0x60] sm:$0xff]  }
   0x7   :  { %97 = vmatpush1.bf16.msra.mxu0 %v428_v4  ;;  %v442_v19 = vld [vmem:[%s608_s3 + $0x18] sm:$0xff]   ;;  %v444_v21 = vld [vmem:[%s608_s3 + $0x20] sm:$0xff]   ;;  %v445_v22 = vld [vmem:[%s608_s3 + $0x68] sm:$0xff]  }
   0x8   :  { %98 = vmatprep.subr.bf16.mxu0 %v429_v5  ;;  %v446_v23 = vld [vmem:[%s608_s3 + $0x28] sm:$0xff]   ;;  %v447_v24 = vld [vmem:[%s608_s3 + $0x70] sm:$0xff]   ;;  %v449_v26 = vld [vmem:[%s608_s3 + $0x78] sm:$0xff]  }
   0x9   :  { %403 = vmatpush3.bf16.msra.mxu1 %v438_v13  ;;  %v448_v25 = vld [vmem:[%s608_s3 + $0x30] sm:$0xff]   ;;  %v450_v27 = vld [vmem:[%s608_s3 + $0x38] sm:$0xff]   ;;  %v38_v31 = vld [vmem:[%s610_s2] sm:$0x3] }
   0xa   :  { %404 = vmatprep.subr.bf16.mxu1 %v439_v14  ;;  %v43_v33 = vrot.slane %v38_v31, %v42_v30  ;;  %v47_v34 = vrot.slane %v38_v31, %v46_v32  ;;  %v381_v50 = vld [vmem:[%s611_s4] ss:$0 sm:$0xff] }
   0xb   :  { %99 = vmatpush1.bf16.msra.mxu0 %v431_v6 }
   0xc   :  { %100 = vmatprep.subr.bf16.mxu0 %v432_v7 }
   0xd   :  { %405 = vmatpush3.bf16.msra.mxu1 %v440_v16 }
   0xe   :  { %406 = vmatprep.subr.bf16.mxu1 %v441_v18 }
   0xf   :  { %101 = vmatpush1.bf16.msra.mxu0 %v434_v11 }
  0x11   :  { %407 = vmatpush3.bf16.msra.mxu1 %v442_v19 }
  0x12   :  { %380 = vmatmul.mubr.msk.bf16.vlgmr.msra.gmra.mrb[0].mxu0 %vm90_vm0, %v29_v17  ;;  %408 = vmatprep.subr.bf16.mxu1 %v443_v20  ;;  %v399_v17 = vld [vmem:[%s613_s6] ss:$0 sm:$0xff] }
  0x15   :  { %409 = vmatpush3.bf16.msra.mxu1 %v444_v21 }
  0x16   :  { %410 = vmatprep.subr.bf16.mxu1 %v445_v22 }
  0x19   :  { %411 = vmatpush3.bf16.msra.mxu1 %v446_v23 }
  0x1a   :  { %412 = vmatprep.subr.bf16.mxu1 %v447_v24 }
  0x1d   :  { %413 = vmatpush3.bf16.msra.mxu1 %v448_v25 }
  0x1e   :  { %414 = vmatprep.subr.bf16.mxu1 %v449_v26 }
  0x21   :  { %415 = vmatpush3.bf16.msra.mxu1 %v450_v27 }
  0xe5   :  { %v128_v35 = vpop.f32.mrb[0].mxu0 }
  0xe6   :  { %v129_v36 = vadd.f32 %v128_v35, %v43_v33  ;;  %v130_v37 = vpop.f32.mrb[1].mxu0 }
  0xe7   :  { %v131_v38 = vadd.f32 %v130_v37, %v47_v34  ;;  %v132_v39 = vpop.f32.mrb[2].mxu0 }
  0xe8   :  { %v133_v40 = vadd.f32 %v132_v39, %v43_v33  ;;  %v134_v41 = vpop.f32.mrb[3].mxu0  ;;  %v137_v43 = vmax.f32 %v129_v36, 0.0 }
  0xe9   :  { %v135_v42 = vadd.f32 %v134_v41, %v47_v34  ;;  %v138_v45 = vmax.f32 %v131_v38, 0.0 }
  0xea   :  { %v139_v44 = vmax.f32 %v133_v40, 0.0 }
  0xeb   :  { %v140_v46 = vmax.f32 %v135_v42, 0.0 }
  0xec   :  { %v141_v47 = vpack.c.bf16 %v139_v44, %v137_v43 }
  0xed   :  { %v142_v48 = vpack.c.bf16 %v140_v46, %v138_v45 }
  0xef   :  { %310 = vmatprep.mubr.bf16.mxu1 %v142_v48 }
  0xf0   :  { %311 = vmatmul.mubr.bf16.vlgmr.msra.gmra.mrb[0].mxu1 %v141_v47 }
 0x1c3   :  { %v416_v49 = vpop.f32.mrb[0].mxu1 }
 0x1c4   :  { %v417_v51 = vpop.f32.mrb[1].mxu1 }
 0x1c5   :  { %v418_v52 = vadd.f32 %v417_v51, %v416_v49  ;;  %v419_v53 = vpop.f32.mrb[2].mxu1 }
 0x1c6   :  { %v420_v54 = vpop.f32.mrb[3].mxu1 }
 0x1c7   :  { %v313_v55 = vadd.f32 %v418_v52, %v381_v50  ;;  %v421_v56 = vadd.f32 %v420_v54, %v419_v53 }
 0x1c9   :  { %v316_v57 = vadd.f32 %v421_v56, %v381_v50  ;;  %v319_v58 = vadd.f32 %v313_v55, %v532_v12 }
 0x1cb   :  { %v321_v59 = vsel %vm90_vm0, %v319_v58, 0.0  ;;  %v320_v60 = vadd.f32 %v316_v57, %v543_v15  ;;  %v398_v15 = vld [vmem:[%s612_s5] ss:$0 sm:$0xff] }
 0x1cc   :  { %322 = vadd.xlane.f32.xlu0 %v321_v59 }
 0x1cd   :  { %v324_v61 = vsel %vm90_vm0, %v320_v60, 0.0 }
 0x1d0   :  { %325 = vadd.xlane.f32.xlu0 %v324_v61 }
 0x259   :  { %v323_v62 = vpop.xlane.xlu0 %322 }
 0x25a   :  { %v328_v63 = vmul.f32 0.015625, %v323_v62 }
 0x25c   :  { %v330_v0 = vsub.f32 %v319_v58, %v328_v63 }
 0x25d   :  { %v326_v1 = vpop.xlane.xlu0 %325 }
 0x25e   :  { %v329_v2 = vmul.f32 0.015625, %v326_v1  ;;  %v332_v3 = vmul.f32 %v330_v0, %v330_v0 }
 0x260   :  { %v331_v4 = vsub.f32 %v320_v60, %v329_v2  ;;  %v334_v5 = vsel %vm90_vm0, %v332_v3, 0.0 }
 0x261   :  { %335 = vadd.xlane.f32.xlu1 %v334_v5 }
 0x262   :  { %v333_v6 = vmul.f32 %v331_v4, %v331_v4 }
 0x264   :  { %v337_v7 = vsel %vm90_vm0, %v333_v6, 0.0 }
 0x265   :  { %338 = vadd.xlane.f32.xlu1 %v337_v7 }
 0x2ee   :  { %v336_v8 = vpop.xlane.xlu1 %335 }
 0x2ef   :  { %v340_v9 = vmul.f32 0.015625, %v336_v8 }
 0x2f1   :  { %v342_v10 = vadd.f32 1e-05, %v340_v9 }
 0x2f2   :  { %v339_v11 = vpop.xlane.xlu1 %338 }
 0x2f3   :  { %451 = vrsqrt.f32 %v342_v10  ;;  %v341_v12 = vmul.f32 0.015625, %v339_v11 }
 0x2f5   :  { %v343_v13 = vadd.f32 1e-05, %v341_v12 }
 0x2f7   :  { %453 = vrsqrt.f32 %v343_v13 }
 0x2fd   :  { %v452_v14 = vpop.eup %451 }
 0x2fe   :  { %v346_v16 = vmul.f32 %v452_v14, %v330_v0 }
 0x300   :  { %v355_v18 = vmul.f32 %v398_v15, %v346_v16 }
 0x301   :  { %v454_v19 = vpop.eup %453 }
 0x302   :  { %v364_v20 = vadd.f32 %v399_v17, %v355_v18  ;;  %v347_v21 = vmul.f32 %v454_v19, %v331_v4 }
 0x304   :  { %366 = vst.msk [vmem:[%s614_s7] sm:$0xff] %vm90_vm0, %v364_v20  ;;  %v356_v22 = vmul.f32 %v398_v15, %v347_v21 }
 0x306   :  { %v365_v23 = vadd.f32 %v399_v17, %v356_v22 }
 0x308   :  { %367 = vst.msk [vmem:[%s614_s7 + $0x8] sm:$0xff] %vm90_vm0, %v365_v23 }

// kernel: emodel_cnn_transformer_forward.35
= control target key start
LH: loop header
LB: loop body
LE: loop exit
PB: predicated region body
PF: predicated region fallthrough
CT: control target
= control target key end

     0   :  { %v201_v0 = vmov 0.0   ;;  %vm202_vm0 = vmmov 0   ;;  %vm66_vm1 = vcmask 523264   ;;  %s284_s1 = inlined_call_operand.vmem [shape: bf16[64,64], index: 1, kind: input, shape index: {}]   ;;  %s285_s0 = inlined_call_operand.vmem [shape: f32[16,64], index: 0, kind: input, shape index: {}]   ;;  %s286_s2 = inlined_call_operand.vmem [shape: f32[1,64], index: 2, kind: input, shape index: {}]   ;;  %s287_s3 = inlined_call_operand.vmem [shape: f32[16,64], index: 3, kind: input, shape index: {}]   ;;  %s288_s4 = inlined_call_operand.vmem [shape: f32[1,64], index: 4, kind: input, shape index: {}]   ;;  %s289_s5 = inlined_call_operand.vmem [shape: f32[1,64], index: 5, kind: input, shape index: {}]   ;;  %s290_s6 = inlined_call_operand.vmem [shape: f32[16,64], index: 6, kind: output, shape index: {}]  }
   0x1   :  { %179 = vmatprep.subr.bf16.mxu0 %v201_v0  ;;  %v193_v1 = vld [vmem:[%s284_s1] sm:$0xff]   ;;  %187 = vmatprep.mubr.msk.bf16.mxu0 %vm202_vm0, %v201_v0  ;;  %v194_v2 = vld [vmem:[%s284_s1 + $0x8] sm:$0xff]   ;;  %v195_v3 = vld [vmem:[%s284_s1 + $0x10] sm:$0xff]  }
   0x2   :  { %180 = vmatpush3.bf16.msra.mxu0 %v193_v1  ;;  %v196_v4 = vld [vmem:[%s284_s1 + $0x18] sm:$0xff]   ;;  %v24_v5 = vld [vmem:[%s285_s0] sm:$0xff]  ;;  %v25_v6 = vld [vmem:[%s285_s0 + $0x8] sm:$0xff] }
   0x3   :  { %181 = vmatprep.subr.bf16.mxu0 %v201_v0  ;;  %v26_v7 = vpack.c.bf16 %v25_v6, %v24_v5  ;;  %v166_v8 = vld [vmem:[%s286_s2] ss:$0 sm:$0xff]  ;;  %v112_v14 = vld [vmem:[%s287_s3 + $0x8] sm:$0xff] }
   0x4   :  { %v111_v10 = vld [vmem:[%s287_s3] sm:$0xff] }
   0x5   :  { %v172_v38 = vld [vmem:[%s288_s4] ss:$0 sm:$0xff] }
   0x6   :  { %182 = vmatpush3.bf16.msra.mxu0 %v194_v2  ;;  %v173_v40 = vld [vmem:[%s289_s5] ss:$0 sm:$0xff] }
   0x7   :  { %183 = vmatprep.subr.bf16.mxu0 %v201_v0 }
   0xa   :  { %184 = vmatpush3.bf16.msra.mxu0 %v195_v3 }
   0xb   :  { %185 = vmatprep.subr.bf16.mxu0 %v201_v0 }
   0xe   :  { %186 = vmatpush3.bf16.msra.mxu0 %v196_v4 }
  0x11   :  { %188 = vmatmul.mubr.msk.bf16.vlgmr.msra.gmra.mrb[0].mxu0 %vm66_vm1, %v26_v7 }
  0xe4   :  { %v104_v9 = vpop.f32.mrb[0].mxu0 }
  0xe5   :  { %v105_v11 = vadd.f32 %v166_v8, %v104_v9  ;;  %v189_v12 = vpop.f32.mrb[1].mxu0 }
  0xe6   :  { %v107_v13 = vpop.f32.mrb[2].mxu0 }
  0xe7   :  { %v108_v15 = vadd.f32 %v166_v8, %v107_v13  ;;  %v190_v16 = vpop.f32.mrb[3].mxu0  ;;  %v113_v17 = vadd.f32 %v111_v10, %v105_v11 }
  0xe9   :  { %v115_v18 = vsel %vm66_vm1, %v113_v17, 0.0  ;;  %v114_v19 = vadd.f32 %v112_v14, %v108_v15 }
  0xea   :  { %116 = vadd.xlane.f32.xlu0 %v115_v18 }
  0xeb   :  { %v118_v20 = vsel %vm66_vm1, %v114_v19, 0.0 }
  0xee   :  { %119 = vadd.xlane.f32.xlu0 %v118_v20 }
 0x177   :  { %v117_v21 = vpop.xlane.xlu0 %116 }
 0x178   :  { %v122_v22 = vmul.f32 0.015625, %v117_v21 }
 0x17a   :  { %v124_v23 = vsub.f32 %v113_v17, %v122_v22 }
 0x17b   :  { %v120_v24 = vpop.xlane.xlu0 %119 }
 0x17c   :  { %v123_v25 = vmul.f32 0.015625, %v120_v24  ;;  %v126_v26 = vmul.f32 %v124_v23, %v124_v23 }
 0x17e   :  { %v125_v27 = vsub.f32 %v114_v19, %v123_v25  ;;  %v128_v28 = vsel %vm66_vm1, %v126_v26, 0.0 }
 0x17f   :  { %129 = vadd.xlane.f32.xlu1 %v128_v28 }
 0x180   :  { %v127_v29 = vmul.f32 %v125_v27, %v125_v27 }
 0x182   :  { %v131_v30 = vsel %vm66_vm1, %v127_v29, 0.0 }
 0x183   :  { %132 = vadd.xlane.f32.xlu1 %v131_v30 }
 0x20c   :  { %v130_v31 = vpop.xlane.xlu1 %129 }
 0x20d   :  { %v134_v32 = vmul.f32 0.015625, %v130_v31 }
 0x20f   :  { %v136_v33 = vadd.f32 1e-05, %v134_v32 }
 0x210   :  { %v133_v34 = vpop.xlane.xlu1 %132 }
 0x211   :  { %197 = vrsqrt.f32 %v136_v33  ;;  %v135_v35 = vmul.f32 0.015625, %v133_v34 }
 0x213   :  { %v137_v36 = vadd.f32 1e-05, %v135_v35 }
 0x215   :  { %199 = vrsqrt.f32 %v137_v36 }
 0x21b   :  { %v198_v37 = vpop.eup %197 }
 0x21c   :  { %v140_v39 = vmul.f32 %v198_v37, %v124_v23 }
 0x21e   :  { %v149_v41 = vmul.f32 %v172_v38, %v140_v39 }
 0x21f   :  { %v200_v42 = vpop.eup %199 }
 0x220   :  { %v158_v43 = vadd.f32 %v173_v40, %v149_v41  ;;  %v141_v44 = vmul.f32 %v200_v42, %v125_v27 }
 0x222   :  { %160 = vst.msk [vmem:[%s290_s6] sm:$0xff] %vm66_vm1, %v158_v43  ;;  %v150_v45 = vmul.f32 %v172_v38, %v141_v44 }
 0x224   :  { %v159_v46 = vadd.f32 %v173_v40, %v150_v45 }
 0x226   :  { %161 = vst.msk [vmem:[%s290_s6 + $0x8] sm:$0xff] %vm66_vm1, %v159_v46 }

// kernel: emodel_cnn_transformer_forward.44
= control target key start
LH: loop header
LB: loop body
LE: loop exit
PB: predicated region body
PF: predicated region fallthrough
CT: control target
= control target key end

     0   :  { %v156_v0 = vmov 0.0   ;;  %vm157_vm0 = vmmov 0   ;;  %vm61_vm1 = vcmask 523264   ;;  %vm114_vm2 = vcmask 519168   ;;  %s202_s1 = inlined_call_operand.vmem [shape: bf16[64,64], index: 1, kind: input, shape index: {}]   ;;  %s203_s0 = inlined_call_operand.vmem [shape: bf16[16,64], index: 0, kind: input, shape index: {}]   ;;  %s204_s2 = inlined_call_operand.vmem [shape: f32[1,64], index: 2, kind: input, shape index: {}]   ;;  %s205_s3 = inlined_call_operand.vmem [shape: bf16[16,64], index: 3, kind: output, shape index: {}]  }
   0x1   :  { %137 = vmatprep.subr.bf16.mxu0 %v156_v0  ;;  %v151_v1 = vld [vmem:[%s202_s1] sm:$0xff]   ;;  %145 = vmatprep.mubr.msk.bf16.mxu0 %vm157_vm0, %v156_v0  ;;  %v152_v2 = vld [vmem:[%s202_s1 + $0x8] sm:$0xff]   ;;  %v153_v3 = vld [vmem:[%s202_s1 + $0x10] sm:$0xff]  }
   0x2   :  { %138 = vmatpush3.bf16.msra.mxu0 %v151_v1  ;;  %v154_v4 = vld [vmem:[%s202_s1 + $0x18] sm:$0xff]   ;;  %v155_v5 = vld [vmem:[%s203_s0] sm:$0xff]  }
   0x3   :  { %139 = vmatprep.subr.bf16.mxu0 %v156_v0  ;;  %v121_v6 = vld [vmem:[%s204_s2] ss:$0 sm:$0xff] }
   0x6   :  { %140 = vmatpush3.bf16.msra.mxu0 %v152_v2 }
   0x7   :  { %141 = vmatprep.subr.bf16.mxu0 %v156_v0 }
   0xa   :  { %142 = vmatpush3.bf16.msra.mxu0 %v153_v3 }
   0xb   :  { %143 = vmatprep.subr.bf16.mxu0 %v156_v0 }
   0xe   :  { %144 = vmatpush3.bf16.msra.mxu0 %v154_v4 }
  0x11   :  { %146 = vmatmul.mubr.msk.bf16.vlgmr.msra.gmra.mrb[0].mxu0 %vm61_vm1, %v155_v5 }
  0xe4   :  { %v99_v7 = vpop.f32.mrb[0].mxu0 }
  0xe5   :  { %v100_v8 = vadd.f32 %v121_v6, %v99_v7  ;;  %v147_v9 = vpop.f32.mrb[1].mxu0 }
  0xe6   :  { %v102_v10 = vpop.f32.mrb[2].mxu0 }
  0xe7   :  { %v130_v11 = vpack.c.bf16 %v100_v8, %v100_v8  ;;  %v103_v12 = vadd.f32 %v121_v6, %v102_v10  ;;  %v148_v13 = vpop.f32.mrb[3].mxu0 }
  0xe9   :  { %115 = vst.msk [vmem:[%s205_s3] sm:$0xf] %vm114_vm2, %v130_v11  ;;  %v131_v14 = vpack.c.bf16 %v103_v12, %v103_v12 }
  0xeb   :  { %116 = vst.msk [vmem:[%s205_s3 + $0x4] sm:$0xf] %vm114_vm2, %v131_v14 }

// kernel: emodel_cnn_transformer_forward.29
= control target key start
LH: loop header
LB: loop body
LE: loop exit
PB: predicated region body
PF: predicated region fallthrough
CT: control target
= control target key end

     0   :  { %vm28_vm0 = vcmask 1041408   ;;  %v91_v0 = vmov 0.0   ;;  %vm92_vm1 = vmmov 0   ;;  %vm24_vm2 = vcmask 31744   ;;  %s125_s1 = inlined_call_operand.vmem [shape: bf16[4,64], index: 1, kind: input, shape index: {}]   ;;  %s126_s0 = inlined_call_operand.vmem [shape: bf16[2,4], index: 0, kind: input, shape index: {}]   ;;  %s127_s2 = inlined_call_operand.vmem [shape: f32[1,64], index: 2, kind: input, shape index: {}]   ;;  %s128_s3 = inlined_call_operand.vmem [shape: f32[2,64], index: 3, kind: output, shape index: {}]  }
   0x1   :  { %83 = vmatprep.subr.bf16.mxu0 %v91_v0  ;;  %v16_v1 = vld [vmem:[%s125_s1] sm:$0x3]  ;;  %85 = vmatprep.mubr.msk.bf16.mxu0 %vm92_vm1, %v91_v0  ;;  %vm73_vm3 = vcmask 517120  }
   0x2   :  { %v30_v2 = vsel %vm28_vm0, %v16_v1, 0  ;;  %v15_v3 = vld [vmem:[%s126_s0] sm:$0x1] }
   0x3   :  { %84 = vmatpush3.bf16.msra.mxu0 %v30_v2  ;;  %v79_v4 = vld [vmem:[%s127_s2] ss:$0 sm:$0xff] }
   0x6   :  { %86 = vmatmul.mubr.msk.bf16.vlgmr.msra.gmra.mrb[0].mxu0 %vm24_vm2, %v15_v3 }
  0xd9   :  { %v66_v5 = vpop.f32.mrb[0].mxu0 }
  0xda   :  { %v67_v6 = vadd.f32 %v79_v4, %v66_v5  ;;  %v87_v7 = vpop.f32.mrb[1].mxu0 }
  0xdb   :  { %v69_v8 = vpop.f32.mrb[2].mxu0 }
  0xdc   :  { %v72_v9 = vmax.f32 %v67_v6, 0.0  ;;  %v88_v10 = vpop.f32.mrb[3].mxu0 }
  0xde   :  { %74 = vst.msk [vmem:[%s128_s3] sm:$0x3] %vm73_vm3, %v72_v9 }

// kernel: emodel_cnn_transformer_forward.46
= control target key start
LH: loop header
LB: loop body
LE: loop exit
PB: predicated region body
PF: predicated region fallthrough
CT: control target
= control target key end

     0   :  { %s843_s9 = smov 0   ;;  %s934_s0 = inlined_call_operand.vmem [shape: bf16[2,8,64], index: 0, kind: input, shape index: {}]   ;;  %s935_s1 = inlined_call_operand.vmem [shape: bf16[2,8,128], index: 1, kind: input, shape index: {}]   ;;  %s936_s2 = inlined_call_operand.vmem [shape: f32[2,8,64], index: 2, kind: output, shape index: {}]  }
   0x1 LB: > { %s692_s10 = sadd.s32 4294967295, %s817_s9   ;;  %p696_p0 = scmp.ge.s32.totalorder %s817_s9, 1  ;;  %s817_s9 = sphi %s843_s9, %s12_s9  }
   0x2   : > { %p120_p1 = scmp.lt.s32.totalorder %s817_s9, 3 }
   0x4   : > { %p121_p2 = pnand %p696_p0, %p120_p1 }
   0x5   : > { %p144_p3 = scmp.lt.s32.totalorder (!%p121_p2), %s692_s10, 1  ;;  %v819_v0 = vmov (!%p121_p2), 0.0   ;;  %vm820_vm0 = vmmov (!%p121_p2), 0   ;;  %vm159_vm1 = vcmask (!%p121_p2), 130048   ;;  %vm207_vm2 = vcmask (!%p121_p2), 64512   ;;  %s821_s18 = smov (!%p121_p2), 64  }
   0x6   : > { %124 = sbr.rel (%p121_p2) target bundleno = 1439 (0x59f), region = 28  ;;  %728 = vmatprep.subr.bf16.mxu0 (!%p121_p2), %v819_v0  ;;  %730 = vmatprep.mubr.msk.bf16.mxu0 (!%p121_p2), %vm820_vm0, %v819_v0  ;;  %s822_s19 = smov (!%p121_p2), 112   ;;  %vm228_vm3 = vcmask (!%p121_p2), 1043456   ;;  %vm621_vm4 = vcmask (!%p121_p2), 261120   ;;  %vm623_vm5 = vcmask (!%p121_p2), 392192   ;;  %vm625_vm6 = vcmask (!%p121_p2), 523264  }
   0x7   : > { %734 = vmatprep.subr.bf16.mxu1 (!%p121_p2), %v819_v0  ;;  %736 = vmatprep.mubr.msk.bf16.mxu1 (!%p121_p2), %vm820_vm0, %v819_v0  ;;  %s823_s20 = smov (!%p121_p2), 96   ;;  %s824_s21 = smov (!%p121_p2), 80  }
   0x8   : > { %s825_s22 = smov (!%p121_p2), 48   ;;  %s826_s23 = smov (!%p121_p2), 16  }
   0x9   : > { %s827_s24 = smov (!%p121_p2), 32  }
   0xd   : > { %s938_s10 = smov (!%p144_p3, %s692_s10), 1 }
   0xe   : > { %s697_s11 = sshll.u32 %s938_s10, 2  ;;  %s699_s25 = sshll.u32 %s938_s10, 3 }
   0xf   : > { %s151_s14 = scalar_lea.vmem %s935_s1, %s697_s11  ;;  %s147_s17 = scalar_lea.vmem %s934_s0, %s697_s11 }
  0x10   : > { %v158_v1 = vld [vmem:[%s151_s14] sm:$0xf]  ;;  %s155_s28 = scalar_lea.vmem %s936_s2, %s699_s25 }
  0x11   : > { %v164_v2 = vsel %vm159_vm1, %v158_v1, 0  ;;  %v157_v3 = vld [vmem:[%s147_s17] sm:$0xf]  ;;  %v872_v10 = vcombine.low %v158_v1, %v158_v1 }
  0x12   : > { %729 = vmatpush3.bf16.xpose.msra.mxu0 %v164_v2  ;;  %v703_v11 = vcombine.low %v157_v3, %v157_v3 }
  0x13   : > { %746 = vmatprep.subr.bf16.mxu0 %v819_v0  ;;  %223 = vrot.lane.b32.xlu1 %v872_v10, %s821_s18 }
  0x17   : > { %277 = vrot.lane.b32.xlu1 %v872_v10, %s822_s19 }
  0x19   : > { %731 = vmatmul.mubr.msk.bf16.vlgmr.msra.gmra.mrb[0].mxu0 %vm159_vm1, %v157_v3 }
  0x1a   : > { %748 = vmatprep.mubr.msk.bf16.mxu0 %vm820_vm0, %v819_v0 }
  0x1b   : > { %388 = vrot.lane.b32.xlu1 %v872_v10, %s823_s20 }
  0x1f   : > { %386 = vrot.lane.b32.xlu1 %v703_v11, %s823_s20 }
  0x23   : > { %499 = vrot.lane.b32.xlu1 %v872_v10, %s824_s21 }
  0x27   : > { %497 = vrot.lane.b32.xlu1 %v703_v11, %s824_s21 }
  0x85   : > { %v224_v17 = vpop.permute.xlu1 %223 }
  0x86   : > { %v230_v18 = vsel %vm228_vm3, %v224_v17, 0 }
  0x87   : > { %735 = vmatpush3.bf16.msra.mxu1 %v230_v18 }
  0x88   : > { %740 = vmatprep.subr.bf16.mxu1 %v819_v0 }
  0x89   : > { %v278_v21 = vpop.permute.xlu1 %277 }
  0x8a   : > { %v283_v23 = vsel %vm159_vm1, %v278_v21, 0 }
  0x8d   : > { %v389_v25 = vpop.permute.xlu1 %388 }
  0x8e   : > { %v394_v28 = vsel %vm159_vm1, %v389_v25, 0 }
  0x91   : > { %v387_v27 = vpop.permute.xlu1 %386 }
  0x95   : > { %v500_v29 = vpop.permute.xlu1 %499 }
  0x96   : > { %v505_v30 = vsel %vm159_vm1, %v500_v29, 0 }
  0x99   : > { %v498_v31 = vpop.permute.xlu1 %497 }
  0xec   : > { %v200_v4 = vpop.f32.mrb[0].mxu0 }
  0xed   : > { %v206_v5 = vmul.f32 0.25, %v200_v4  ;;  %v732_v6 = vpop.f32.mrb[1].mxu0 }
  0xee   : > { %v203_v7 = vpop.f32.mrb[2].mxu0 }
  0xef   : > { %v733_v8 = vpop.f32.mrb[3].mxu0  ;;  %v208_v9 = vsel %vm207_vm2, %v206_v5, -inf }
  0xf0   : > { %209 = vmax.xlane.f32.xlu0 %v208_v9 }
 0x17d   : > { %v210_v12 = vpop.xlane.xlu0 %209 }
 0x17e   : > { %v211_v13 = vsub.f32 %v206_v5, %v210_v12 }
 0x180   : > { %v212_v14 = vmul.f32 1.442695, %v211_v13 }
 0x182   : > { %795 = vpow2.f32 %v212_v14 }
 0x18c   : > { %v796_v15 = vpop.eup %795 }
 0x18d   : > { %v214_v16 = vsel %vm207_vm2, %v796_v15, 0.0 }
 0x18e   : > { %215 = vadd.xlane.f32.xlu0 %v214_v16 }
 0x1a4   : > { %275 = vrot.lane.b32.xlu0 %v703_v11, %s822_s19 }
 0x21b   : > { %v216_v19 = vpop.xlane.xlu0 %215 }
 0x21c   : > { %797 = vrcp.f32 %v216_v19 }
 0x21f   : > { %v276_v26 = vpop.permute.xlu0 %275 }
 0x226   : > { %v798_v20 = vpop.eup %797 }
 0x227   : > { %v218_v22 = vmul.f32 %v798_v20, %v796_v15 }
 0x229   : > { %v219_v24 = vpack.c.bf16 %v218_v22, %v218_v22 }
 0x22b   : > { %737 = vmatmul.mubr.msk.bf16.vlgmr.msra.gmra.mrb[0].mxu1 %vm207_vm2, %v219_v24 }
 0x22c   : > { %741 = vmatpush3.bf16.xpose.msra.mxu1 %v283_v23  ;;  %742 = vmatprep.mubr.msk.bf16.mxu1 %vm820_vm0, %v819_v0 }
 0x22d   : > { %752 = vmatprep.subr.bf16.mxu1 %v819_v0 }
 0x233   : > { %743 = vmatmul.mubr.msk.bf16.vlgmr.msra.gmra.mrb[4].mxu1 %vm159_vm1, %v276_v26 }
 0x234   : > { %753 = vmatpush3.bf16.xpose.msra.mxu1 %v394_v28  ;;  %754 = vmatprep.mubr.msk.bf16.mxu1 %vm820_vm0, %v819_v0 }
 0x235   : > { %764 = vmatprep.subr.bf16.mxu1 %v819_v0 }
 0x23b   : > { %755 = vmatmul.mubr.msk.bf16.vlgmr.msra.gmra.mrb[8].mxu1 %vm159_vm1, %v387_v27 }
 0x23c   : > { %765 = vmatpush3.bf16.xpose.msra.mxu1 %v505_v30  ;;  %766 = vmatprep.mubr.msk.bf16.mxu1 %vm820_vm0, %v819_v0 }
 0x243   : > { %767 = vmatmul.mubr.msk.bf16.vlgmr.msra.gmra.mrb[12].mxu1 %vm159_vm1, %v498_v31 }
 0x2fe   : > { %v896_v32 = vpop.f32.mrb[0].mxu1 }
 0x2ff   : > { %v738_v33 = vpop.f32.mrb[1].mxu1 }
 0x300   : > { %v269_v34 = vpop.f32.mrb[2].mxu1 }
 0x301   : > { %v739_v35 = vpop.f32.mrb[3].mxu1 }
 0x306   : > { %v319_v36 = vpop.f32.mrb[4].mxu1 }
 0x307   : > { %v325_v37 = vmul.f32 0.25, %v319_v36  ;;  %v744_v38 = vpop.f32.mrb[5].mxu1 }
 0x308   : > { %v322_v39 = vpop.f32.mrb[6].mxu1 }
 0x309   : > { %v745_v40 = vpop.f32.mrb[7].mxu1  ;;  %v326_v41 = vsel %vm207_vm2, %v325_v37, -inf }
 0x30a   : > { %327 = vmax.xlane.f32.xlu1 %v326_v41 }
 0x30e   : > { %v430_v42 = vpop.f32.mrb[8].mxu1 }
 0x30f   : > { %v436_v43 = vmul.f32 0.25, %v430_v42  ;;  %v756_v44 = vpop.f32.mrb[9].mxu1 }
 0x310   : > { %v433_v45 = vpop.f32.mrb[10].mxu1 }
 0x311   : > { %v757_v46 = vpop.f32.mrb[11].mxu1  ;;  %v437_v47 = vsel %vm207_vm2, %v436_v43, -inf }
 0x312   : > { %438 = vmax.xlane.f32.xlu0 %v437_v47 }
 0x316   : > { %v541_v48 = vpop.f32.mrb[12].mxu1 }
 0x317   : > { %v547_v49 = vmul.f32 0.25, %v541_v48  ;;  %v768_v50 = vpop.f32.mrb[13].mxu1 }
 0x318   : > { %v544_v51 = vpop.f32.mrb[14].mxu1 }
 0x319   : > { %v769_v52 = vpop.f32.mrb[15].mxu1  ;;  %v548_v53 = vsel %vm207_vm2, %v547_v49, -inf }
 0x31a   : > { %549 = vmax.xlane.f32.xlu1 %v548_v53 }
 0x32b   : > { %338 = vrot.lane.b32.xlu1 %v872_v10, %s825_s22 }
 0x397   : > { %v328_v54 = vpop.xlane.xlu1 %327 }
 0x398   : > { %v329_v55 = vsub.f32 %v325_v37, %v328_v54 }
 0x39a   : > { %v330_v56 = vmul.f32 1.442695, %v329_v55 }
 0x39c   : > { %799 = vpow2.f32 %v330_v56 }
 0x39f   : > { %v439_v57 = vpop.xlane.xlu0 %438 }
 0x3a0   : > { %v440_v58 = vsub.f32 %v436_v43, %v439_v57 }
 0x3a2   : > { %v441_v59 = vmul.f32 1.442695, %v440_v58 }
 0x3a4   : > { %801 = vpow2.f32 %v441_v59 }
 0x3a6   : > { %v800_v60 = vpop.eup %799 }
 0x3a7   : > { %v550_v61 = vpop.xlane.xlu1 %549  ;;  %v332_v62 = vsel %vm207_vm2, %v800_v60, 0.0 }
 0x3a8   : > { %v551_v63 = vsub.f32 %v547_v49, %v550_v61  ;;  %333 = vadd.xlane.f32.xlu0 %v332_v62 }
 0x3aa   : > { %v552_v1 = vmul.f32 1.442695, %v551_v63 }
 0x3ab   : > { %v339_v2 = vpop.permute.xlu1 %338 }
 0x3ac   : > { %803 = vpow2.f32 %v552_v1  ;;  %v344_v3 = vsel %vm228_vm3, %v339_v2, 0 }
 0x3ad   : > { %747 = vmatpush3.bf16.msra.mxu0 %v344_v3 }
 0x3ae   : > { %v802_v4 = vpop.eup %801  ;;  %758 = vmatprep.subr.bf16.mxu0 %v819_v0 }
 0x3af   : > { %v443_v5 = vsel %vm207_vm2, %v802_v4, 0.0 }
 0x3b0   : > { %444 = vadd.xlane.f32.xlu1 %v443_v5 }
 0x3b6   : > { %v804_v6 = vpop.eup %803 }
 0x3b7   : > { %v554_v7 = vsel %vm207_vm2, %v804_v6, 0.0 }
 0x3b8   : > { %555 = vadd.xlane.f32.xlu0 %v554_v7 }
 0x3c1   : > { %560 = vrot.lane.b32.xlu1 %v872_v10, %s826_s23 }
 0x3ce   : > { %449 = vrot.lane.b32.xlu0 %v872_v10, %s827_s24 }
 0x435   : > { %v334_v8 = vpop.xlane.xlu0 %333 }
 0x436   : > { %805 = vrcp.f32 %v334_v8 }
 0x43d   : > { %v445_v9 = vpop.xlane.xlu1 %444 }
 0x43e   : > { %807 = vrcp.f32 %v445_v9 }
 0x440   : > { %v806_v11 = vpop.eup %805 }
 0x441   : > { %v336_v12 = vmul.f32 %v806_v11, %v800_v60  ;;  %v561_v18 = vpop.permute.xlu1 %560 }
 0x442   : > { %v566_v20 = vsel %vm228_vm3, %v561_v18, 0 }
 0x443   : > { %v337_v13 = vpack.c.bf16 %v336_v12, %v336_v12 }
 0x445   : > { %v556_v14 = vpop.xlane.xlu0 %555  ;;  %749 = vmatmul.mubr.msk.bf16.vlgmr.msra.gmra.mrb[4].mxu0 %vm207_vm2, %v337_v13 }
 0x446   : > { %809 = vrcp.f32 %v556_v14  ;;  %760 = vmatprep.mubr.msk.bf16.mxu0 %vm820_vm0, %v819_v0 }
 0x448   : > { %v808_v15 = vpop.eup %807 }
 0x449   : > { %v447_v16 = vmul.f32 %v808_v15, %v802_v4  ;;  %v450_v17 = vpop.permute.xlu0 %449 }
 0x44a   : > { %v455_v10 = vsel %vm228_vm3, %v450_v17, 0 }
 0x44b   : > { %759 = vmatpush3.bf16.msra.mxu0 %v455_v10  ;;  %v448_v19 = vpack.c.bf16 %v447_v16, %v447_v16 }
 0x44c   : > { %770 = vmatprep.subr.bf16.mxu0 %v819_v0 }
 0x44e   : > { %761 = vmatmul.mubr.msk.bf16.vlgmr.msra.gmra.mrb[8].mxu0 %vm207_vm2, %v448_v19 }
 0x44f   : > { %771 = vmatpush3.bf16.msra.mxu0 %v566_v20  ;;  %772 = vmatprep.mubr.msk.bf16.mxu0 %vm820_vm0, %v819_v0 }
 0x450   : > { %v810_v21 = vpop.eup %809 }
 0x451   : > { %v558_v22 = vmul.f32 %v810_v21, %v804_v6 }
 0x453   : > { %v559_v23 = vpack.c.bf16 %v558_v22, %v558_v22 }
 0x456   : > { %773 = vmatmul.mubr.msk.bf16.vlgmr.msra.gmra.mrb[12].mxu0 %vm207_vm2, %v559_v23 }
 0x518   : > { %v380_v24 = vpop.f32.mrb[4].mxu0 }
 0x519   : > { %609 = vrot.lane.b32.xlu1 %v380_v24, %s826_s23  ;;  %v750_v25 = vpop.f32.mrb[5].mxu0 }
 0x51a   : > { %v383_v26 = vpop.f32.mrb[6].mxu0 }
 0x51b   : > { %v751_v27 = vpop.f32.mrb[7].mxu0 }
 0x521   : > { %v491_v28 = vpop.f32.mrb[8].mxu0 }
 0x522   : > { %613 = vrot.lane.b32.xlu0 %v491_v28, %s827_s24  ;;  %v762_v29 = vpop.f32.mrb[9].mxu0 }
 0x523   : > { %v494_v30 = vpop.f32.mrb[10].mxu0 }
 0x524   : > { %v763_v31 = vpop.f32.mrb[11].mxu0 }
 0x529   : > { %v602_v33 = vpop.f32.mrb[12].mxu0 }
 0x52a   : > { %617 = vrot.lane.b32.xlu1 %v602_v33, %s825_s22  ;;  %v774_v0 = vpop.f32.mrb[13].mxu0 }
 0x52b   : > { %v605_v34 = vpop.f32.mrb[14].mxu0 }
 0x52c   : > { %v775_v35 = vpop.f32.mrb[15].mxu0 }
 0x58b   : > { %v610_v36 = vpop.permute.xlu1 %609 }
 0x58c   : > { %v620_v38 = vsel %vm159_vm1, %v896_v32, %v610_v36 }
 0x594   : > { %v614_v37 = vpop.permute.xlu0 %613 }
 0x595   : > { %v622_v39 = vsel %vm621_vm4, %v620_v38, %v614_v37 }
 0x59c   : > { %v618_v40 = vpop.permute.xlu1 %617 }
 0x59d   : > { %v624_v41 = vsel %vm623_vm5, %v622_v39, %v618_v40 }
 0x59e   : > { %626 = vst.msk [vmem:[%s155_s28] sm:$0xff] %vm625_vm6, %v624_v41 }
 0x59f PF: > { %s12_s9 = sadd.s32 1, %s817_s9  }
 0x5a0   : > { %p9_p4 = scmp.ge.s32.totalorder %s12_s9, 4  }
 0x5a2   :  { %11 = sbr.rel (!%p9_p4) target bundleno = 1 (0x1), region = 61 }

// kernel: emodel_cnn_transformer_forward.57
= control target key start
LH: loop header
LB: loop body
LE: loop exit
PB: predicated region body
PF: predicated region fallthrough
CT: control target
= control target key end

     0   :  { %s1147_s25 = smov 0   ;;  %s1285_s0 = inlined_call_operand.vmem [shape: f32[2,8,64], index: 0, kind: input, shape index: {}]   ;;  %s1286_s1 = inlined_call_operand.vmem [shape: f32[2,1,64], index: 1, kind: input, shape index: {}]   ;;  %s1287_s2 = inlined_call_operand.vmem [shape: f32[1,64], index: 2, kind: input, shape index: {}]   ;;  %s1288_s3 = inlined_call_operand.vmem [shape: f32[1,64], index: 3, kind: input, shape index: {}]   ;;  %s1289_s4 = inlined_call_operand.vmem [shape: bf16[64,64], index: 4, kind: input, shape index: {}]   ;;  %s1290_s5 = inlined_call_operand.vmem [shape: f32[1,64], index: 5, kind: input, shape index: {}]   ;;  %s1291_s6 = inlined_call_operand.vmem [shape: bf16[64,1], index: 6, kind: input, shape index: {}]   ;;  %s1292_s7 = inlined_call_operand.<no memory space> [shape: f32[1,1], index: 7, kind: input, shape index: {}]   ;;  %s1293_s8 = inlined_call_operand.vmem [shape: bf16[64,128], index: 8, kind: input, shape index: {}]   ;;  %s1294_s9 = inlined_call_operand.vmem [shape: f32[1,128], index: 9, kind: input, shape index: {}]   ;;  %s1295_s10 = inlined_call_operand.vmem [shape: bf16[128,1], index: 10, kind: input, shape index: {}]   ;;  %s1296_s12 = inlined_call_operand.vmem [shape: f32[2,1,1], index: 12, kind: output, shape index: {}]   ;;  %s1297_s11 = inlined_call_operand.<no memory space> [shape: f32[1,1], index: 11, kind: input, shape index: {}]  }
   0x1   :  { %v17_v0 = vstv %s1292_s7  ;;  %v19_v1 = vstv %s1297_s11 }
   0x2   :  { %18 = vst [vmem:[#allocation2] sm:$0x1] %v17_v0  ;;  %20 = vst [vmem:[#allocation3] sm:$0x1] %v19_v1 }
   0x3 LB: > { %s908_s26 = sadd.s32 4294967295, %s1071_s25   ;;  %p912_p0 = scmp.ge.s32.totalorder %s1071_s25, 1  ;;  %s1071_s25 = sphi %s1147_s25, %s26_s25  }
   0x4   : > { %p373_p1 = scmp.lt.s32.totalorder %s1071_s25, 3 }
   0x6   : > { %p374_p2 = pnand %p912_p0, %p373_p1 }
   0x7   : > { %p415_p3 = scmp.lt.s32.totalorder (!%p374_p2), %s908_s26, 1  ;;  %vm427_vm0 = vcmask (!%p374_p2), 523264   ;;  %v1037_v9 = vld [vmem:[%s1289_s4] sm:$0xff] (!%p374_p2)   ;;  %v1073_v10 = vmov (!%p374_p2), 0.0   ;;  %v1038_v11 = vld [vmem:[%s1289_s4 + $0x8] sm:$0xff] (!%p374_p2)   ;;  %v1039_v12 = vld [vmem:[%s1289_s4 + $0x10] sm:$0xff] (!%p374_p2)  }
   0x8   : > { %377 = sbr.rel (%p374_p2) target bundleno = 1409 (0x581), region = 68  ;;  %968 = vmatprep.subr.bf16.mxu0 (!%p374_p2), %v1073_v10  ;;  %980 = vmatprep.subr.bf16.mxu1 (!%p374_p2), %v1073_v10  ;;  %vm1074_vm1 = vmmov (!%p374_p2), 0   ;;  %v1040_v13 = vld [vmem:[%s1289_s4 + $0x18] sm:$0xff] (!%p374_p2)   ;;  %v914_v18 = vld [vmem:[%s1287_s2] ss:$0 sm:$0xff] (!%p374_p2)  ;;  %v1042_v27 = vld [vmem:[%s1291_s6 + $0x8] sm:$0xff] (!%p374_p2)  }
   0x9   : > { %969 = vmatpush3.bf16.msra.mxu0 (!%p374_p2), %v1037_v9  ;;  %976 = vmatprep.mubr.msk.bf16.mxu0 (!%p374_p2), %vm1074_vm1, %v1073_v10  ;;  %v915_v20 = vld [vmem:[%s1288_s3] ss:$0 sm:$0xff] (!%p374_p2)  ;;  %v1043_v28 = vld [vmem:[%s1291_s6 + $0x10] sm:$0xff] (!%p374_p2)   ;;  %v1044_v29 = vld [vmem:[%s1291_s6 + $0x18] sm:$0xff] (!%p374_p2)   ;;  %v1075_v38 = vmov (!%p374_p2), 0   ;;  %vm633_vm2 = vcmask (!%p374_p2), 7168  }
   0xa   : > { %970 = vmatprep.subr.bf16.mxu0 (!%p374_p2), %v1073_v10  ;;  %988 = vmatprep.mubr.msk.bf16.mxu1 (!%p374_p2), %vm1074_vm1, %v1073_v10  ;;  %v1041_v26 = vld [vmem:[%s1291_s6] sm:$0xff] (!%p374_p2)   ;;  %v1046_v1 = vld [vmem:[%s1293_s8 + $0x8] sm:$0xff] (!%p374_p2)   ;;  %vm850_vm3 = vcmask (!%p374_p2), 0  }
   0xb   : > { %981 = vmatpush3.bf16.msra.mxu1 (!%p374_p2), %v1041_v26  ;;  %v917_v30 = vld [vmem:[%s1290_s5] ss:$0 sm:$0xff] (!%p374_p2)  ;;  %1035 = vset.pattern.permute.xlu1 (!%p374_p2), %v1075_v38  ;;  %v1054_v9 = vld [vmem:[%s1295_s10 + $0x28] sm:$0xff] (!%p374_p2)  }
   0xc   : > { %982 = vmatprep.subr.bf16.mxu1 (!%p374_p2), %v1073_v10  ;;  %1036 = vset.pattern.permute.xlu0 (!%p374_p2), %v1075_v38  ;;  %v923_v39 = vld [vmem:[#allocation2] ss:$0 sm:$0xff] (!%p374_p2) }
   0xd   : > { %971 = vmatpush3.bf16.msra.mxu0 (!%p374_p2), %v1038_v11  ;;  %v1045_v0 = vld [vmem:[%s1293_s8] sm:$0xff] (!%p374_p2)  }
   0xe   : > { %972 = vmatprep.subr.bf16.mxu0 (!%p374_p2), %v1073_v10 }
   0xf   : > { %s1299_s26 = smov (!%p415_p3, %s908_s26), 1  ;;  %983 = vmatpush3.bf16.msra.mxu1 %v1042_v27 }
  0x10   : > { %s913_s7 = sshll.u32 %s1299_s26, 3  ;;  %s421_s23 = scalar_lea.vmem %s1286_s1, %s1299_s26  ;;  %984 = vmatprep.subr.bf16.mxu1 %v1073_v10 }
  0x11   : > { %s418_s28 = scalar_lea.vmem %s1285_s0, %s913_s7  ;;  %973 = vmatpush3.bf16.msra.mxu0 %v1039_v12  ;;  %v916_v22 = vld [vmem:[%s421_s23] ss:$0 sm:$0xff] }
  0x12   : > { %v426_v2 = vld [vmem:[%s418_s28] sm:$0xff]  ;;  %974 = vmatprep.subr.bf16.mxu0 %v1073_v10  ;;  %s424_s28 = scalar_lea.vmem %s1296_s12, %s1299_s26 }
  0x13   : > { %v428_v3 = vsel %vm427_vm0, %v426_v2, 0.0  ;;  %985 = vmatpush3.bf16.msra.mxu1 %v1043_v28 }
  0x14   : > { %429 = vadd.xlane.f32.xlu0 %v428_v3  ;;  %986 = vmatprep.subr.bf16.mxu1 %v1073_v10  ;;  %v1048_v3 = vld [vmem:[%s1293_s8 + $0x18] sm:$0xff]  }
  0x15   : > { %975 = vmatpush3.bf16.msra.mxu0 %v1040_v13 }
  0x16   : > { %992 = vmatprep.subr.bf16.mxu0 %v1073_v10 }
  0x17   : > { %987 = vmatpush3.bf16.msra.mxu1 %v1044_v29 }
  0x18   : > { %1004 = vmatprep.subr.bf16.mxu1 %v1073_v10 }
  0xa1   : > { %v430_v4 = vpop.xlane.xlu0 %429 }
  0xa2   : > { %v432_v5 = vmul.f32 0.015625, %v430_v4  ;;  %v1049_v4 = vld [vmem:[%s1295_s10] sm:$0xff]  }
  0xa4   : > { %v433_v6 = vsub.f32 %v426_v2, %v432_v5  ;;  %v1047_v2 = vld [vmem:[%s1293_s8 + $0x10] sm:$0xff]   ;;  %v1050_v5 = vld [vmem:[%s1295_s10 + $0x8] sm:$0xff]  }
  0xa6   : > { %v434_v7 = vmul.f32 %v433_v6, %v433_v6 }
  0xa8   : > { %v435_v8 = vsel %vm427_vm0, %v434_v7, 0.0  ;;  %v1052_v7 = vld [vmem:[%s1295_s10 + $0x18] sm:$0xff]  }
  0xa9   : > { %436 = vadd.xlane.f32.xlu0 %v435_v8  ;;  %v1053_v8 = vld [vmem:[%s1295_s10 + $0x20] sm:$0xff]  }
 0x136   : > { %v437_v14 = vpop.xlane.xlu0 %436 }
 0x137   : > { %v438_v15 = vmul.f32 0.015625, %v437_v14 }
 0x139   : > { %v439_v16 = vadd.f32 1e-05, %v438_v15 }
 0x13b   : > { %1057 = vrsqrt.f32 %v439_v16 }
 0x145   : > { %v1058_v17 = vpop.eup %1057 }
 0x146   : > { %v441_v19 = vmul.f32 %v1058_v17, %v433_v6  ;;  %v1051_v6 = vld [vmem:[%s1295_s10 + $0x10] sm:$0xff]  }
 0x148   : > { %v449_v21 = vmul.f32 %v914_v18, %v441_v19 }
 0x14a   : > { %v457_v23 = vadd.f32 %v915_v20, %v449_v21  ;;  %v1055_v21 = vld [vmem:[%s1295_s10 + $0x30] sm:$0xff]  }
 0x14c   : > { %v1195_v24 = vadd.f32 %v916_v22, %v457_v23  ;;  %v1056_v22 = vld [vmem:[%s1295_s10 + $0x38] sm:$0xff]   ;;  %v675_v23 = vld [vmem:[%s1294_s9] sm:$0x1] }
 0x14e   : > { %v466_v25 = vpack.c.bf16 %v1195_v24, %v1195_v24 }
 0x150   : > { %977 = vmatmul.mubr.msk.bf16.vlgmr.msra.gmra.mrb[0].mxu0 %vm427_vm0, %v466_v25 }
 0x151   : > { %1000 = vmatprep.mubr.msk.bf16.mxu0 %vm1074_vm1, %v1073_v10  ;;  %993 = vmatpush3.bf16.msra.mxu0 %v1045_v0 }
 0x152   : > { %994 = vmatprep.subr.bf16.mxu0 %v1073_v10 }
 0x155   : > { %995 = vmatpush3.bf16.msra.mxu0 %v1046_v1 }
 0x156   : > { %996 = vmatprep.subr.bf16.mxu0 %v1073_v10 }
 0x159   : > { %997 = vmatpush3.bf16.msra.mxu0 %v1047_v2 }
 0x15a   : > { %998 = vmatprep.subr.bf16.mxu0 %v1073_v10 }
 0x15d   : > { %999 = vmatpush3.bf16.msra.mxu0 %v1048_v3 }
 0x223   : > { %v543_v31 = vpop.f32.mrb[0].mxu0 }
 0x224   : > { %v544_v32 = vadd.f32 %v917_v30, %v543_v31  ;;  %v978_v33 = vpop.f32.mrb[1].mxu0  ;;  %v761_v31 = vld [vmem:[#allocation3] sm:$0x1] }
 0x225   : > { %v546_v34 = vpop.f32.mrb[2].mxu0 }
 0x226   : > { %1059 = vtanh.f32 %v544_v32  ;;  %v979_v35 = vpop.f32.mrb[3].mxu0 }
 0x230   : > { %v1060_v36 = vpop.eup %1059 }
 0x231   : > { %v550_v37 = vpack.c.bf16 %v1060_v36, %v1060_v36 }
 0x233   : > { %989 = vmatmul.mubr.msk.bf16.vlgmr.msra.gmra.mrb[0].mxu1 %vm427_vm0, %v550_v37 }
 0x234   : > { %1020 = vmatprep.mubr.msk.bf16.mxu1 %vm1074_vm1, %v1073_v10  ;;  %1005 = vmatpush3.bf16.msra.mxu1 %v1049_v4 }
 0x235   : > { %1006 = vmatprep.subr.bf16.mxu1 %v1073_v10 }
 0x238   : > { %1007 = vmatpush3.bf16.msra.mxu1 %v1050_v5 }
 0x239   : > { %1008 = vmatprep.subr.bf16.mxu1 %v1073_v10 }
 0x23c   : > { %1009 = vmatpush3.bf16.msra.mxu1 %v1051_v6 }
 0x23d   : > { %1010 = vmatprep.subr.bf16.mxu1 %v1073_v10 }
 0x240   : > { %1011 = vmatpush3.bf16.msra.mxu1 %v1052_v7 }
 0x241   : > { %1012 = vmatprep.subr.bf16.mxu1 %v1073_v10 }
 0x244   : > { %1013 = vmatpush3.bf16.msra.mxu1 %v1053_v8 }
 0x245   : > { %1014 = vmatprep.subr.bf16.mxu1 %v1073_v10 }
 0x248   : > { %1015 = vmatpush3.bf16.msra.mxu1 %v1054_v9 }
 0x249   : > { %1016 = vmatprep.subr.bf16.mxu1 %v1073_v10 }
 0x24c   : > { %1017 = vmatpush3.bf16.msra.mxu1 %v1055_v21 }
 0x24d   : > { %1018 = vmatprep.subr.bf16.mxu1 %v1073_v10 }
 0x250   : > { %1019 = vmatpush3.bf16.msra.mxu1 %v1056_v22 }
 0x306   : > { %v627_v40 = vpop.f32.mrb[0].mxu1 }
 0x307   : > { %v628_v41 = vadd.f32 %v923_v39, %v627_v40  ;;  %v990_v42 = vpop.f32.mrb[1].mxu1 }
 0x308   : > { %v630_v43 = vpop.f32.mrb[2].mxu1 }
 0x309   : > { %v634_v44 = vsel %vm633_vm2, %v628_v41, -inf  ;;  %v991_v45 = vpop.f32.mrb[3].mxu1 }
 0x30a   : > { %v635_v46 = vrot.slane %v634_v44, 4 }
 0x30c   : > { %v636_v47 = vmax.f32 %v634_v44, %v635_v46 }
 0x30e   : > { %v637_v48 = vrot.slane %v636_v47, 2 }
 0x310   : > { %v638_v49 = vmax.f32 %v636_v47, %v637_v48 }
 0x312   : > { %v639_v50 = vrot.slane %v638_v49, 1 }
 0x314   : > { %v640_v51 = vmax.f32 %v638_v49, %v639_v50 }
 0x316   : > { %v641_v52 = vsub.f32 %v628_v41, %v640_v51 }
 0x318   : > { %v642_v53 = vmul.f32 1.442695, %v641_v52 }
 0x31a   : > { %1061 = vpow2.f32 %v642_v53 }
 0x324   : > { %v1062_v54 = vpop.eup %1061 }
 0x325   : > { %v644_v55 = vsel %vm633_vm2, %v1062_v54, 0.0 }
 0x326   : > { %v645_v56 = vrot.slane %v644_v55, 4 }
 0x328   : > { %v646_v57 = vadd.f32 %v645_v56, %v644_v55 }
 0x32a   : > { %v647_v58 = vrot.slane %v646_v57, 2 }
 0x32c   : > { %v648_v59 = vadd.f32 %v647_v58, %v646_v57 }
 0x32e   : > { %v649_v60 = vrot.slane %v648_v59, 1 }
 0x330   : > { %v650_v61 = vadd.f32 %v649_v60, %v648_v59 }
 0x332   : > { %1063 = vrcp.f32 %v650_v61 }
 0x33c   : > { %v1064_v62 = vpop.eup %1063 }
 0x33d   : > { %v652_v63 = vmul.f32 %v1064_v62, %v1062_v54 }
 0x33f   : > { %655 = vperm.xlu1 %1035, %v652_v63  }
 0x3be   : > { %v656_v11 = vpop.permute.xlu1 %655 }
 0x3bf   : > { %v658_v12 = vmul.f32 %v656_v11, %v1195_v24 }
 0x3c1   : > { %v659_v13 = vsel %vm427_vm0, %v658_v12, 0.0 }
 0x3c2   : > { %v660_v14 = vrot.slane %v659_v13, 4 }
 0x3c4   : > { %v661_v15 = vadd.f32 %v660_v14, %v659_v13 }
 0x3c6   : > { %v662_v16 = vrot.slane %v661_v15, 2 }
 0x3c8   : > { %v663_v17 = vadd.f32 %v662_v16, %v661_v15 }
 0x3ca   : > { %v664_v18 = vrot.slane %v663_v17, 1 }
 0x3cc   : > { %v665_v19 = vadd.f32 %v664_v18, %v663_v17 }
 0x3ce   : > { %v666_v20 = vpack.c.bf16 %v665_v19, %v665_v19 }
 0x3d0   : > { %1001 = vmatmul.mubr.msk.bf16.vlgmr.msra.gmra.mrb[4].mxu0 %vm427_vm0, %v666_v20 }
 0x4a3   : > { %v737_v24 = vpop.f32.mrb[4].mxu0 }
 0x4a4   : > { %v738_v25 = vadd.f32 %v737_v24, %v675_v23  ;;  %v1002_v26 = vpop.f32.mrb[5].mxu0 }
 0x4a5   : > { %v740_v27 = vpop.f32.mrb[6].mxu0 }
 0x4a6   : > { %v743_v28 = vmax.f32 %v738_v25, 0.0  ;;  %v1003_v29 = vpop.f32.mrb[7].mxu0 }
 0x4a8   : > { %v744_v30 = vpack.c.bf16 %v743_v28, %v743_v28 }
 0x4aa   : > { %1021 = vmatmul.mubr.bf16.vlgmr.msra.gmra.mrb[4].mxu1 %v744_v30 }
 0x57d   : > { %v844_v10 = vpop.f32.mrb[4].mxu1 }
 0x57e   : > { %v845_v32 = vadd.f32 %v844_v10, %v761_v31  ;;  %v1022_v33 = vpop.f32.mrb[5].mxu1 }
 0x57f   : > { %v847_v34 = vpop.f32.mrb[6].mxu1 }
 0x580   : > { %851 = vst.msk [vmem:[%s424_s28] sm:$0x1] %vm850_vm3, %v845_v32  ;;  %v1023_v35 = vpop.f32.mrb[7].mxu1 }
 0x581 PF: > { %s26_s25 = sadd.s32 1, %s1071_s25  }
 0x582   : > { %p23_p4 = scmp.ge.s32.totalorder %s26_s25, 4  }
 0x584   :  { %25 = sbr.rel (!%p23_p4) target bundleno = 3 (0x3), region = 101 }

</bundles_post_ra>
